<compile_context>
chip_gen: v7x
topology: tpu7x:2x2x1
jax: 0.10.0
libtpu: 0.0.40
codegen_flags: <defaults>
</compile_context>

<pallas_src>
import jax
import jax.numpy as jnp
from jax import lax
from jax.experimental import pallas as pl
from jax.experimental.pallas import tpu as pltpu

L_IN = 64            # input signal length (forced by fc = Linear(64*32, .))
C = 64               # self.inplanes
K = 17               # conv kernel size
PAD = 8
L_HALF = L_IN // 2   # 32 (after stride-2 conv / maxpool)
NUM_CLASSES = 25
N_PAD = 128          # lane-dense (padded) logits width
BN_EPS = 1e-5
TB = 8               # batch elements per grid step (multiple of 8 -> tile-aligned slabs)


def resnet_kernel(pe_ref, po_ref, w1_ref, w2_ref, w3_ref, scale_ref, shift_ref,
                  wfc_ref, bfc_ref, out_ref):
    # pe/po: (L_HALF, TB, K) bf16  -- conv1 im2col patches at even/odd outputs
    # w1: (K, C) bf16   w2/w3: (K*C, C) bf16   wfc: (L_HALF, C, N_PAD) bf16
    # scale/shift: (1, C) f32      bfc: (1, N_PAD) f32     out: (TB, N_PAD) f32
    tb = pe_ref.shape[1]

    w1 = w1_ref[...]

    # ---- conv1: Conv1d(1, 64, k=17, s=1, p=8, bias=False) -----------------
    # Evaluated separately at even / odd output positions so the stride-2
    # stages below never touch positions they would drop.
    he = jnp.dot(pe_ref[...].reshape(L_HALF * tb, K), w1,
                 preferred_element_type=jnp.float32)          # h1 at even t, (32*TB, C)
    ho = jnp.dot(po_ref[...].reshape(L_HALF * tb, K), w1,
                 preferred_element_type=jnp.float32)          # h1 at odd t,  (32*TB, C)

    # maxpool(kernel_size=1, stride=2) == even rows of h1 == `he` (shortcut).

    zpad = jnp.zeros((PAD, tb, C), jnp.bfloat16)

    # ---- conv2: Conv1d(64, 64, k=17, s=2, p=8) ----------------------------
    # stride-2 conv via even/odd decomposition of its input:
    #   h2[t] = sum_{k even} w2[k] . h1_even[t + k//2 - 4]
    #         + sum_{k odd } w2[k] . h1_odd [t + k//2 - 4]
    hep = jnp.concatenate(
        [zpad, he.astype(jnp.bfloat16).reshape(L_HALF, tb, C), zpad], axis=0)  # (48, TB, C)
    hop = jnp.concatenate(
        [zpad, ho.astype(jnp.bfloat16).reshape(L_HALF, tb, C), zpad], axis=0)  # (48, TB, C)
    pieces2 = []
    for k in range(K):                       # static unroll (trace-time)
        src = hep if (k % 2 == 0) else hop
        start = k // 2 + PAD // 2            # = k//2 + 4
        pieces2.append(src[start:start + L_HALF])             # (32, TB, C)
    patches2 = jnp.concatenate(pieces2, axis=-1)               # (32, TB, K*C)
    h2 = jnp.dot(patches2.reshape(L_HALF * tb, K * C), w2_ref[...],
                 preferred_element_type=jnp.float32)           # (32*TB, C) f32

    # Dropout(p=0.2): identity at inference time.

    # ---- conv3: Conv1d(64, 64, k=17, s=1, p=8) ----------------------------
    h2p = jnp.concatenate(
        [zpad, h2.astype(jnp.bfloat16).reshape(L_HALF, tb, C), zpad], axis=0)  # (48, TB, C)
    patches3 = jnp.concatenate([h2p[k:k + L_HALF] for k in range(K)], axis=-1)  # (32, TB, K*C)
    h3 = jnp.dot(patches3.reshape(L_HALF * tb, K * C), w3_ref[...],
                 preferred_element_type=jnp.float32)           # (32*TB, C) f32

    # ---- residual add ------------------------------------------------------
    h = h3 + he

    # self.layers: `block`/`layers_arg` are external constructor args; with
    # layers_arg=[] the Sequential is the identity (used here).

    # ---- BatchNorm1d(64) (inference, folded) + ReLU (f32) ------------------
    h = h * scale_ref[...] + shift_ref[...]
    h = jnp.maximum(h, 0.0)

    # ---- flatten (torch order index = c*32 + t) + Linear(2048, 25) ---------
    # torch flatten order is absorbed into the (t, c, n) packing of wfc; the
    # contraction is one batched matmul over t followed by a leading-axis sum.
    hfc = h.astype(jnp.bfloat16).reshape(L_HALF, tb, C)        # (32, TB, C)
    logits_t = jnp.einsum("tbc,tcn->tbn", hfc, wfc_ref[...],
                          preferred_element_type=jnp.float32)  # (32, TB, N_PAD)
    out_ref[...] = logits_t.sum(axis=0) + bfc_ref[...]


def resnet_forward(x, params, tb=TB):
    """x: (B, 1, L_IN) float32 in torch NCL layout. Returns (B, NUM_CLASSES)."""
    B = x.shape[0]
    Bp = ((B + tb - 1) // tb) * tb                       # pad batch to a multiple of TB

    # ---- input layout prep (pure data replication / padding, no arithmetic) ----
    x2 = x.reshape(B, L_IN).astype(jnp.float32)
    xpad = jnp.pad(x2, ((0, Bp - B), (PAD, PAD)))        # (Bp, L_IN + 2*PAD)
    # conv1 im2col patches P[b, t, k] = xpad[b, t + k], split by output parity
    # and laid out (t, b, k) to match the kernel's (T, TB, C) activation layout.
    patches = jnp.stack([xpad[:, k:k + L_IN] for k in range(K)], axis=-1)   # (Bp, 64, K)
    pe = jnp.transpose(patches[:, 0::2, :], (1, 0, 2)).astype(jnp.bfloat16)  # (32, Bp, K)
    po = jnp.transpose(patches[:, 1::2, :], (1, 0, 2)).astype(jnp.bfloat16)  # (32, Bp, K)

    # ---- weight re-packing for the kernel layout (bf16 MXU operands) ----------
    w1 = jnp.transpose(params["conv1_w"][:, 0, :], (1, 0)).astype(jnp.bfloat16)          # (K, C)
    w2 = jnp.transpose(params["conv2_w"], (2, 1, 0)).reshape(K * C, C).astype(jnp.bfloat16)
    w3 = jnp.transpose(params["conv3_w"], (2, 1, 0)).reshape(K * C, C).astype(jnp.bfloat16)
    scale1 = params["bn_gamma"] / jnp.sqrt(params["bn_var"] + BN_EPS)
    shift1 = params["bn_beta"] - params["bn_mean"] * scale1
    scale = scale1[None, :].astype(jnp.float32)                                          # (1, C)
    shift = shift1[None, :].astype(jnp.float32)                                          # (1, C)
    # wfc[t, c, n] = fc_w[n, c*L_HALF + t] (matches torch .view flatten order),
    # padded to a lane-dense 128-wide logits slab.
    wfc = jnp.transpose(params["fc_w"].reshape(NUM_CLASSES, C, L_HALF), (2, 1, 0))
    wfc = jnp.pad(wfc, ((0, 0), (0, 0), (0, N_PAD - NUM_CLASSES))).astype(jnp.bfloat16)  # (32, C, 128)
    bfc = jnp.pad(params["fc_b"], (0, N_PAD - NUM_CLASSES))[None, :].astype(jnp.float32)  # (1, 128)

    grid = (Bp // tb,)
    out = pl.pallas_call(
        resnet_kernel,
        out_shape=jax.ShapeDtypeStruct((Bp, N_PAD), jnp.float32),
        grid=grid,
        in_specs=[
            pl.BlockSpec((L_HALF, tb, K), lambda g: (0, g, 0)),      # pe
            pl.BlockSpec((L_HALF, tb, K), lambda g: (0, g, 0)),      # po
            pl.BlockSpec((K, C), lambda g: (0, 0)),                  # w1
            pl.BlockSpec((K * C, C), lambda g: (0, 0)),              # w2 (im2col-packed)
            pl.BlockSpec((K * C, C), lambda g: (0, 0)),              # w3 (im2col-packed)
            pl.BlockSpec((1, C), lambda g: (0, 0)),                  # bn scale
            pl.BlockSpec((1, C), lambda g: (0, 0)),                  # bn shift
            pl.BlockSpec((L_HALF, C, N_PAD), lambda g: (0, 0, 0)),   # fc weight
            pl.BlockSpec((1, N_PAD), lambda g: (0, 0)),              # fc bias
        ],
        out_specs=pl.BlockSpec((tb, N_PAD), lambda g: (g, 0)),
        compiler_params=pltpu.CompilerParams(
            dimension_semantics=("parallel",),
            vmem_limit_bytes=16 * 1024 * 1024,
        ),
    )(pe, po, w1, w2, w3, scale, shift, wfc, bfc)
    return out[:B, :NUM_CLASSES]


# ---------------------- pure-JAX reference (for checking) ------------------
def _conv1d_ref(x, w, stride, pad):
    return lax.conv_general_dilated(
        x, w, window_strides=(stride,), padding=[(pad, pad)],
        dimension_numbers=("NCH", "OIH", "NCH"))


def resnet_ref(x, p):
    h1 = _conv1d_ref(x, p["conv1_w"], 1, PAD)            # (B, C, L_IN)
    sc = h1[:, :, ::2]                                   # maxpool(k=1, s=2)
    h2 = _conv1d_ref(h1, p["conv2_w"], 2, PAD)
    h3 = _conv1d_ref(h2, p["conv3_w"], 1, PAD)
    h = h3 + sc
    scale = p["bn_gamma"] / jnp.sqrt(p["bn_var"] + BN_EPS)
    h = (h - p["bn_mean"][None, :, None]) * scale[None, :, None] + p["bn_beta"][None, :, None]
    h = jnp.maximum(h, 0.0)
    flat = h.reshape(h.shape[0], -1)
    return flat @ p["fc_w"].T + p["fc_b"]


if __name__ == "__main__":
    key = jax.random.PRNGKey(0)
    ks = jax.random.split(key, 10)
    params = {
        "conv1_w": 0.05 * jax.random.normal(ks[0], (C, 1, K), jnp.float32),
        "conv2_w": 0.05 * jax.random.normal(ks[1], (C, C, K), jnp.float32),
        "conv3_w": 0.05 * jax.random.normal(ks[2], (C, C, K), jnp.float32),
        "bn_gamma": 1.0 + 0.1 * jax.random.normal(ks[3], (C,), jnp.float32),
        "bn_beta": 0.1 * jax.random.normal(ks[4], (C,), jnp.float32),
        "bn_mean": 0.1 * jax.random.normal(ks[5], (C,), jnp.float32),
        "bn_var": 1.0 + 0.1 * jax.random.uniform(ks[6], (C,), jnp.float32),
        "fc_w": 0.02 * jax.random.normal(ks[7], (NUM_CLASSES, C * L_HALF), jnp.float32),
        "fc_b": 0.1 * jax.random.normal(ks[8], (NUM_CLASSES,), jnp.float32),
    }
    x = jax.random.normal(ks[9], (2, 1, L_IN), jnp.float32)

    out = jax.block_until_ready(resnet_forward(x, params))
    ref = resnet_ref(x, params)

    assert out.shape == (2, NUM_CLASSES)
    err = float(jnp.max(jnp.abs(out - ref)))
    assert err < 5e-2, f"max abs error vs reference: {err}"   # bf16 MXU inputs, f32 accum
    print("KERNEL_OK")
</pallas_src>

<mosaic_0001>
module attributes {stable_mosaic.version = 11 : i64} {
  func.func @resnet_kernel(%arg0: i32, %arg1: memref<32x8x17xbf16, #tpu.memory_space<vmem>>, %arg2: memref<32x8x17xbf16, #tpu.memory_space<vmem>>, %arg3: memref<17x64xbf16, #tpu.memory_space<vmem>>, %arg4: memref<1088x64xbf16, #tpu.memory_space<vmem>>, %arg5: memref<1088x64xbf16, #tpu.memory_space<vmem>>, %arg6: memref<1x64xf32, #tpu.memory_space<vmem>>, %arg7: memref<1x64xf32, #tpu.memory_space<vmem>>, %arg8: memref<32x64x128xbf16, #tpu.memory_space<vmem>>, %arg9: memref<1x128xf32, #tpu.memory_space<vmem>>, %arg10: memref<8x128xf32, #tpu.memory_space<vmem>>) attributes {dimension_semantics = [#tpu.dimension_semantics<parallel>], iteration_bounds = array<i64: 1>, scalar_prefetch = 0 : i64, scratch_operands = 0 : i64, tpu.core_type = #tpu.core_type<tc>, window_params = [{transform_indices = @transform_0, window_bounds = array<i64: 32, 8, 17>}, {transform_indices = @transform_1, window_bounds = array<i64: 32, 8, 17>}, {pipeline_mode = #tpu.pipeline_mode<synchronous>, transform_indices = @transform_2, window_bounds = array<i64: 17, 64>}, {pipeline_mode = #tpu.pipeline_mode<synchronous>, transform_indices = @transform_3, window_bounds = array<i64: 1088, 64>}, {pipeline_mode = #tpu.pipeline_mode<synchronous>, transform_indices = @transform_4, window_bounds = array<i64: 1088, 64>}, {pipeline_mode = #tpu.pipeline_mode<synchronous>, transform_indices = @transform_5, window_bounds = array<i64: 1, 64>}, {pipeline_mode = #tpu.pipeline_mode<synchronous>, transform_indices = @transform_6, window_bounds = array<i64: 1, 64>}, {pipeline_mode = #tpu.pipeline_mode<synchronous>, transform_indices = @transform_7, window_bounds = array<i64: 32, 64, 128>}, {pipeline_mode = #tpu.pipeline_mode<synchronous>, transform_indices = @transform_8, window_bounds = array<i64: 1, 128>}, {transform_indices = @transform_9, window_bounds = array<i64: 8, 128>}]} {
    %c0 = arith.constant 0 : index
    %c0_0 = arith.constant 0 : index
    %0 = vector.load %arg3[%c0, %c0_0] : memref<17x64xbf16, #tpu.memory_space<vmem>>, vector<17x64xbf16>
    %c0_1 = arith.constant 0 : index
    %c0_2 = arith.constant 0 : index
    %c0_3 = arith.constant 0 : index
    %1 = vector.load %arg1[%c0_1, %c0_2, %c0_3] : memref<32x8x17xbf16, #tpu.memory_space<vmem>>, vector<32x8x17xbf16>
    %2 = vector.shape_cast %1 : vector<32x8x17xbf16> to vector<256x17xbf16>
    %cst = arith.constant dense<0.000000e+00> : vector<256x64xf32>
    %3 = tpu.matmul %2, %0, %cst {dimension_numbers = #tpu.dot_dimension_numbers<[1], [0], [0], [1], [0, 0, 1, 1], [], []>} : vector<256x17xbf16>, vector<17x64xbf16>, vector<256x64xf32> -> vector<256x64xf32>
    %c0_4 = arith.constant 0 : index
    %c0_5 = arith.constant 0 : index
    %c0_6 = arith.constant 0 : index
    %4 = vector.load %arg2[%c0_4, %c0_5, %c0_6] : memref<32x8x17xbf16, #tpu.memory_space<vmem>>, vector<32x8x17xbf16>
    %5 = vector.shape_cast %4 : vector<32x8x17xbf16> to vector<256x17xbf16>
    %cst_7 = arith.constant dense<0.000000e+00> : vector<256x64xf32>
    %6 = tpu.matmul %5, %0, %cst_7 {dimension_numbers = #tpu.dot_dimension_numbers<[1], [0], [0], [1], [0, 0, 1, 1], [], []>} : vector<256x17xbf16>, vector<17x64xbf16>, vector<256x64xf32> -> vector<256x64xf32>
    %cst_8 = arith.constant 0.000000e+00 : bf16
    %7 = vector.broadcast %cst_8 : bf16 to vector<8x8x64xbf16>
    %8 = arith.truncf %3 : vector<256x64xf32> to vector<256x64xbf16>
    %9 = vector.shape_cast %8 : vector<256x64xbf16> to vector<32x8x64xbf16>
    %10 = tpu.concatenate %7, %9, %7 in 0 : vector<8x8x64xbf16>, vector<32x8x64xbf16>, vector<8x8x64xbf16> -> vector<48x8x64xbf16>
    %11 = arith.truncf %6 : vector<256x64xf32> to vector<256x64xbf16>
    %12 = vector.shape_cast %11 : vector<256x64xbf16> to vector<32x8x64xbf16>
    %13 = tpu.concatenate %7, %12, %7 in 0 : vector<8x8x64xbf16>, vector<32x8x64xbf16>, vector<8x8x64xbf16> -> vector<48x8x64xbf16>
    %14 = vector.extract_strided_slice %10 {offsets = [4, 0, 0], sizes = [32, 8, 64], strides = [1, 1, 1]} : vector<48x8x64xbf16> to vector<32x8x64xbf16>
    %15 = vector.extract_strided_slice %13 {offsets = [4, 0, 0], sizes = [32, 8, 64], strides = [1, 1, 1]} : vector<48x8x64xbf16> to vector<32x8x64xbf16>
    %16 = vector.extract_strided_slice %10 {offsets = [5, 0, 0], sizes = [32, 8, 64], strides = [1, 1, 1]} : vector<48x8x64xbf16> to vector<32x8x64xbf16>
    %17 = vector.extract_strided_slice %13 {offsets = [5, 0, 0], sizes = [32, 8, 64], strides = [1, 1, 1]} : vector<48x8x64xbf16> to vector<32x8x64xbf16>
    %18 = vector.extract_strided_slice %10 {offsets = [6, 0, 0], sizes = [32, 8, 64], strides = [1, 1, 1]} : vector<48x8x64xbf16> to vector<32x8x64xbf16>
    %19 = vector.extract_strided_slice %13 {offsets = [6, 0, 0], sizes = [32, 8, 64], strides = [1, 1, 1]} : vector<48x8x64xbf16> to vector<32x8x64xbf16>
    %20 = vector.extract_strided_slice %10 {offsets = [7, 0, 0], sizes = [32, 8, 64], strides = [1, 1, 1]} : vector<48x8x64xbf16> to vector<32x8x64xbf16>
    %21 = vector.extract_strided_slice %13 {offsets = [7, 0, 0], sizes = [32, 8, 64], strides = [1, 1, 1]} : vector<48x8x64xbf16> to vector<32x8x64xbf16>
    %22 = vector.extract_strided_slice %10 {offsets = [8, 0, 0], sizes = [32, 8, 64], strides = [1, 1, 1]} : vector<48x8x64xbf16> to vector<32x8x64xbf16>
    %23 = vector.extract_strided_slice %13 {offsets = [8, 0, 0], sizes = [32, 8, 64], strides = [1, 1, 1]} : vector<48x8x64xbf16> to vector<32x8x64xbf16>
    %24 = vector.extract_strided_slice %10 {offsets = [9, 0, 0], sizes = [32, 8, 64], strides = [1, 1, 1]} : vector<48x8x64xbf16> to vector<32x8x64xbf16>
    %25 = vector.extract_strided_slice %13 {offsets = [9, 0, 0], sizes = [32, 8, 64], strides = [1, 1, 1]} : vector<48x8x64xbf16> to vector<32x8x64xbf16>
    %26 = vector.extract_strided_slice %10 {offsets = [10, 0, 0], sizes = [32, 8, 64], strides = [1, 1, 1]} : vector<48x8x64xbf16> to vector<32x8x64xbf16>
    %27 = vector.extract_strided_slice %13 {offsets = [10, 0, 0], sizes = [32, 8, 64], strides = [1, 1, 1]} : vector<48x8x64xbf16> to vector<32x8x64xbf16>
    %28 = vector.extract_strided_slice %10 {offsets = [11, 0, 0], sizes = [32, 8, 64], strides = [1, 1, 1]} : vector<48x8x64xbf16> to vector<32x8x64xbf16>
    %29 = vector.extract_strided_slice %13 {offsets = [11, 0, 0], sizes = [32, 8, 64], strides = [1, 1, 1]} : vector<48x8x64xbf16> to vector<32x8x64xbf16>
    %30 = vector.extract_strided_slice %10 {offsets = [12, 0, 0], sizes = [32, 8, 64], strides = [1, 1, 1]} : vector<48x8x64xbf16> to vector<32x8x64xbf16>
    %31 = tpu.concatenate %14, %15, %16, %17, %18, %19, %20, %21, %22, %23, %24, %25, %26, %27, %28, %29 in 2 : vector<32x8x64xbf16>, vector<32x8x64xbf16>, vector<32x8x64xbf16>, vector<32x8x64xbf16>, vector<32x8x64xbf16>, vector<32x8x64xbf16>, vector<32x8x64xbf16>, vector<32x8x64xbf16>, vector<32x8x64xbf16>, vector<32x8x64xbf16>, vector<32x8x64xbf16>, vector<32x8x64xbf16>, vector<32x8x64xbf16>, vector<32x8x64xbf16>, vector<32x8x64xbf16>, vector<32x8x64xbf16> -> vector<32x8x1024xbf16>
    %32 = tpu.concatenate %31, %30 in 2 : vector<32x8x1024xbf16>, vector<32x8x64xbf16> -> vector<32x8x1088xbf16>
    %33 = vector.shape_cast %32 : vector<32x8x1088xbf16> to vector<256x1088xbf16>
    %c0_9 = arith.constant 0 : index
    %c0_10 = arith.constant 0 : index
    %34 = vector.load %arg4[%c0_9, %c0_10] : memref<1088x64xbf16, #tpu.memory_space<vmem>>, vector<1088x64xbf16>
    %cst_11 = arith.constant dense<0.000000e+00> : vector<256x64xf32>
    %35 = tpu.matmul %33, %34, %cst_11 {dimension_numbers = #tpu.dot_dimension_numbers<[1], [0], [0], [1], [0, 0, 1, 1], [], []>} : vector<256x1088xbf16>, vector<1088x64xbf16>, vector<256x64xf32> -> vector<256x64xf32>
    %36 = arith.truncf %35 : vector<256x64xf32> to vector<256x64xbf16>
    %37 = vector.shape_cast %36 : vector<256x64xbf16> to vector<32x8x64xbf16>
    %38 = tpu.concatenate %7, %37, %7 in 0 : vector<8x8x64xbf16>, vector<32x8x64xbf16>, vector<8x8x64xbf16> -> vector<48x8x64xbf16>
    %39 = vector.extract_strided_slice %38 {offsets = [0, 0, 0], sizes = [32, 8, 64], strides = [1, 1, 1]} : vector<48x8x64xbf16> to vector<32x8x64xbf16>
    %40 = vector.extract_strided_slice %38 {offsets = [1, 0, 0], sizes = [32, 8, 64], strides = [1, 1, 1]} : vector<48x8x64xbf16> to vector<32x8x64xbf16>
    %41 = vector.extract_strided_slice %38 {offsets = [2, 0, 0], sizes = [32, 8, 64], strides = [1, 1, 1]} : vector<48x8x64xbf16> to vector<32x8x64xbf16>
    %42 = vector.extract_strided_slice %38 {offsets = [3, 0, 0], sizes = [32, 8, 64], strides = [1, 1, 1]} : vector<48x8x64xbf16> to vector<32x8x64xbf16>
    %43 = vector.extract_strided_slice %38 {offsets = [4, 0, 0], sizes = [32, 8, 64], strides = [1, 1, 1]} : vector<48x8x64xbf16> to vector<32x8x64xbf16>
    %44 = vector.extract_strided_slice %38 {offsets = [5, 0, 0], sizes = [32, 8, 64], strides = [1, 1, 1]} : vector<48x8x64xbf16> to vector<32x8x64xbf16>
    %45 = vector.extract_strided_slice %38 {offsets = [6, 0, 0], sizes = [32, 8, 64], strides = [1, 1, 1]} : vector<48x8x64xbf16> to vector<32x8x64xbf16>
    %46 = vector.extract_strided_slice %38 {offsets = [7, 0, 0], sizes = [32, 8, 64], strides = [1, 1, 1]} : vector<48x8x64xbf16> to vector<32x8x64xbf16>
    %47 = vector.extract_strided_slice %38 {offsets = [8, 0, 0], sizes = [32, 8, 64], strides = [1, 1, 1]} : vector<48x8x64xbf16> to vector<32x8x64xbf16>
    %48 = vector.extract_strided_slice %38 {offsets = [9, 0, 0], sizes = [32, 8, 64], strides = [1, 1, 1]} : vector<48x8x64xbf16> to vector<32x8x64xbf16>
    %49 = vector.extract_strided_slice %38 {offsets = [10, 0, 0], sizes = [32, 8, 64], strides = [1, 1, 1]} : vector<48x8x64xbf16> to vector<32x8x64xbf16>
    %50 = vector.extract_strided_slice %38 {offsets = [11, 0, 0], sizes = [32, 8, 64], strides = [1, 1, 1]} : vector<48x8x64xbf16> to vector<32x8x64xbf16>
    %51 = vector.extract_strided_slice %38 {offsets = [12, 0, 0], sizes = [32, 8, 64], strides = [1, 1, 1]} : vector<48x8x64xbf16> to vector<32x8x64xbf16>
    %52 = vector.extract_strided_slice %38 {offsets = [13, 0, 0], sizes = [32, 8, 64], strides = [1, 1, 1]} : vector<48x8x64xbf16> to vector<32x8x64xbf16>
    %53 = vector.extract_strided_slice %38 {offsets = [14, 0, 0], sizes = [32, 8, 64], strides = [1, 1, 1]} : vector<48x8x64xbf16> to vector<32x8x64xbf16>
    %54 = vector.extract_strided_slice %38 {offsets = [15, 0, 0], sizes = [32, 8, 64], strides = [1, 1, 1]} : vector<48x8x64xbf16> to vector<32x8x64xbf16>
    %55 = vector.extract_strided_slice %38 {offsets = [16, 0, 0], sizes = [32, 8, 64], strides = [1, 1, 1]} : vector<48x8x64xbf16> to vector<32x8x64xbf16>
    %56 = tpu.concatenate %39, %40, %41, %42, %43, %44, %45, %46, %47, %48, %49, %50, %51, %52, %53, %54 in 2 : vector<32x8x64xbf16>, vector<32x8x64xbf16>, vector<32x8x64xbf16>, vector<32x8x64xbf16>, vector<32x8x64xbf16>, vector<32x8x64xbf16>, vector<32x8x64xbf16>, vector<32x8x64xbf16>, vector<32x8x64xbf16>, vector<32x8x64xbf16>, vector<32x8x64xbf16>, vector<32x8x64xbf16>, vector<32x8x64xbf16>, vector<32x8x64xbf16>, vector<32x8x64xbf16>, vector<32x8x64xbf16> -> vector<32x8x1024xbf16>
    %57 = tpu.concatenate %56, %55 in 2 : vector<32x8x1024xbf16>, vector<32x8x64xbf16> -> vector<32x8x1088xbf16>
    %58 = vector.shape_cast %57 : vector<32x8x1088xbf16> to vector<256x1088xbf16>
    %c0_12 = arith.constant 0 : index
    %c0_13 = arith.constant 0 : index
    %59 = vector.load %arg5[%c0_12, %c0_13] : memref<1088x64xbf16, #tpu.memory_space<vmem>>, vector<1088x64xbf16>
    %cst_14 = arith.constant dense<0.000000e+00> : vector<256x64xf32>
    %60 = tpu.matmul %58, %59, %cst_14 {dimension_numbers = #tpu.dot_dimension_numbers<[1], [0], [0], [1], [0, 0, 1, 1], [], []>} : vector<256x1088xbf16>, vector<1088x64xbf16>, vector<256x64xf32> -> vector<256x64xf32>
    %61 = arith.addf %60, %3 : vector<256x64xf32>
    %c0_15 = arith.constant 0 : index
    %c0_16 = arith.constant 0 : index
    %62 = vector.load %arg6[%c0_15, %c0_16] : memref<1x64xf32, #tpu.memory_space<vmem>>, vector<1x64xf32>
    %63 = vector.broadcast %62 : vector<1x64xf32> to vector<256x64xf32>
    %64 = arith.mulf %61, %63 : vector<256x64xf32>
    %c0_17 = arith.constant 0 : index
    %c0_18 = arith.constant 0 : index
    %65 = vector.load %arg7[%c0_17, %c0_18] : memref<1x64xf32, #tpu.memory_space<vmem>>, vector<1x64xf32>
    %66 = vector.broadcast %65 : vector<1x64xf32> to vector<256x64xf32>
    %67 = arith.addf %64, %66 : vector<256x64xf32>
    %cst_19 = arith.constant 0.000000e+00 : f32
    %68 = vector.broadcast %cst_19 : f32 to vector<256x64xf32>
    %69 = arith.maximumf %67, %68 : vector<256x64xf32>
    %70 = arith.truncf %69 : vector<256x64xf32> to vector<256x64xbf16>
    %71 = vector.shape_cast %70 : vector<256x64xbf16> to vector<32x8x64xbf16>
    %c0_20 = arith.constant 0 : index
    %c0_21 = arith.constant 0 : index
    %c0_22 = arith.constant 0 : index
    %72 = vector.load %arg8[%c0_20, %c0_21, %c0_22] : memref<32x64x128xbf16, #tpu.memory_space<vmem>>, vector<32x64x128xbf16>
    "tpu.trace_start"() <{level = 10 : i32, message = "tbc,tcn->tbn"}> : () -> ()
    %cst_23 = arith.constant dense<0.000000e+00> : vector<32x8x128xf32>
    %73 = tpu.matmul %71, %72, %cst_23 {dimension_numbers = #tpu.dot_dimension_numbers<[2], [1], [1], [2], [0, 0, 0, 1, 1, 2], [0], [0]>} : vector<32x8x64xbf16>, vector<32x64x128xbf16>, vector<32x8x128xf32> -> vector<32x8x128xf32>
    "tpu.trace_stop"() : () -> ()
    %cst_24 = arith.constant dense<0.000000e+00> : vector<8x128xf32>
    %74 = vector.multi_reduction <add>, %73, %cst_24 [0] : vector<32x8x128xf32> to vector<8x128xf32>
    %c0_25 = arith.constant 0 : index
    %c0_26 = arith.constant 0 : index
    %75 = vector.load %arg9[%c0_25, %c0_26] : memref<1x128xf32, #tpu.memory_space<vmem>>, vector<1x128xf32>
    %76 = vector.broadcast %75 : vector<1x128xf32> to vector<8x128xf32>
    %77 = arith.addf %74, %76 : vector<8x128xf32>
    %c0_27 = arith.constant 0 : index
    %c0_28 = arith.constant 0 : index
    %78 = vector.load %arg10[%c0_27, %c0_28] : memref<8x128xf32, #tpu.memory_space<vmem>>, vector<8x128xf32>
    tpu.vector_store %arg10[%c0_27, %c0_28], %77 {strides = array<i32>} : memref<8x128xf32, #tpu.memory_space<vmem>>, vector<8x128xf32>,
    return
  }
  func.func @transform_0(%arg0: i32) -> (i32, i32, i32) {
    %c0_i32 = arith.constant 0 : i32
    %c0_i32_0 = arith.constant 0 : i32
    %c0_i32_1 = arith.constant 0 : i32
    return %c0_i32, %arg0, %c0_i32_0 : i32, i32, i32
  }
  func.func @transform_1(%arg0: i32) -> (i32, i32, i32) {
    %c0_i32 = arith.constant 0 : i32
    %c0_i32_0 = arith.constant 0 : i32
    %c0_i32_1 = arith.constant 0 : i32
    return %c0_i32, %arg0, %c0_i32_0 : i32, i32, i32
  }
  func.func @transform_2(%arg0: i32) -> (i32, i32) {
    %c0_i32 = arith.constant 0 : i32
    %c0_i32_0 = arith.constant 0 : i32
    %c0_i32_1 = arith.constant 0 : i32
    return %c0_i32, %c0_i32_0 : i32, i32
  }
  func.func @transform_3(%arg0: i32) -> (i32, i32) {
    %c0_i32 = arith.constant 0 : i32
    %c0_i32_0 = arith.constant 0 : i32
    %c0_i32_1 = arith.constant 0 : i32
    return %c0_i32, %c0_i32_0 : i32, i32
  }
  func.func @transform_4(%arg0: i32) -> (i32, i32) {
    %c0_i32 = arith.constant 0 : i32
    %c0_i32_0 = arith.constant 0 : i32
    %c0_i32_1 = arith.constant 0 : i32
    return %c0_i32, %c0_i32_0 : i32, i32
  }
  func.func @transform_5(%arg0: i32) -> (i32, i32) {
    %c0_i32 = arith.constant 0 : i32
    %c0_i32_0 = arith.constant 0 : i32
    %c0_i32_1 = arith.constant 0 : i32
    return %c0_i32, %c0_i32_0 : i32, i32
  }
  func.func @transform_6(%arg0: i32) -> (i32, i32) {
    %c0_i32 = arith.constant 0 : i32
    %c0_i32_0 = arith.constant 0 : i32
    %c0_i32_1 = arith.constant 0 : i32
    return %c0_i32, %c0_i32_0 : i32, i32
  }
  func.func @transform_7(%arg0: i32) -> (i32, i32, i32) {
    %c0_i32 = arith.constant 0 : i32
    %c0_i32_0 = arith.constant 0 : i32
    %c0_i32_1 = arith.constant 0 : i32
    %c0_i32_2 = arith.constant 0 : i32
    return %c0_i32, %c0_i32_0, %c0_i32_1 : i32, i32, i32
  }
  func.func @transform_8(%arg0: i32) -> (i32, i32) {
    %c0_i32 = arith.constant 0 : i32
    %c0_i32_0 = arith.constant 0 : i32
    %c0_i32_1 = arith.constant 0 : i32
    return %c0_i32, %c0_i32_0 : i32, i32
  }
  func.func @transform_9(%arg0: i32) -> (i32, i32) {
    %c0_i32 = arith.constant 0 : i32
    %c0_i32_0 = arith.constant 0 : i32
    return %arg0, %c0_i32 : i32, i32
  }
}

</mosaic_0001>

<bundles_post_ra>
// kernel: tpu_custom_call.1
= control target key start
LH: loop header
LB: loop body
LE: loop exit
PB: predicated region body
PF: predicated region fallthrough
CT: control target
= control target key end

     0   :  { %vm207_vm0 = vcmask 1040384   ;;  %v12552_v2 = vmov 0   ;;  %vm158_vm1 = vcmask 138240   ;;  %s9713_s15 = smov 64   ;;  %vm954_vm2 = vcmask 523264   ;;  %s12542_s0 = inlined_call_operand.vmem [shape: bf16[32,8,17], index: 0, kind: input, shape index: {}]   ;;  %s12543_s1 = inlined_call_operand.vmem [shape: bf16[32,8,17], index: 1, kind: input, shape index: {}]   ;;  %s12544_s2 = inlined_call_operand.vmem [shape: bf16[17,64], index: 2, kind: input, shape index: {}]   ;;  %s12545_s3 = inlined_call_operand.vmem [shape: bf16[1088,64], index: 3, kind: input, shape index: {}]   ;;  %s12546_s4 = inlined_call_operand.vmem [shape: bf16[1088,64], index: 4, kind: input, shape index: {}]   ;;  %s12547_s5 = inlined_call_operand.vmem [shape: f32[1,64], index: 5, kind: input, shape index: {}]   ;;  %s12548_s6 = inlined_call_operand.vmem [shape: f32[1,64], index: 6, kind: input, shape index: {}]   ;;  %s12549_s7 = inlined_call_operand.vmem [shape: bf16[32,64,128], index: 7, kind: input, shape index: {}]   ;;  %s12550_s8 = inlined_call_operand.vmem [shape: f32[1,128], index: 8, kind: input, shape index: {}]   ;;  %s12551_s9 = inlined_call_operand.hbm [shape: f32[8,128], index: 9, kind: output, shape index: {}]  }
   0x1   :  { %v9390_v0 = vld [vmem:[%s12544_s2] sm:$0xff]   ;;  %v9391_v1 = vld [vmem:[%s12544_s2 + $0x8] ss:$0 sps:$4 sm:$0x11]   ;;  %v209_v3 = vsel %vm207_vm0, 65535, %v12552_v2  ;;  %888 = vrot.lane.b32.xlu0 %v12552_v2, %s9713_s15  ;;  %v9394_v7 = vld [vmem:[%s12543_s1 + $0x10] sm:$0xff]  }
   0x2   :  { %8885 = vmatprep.subr.bf16.mxu1 %v9390_v0  ;;  %8849 = vmatprep.subr.bf16.mxu0 %v9390_v0  ;;  %v211_v4 = vand.u32 %v9391_v1, %v209_v3  ;;  %v9392_v5 = vld [vmem:[%s12543_s1] sm:$0xff]   ;;  %v9393_v6 = vld [vmem:[%s12543_s1 + $0x8] sm:$0xff]   ;;  %v9395_v8 = vld [vmem:[%s12543_s1 + $0x18] sm:$0xff]  }
   0x3   :  { %8886 = vmatpush3.bf16.msra.mxu1 %v9390_v0  ;;  %8850 = vmatpush3.bf16.msra.mxu0 %v9390_v0  ;;  %v9396_v9 = vld [vmem:[%s12543_s1 + $0x20] sm:$0xff]   ;;  %v9409_v11 = vld [vmem:[%s12542_s0 + $0x8] sm:$0xff]   ;;  %v9410_v12 = vld [vmem:[%s12542_s0 + $0x10] sm:$0xff]  }
   0x4   :  { %8887 = vmatprep.subr.bf16.mxu1 %v211_v4  ;;  %8889 = vmatprep.mubr.msk.bf16.mxu1 %vm158_vm1, %v9392_v5  ;;  %v9408_v10 = vld [vmem:[%s12542_s0] sm:$0xff]   ;;  %v9397_v13 = vld [vmem:[%s12543_s1 + $0x28] sm:$0xff]   ;;  %v9398_v14 = vld [vmem:[%s12543_s1 + $0x30] sm:$0xff]  }
   0x5   :  { %8851 = vmatprep.subr.bf16.mxu0 %v211_v4  ;;  %8853 = vmatprep.mubr.msk.bf16.mxu0 %vm158_vm1, %v9408_v10  ;;  %v9411_v15 = vld [vmem:[%s12542_s0 + $0x18] sm:$0xff]   ;;  %v9412_v16 = vld [vmem:[%s12542_s0 + $0x20] sm:$0xff]   ;;  %v9413_v19 = vld [vmem:[%s12542_s0 + $0x28] sm:$0xff]  }
   0x6   :  { %v9399_v17 = vld [vmem:[%s12543_s1 + $0x38] sm:$0xff]   ;;  %v9400_v18 = vld [vmem:[%s12543_s1 + $0x40] sm:$0xff]   ;;  %v9414_v20 = vld [vmem:[%s12542_s0 + $0x30] sm:$0xff]  }
   0x7   :  { %8888 = vmatpush3.bf16.msra.mxu1 %v211_v4  ;;  %8852 = vmatpush3.bf16.msra.mxu0 %v211_v4  ;;  %v9401_v21 = vld [vmem:[%s12543_s1 + $0x48] sm:$0xff]   ;;  %v9402_v22 = vld [vmem:[%s12543_s1 + $0x50] sm:$0xff]   ;;  %v9415_v23 = vld [vmem:[%s12542_s0 + $0x38] sm:$0xff]  }
   0x8   :  { %v9416_v24 = vld [vmem:[%s12542_s0 + $0x40] sm:$0xff]   ;;  %v9403_v25 = vld [vmem:[%s12543_s1 + $0x58] sm:$0xff]   ;;  %v9417_v27 = vld [vmem:[%s12542_s0 + $0x48] sm:$0xff]  }
   0x9   :  { %v9404_v26 = vld [vmem:[%s12543_s1 + $0x60] sm:$0xff]   ;;  %v9418_v28 = vld [vmem:[%s12542_s0 + $0x50] sm:$0xff]   ;;  %v9405_v29 = vld [vmem:[%s12543_s1 + $0x68] sm:$0xff]  }
   0xa   :  { %8890 = vmatmul.mubr.msk.bf16.vlgmr.msra.gmra.mrb[0].mxu1 %vm158_vm1, %v9393_v6  ;;  %8854 = vmatmul.mubr.msk.bf16.vlgmr.msra.gmra.mrb[0].mxu0 %vm158_vm1, %v9409_v11  ;;  %v9406_v30 = vld [vmem:[%s12543_s1 + $0x70] sm:$0xff]   ;;  %v9419_v31 = vld [vmem:[%s12542_s0 + $0x58] sm:$0xff]   ;;  %v9420_v32 = vld [vmem:[%s12542_s0 + $0x60] sm:$0xff]  }
   0xb   :  { %8893 = vmatprep.mubr.msk.bf16.mxu1 %vm158_vm1, %v9394_v7  ;;  %8857 = vmatprep.mubr.msk.bf16.mxu0 %vm158_vm1, %v9410_v12  ;;  %v9407_v33 = vld [vmem:[%s12543_s1 + $0x78] sm:$0xff]   ;;  %v9421_v34 = vld [vmem:[%s12542_s0 + $0x68] sm:$0xff]   ;;  %v9422_v35 = vld [vmem:[%s12542_s0 + $0x70] sm:$0xff]  }
   0xc   :  { %v9423_v36 = vld [vmem:[%s12542_s0 + $0x78] sm:$0xff]   ;;  %v9424_v37 = vld [vmem:[%s12545_s3 + $0x40] sm:$0xff]   ;;  %v9426_v39 = vld [vmem:[%s12545_s3 + $0x48] sm:$0xff]  }
   0xd   :  { %v9425_v38 = vld [vmem:[%s12545_s3] sm:$0xff]   ;;  %7753 = vmatprep.subr.bf16.mxu0 %v9424_v37  ;;  %v9427_v40 = vld [vmem:[%s12545_s3 + $0x8] sm:$0xff]   ;;  %v9428_v41 = vld [vmem:[%s12545_s3 + $0x50] sm:$0xff]  }
   0xe   :  { %7754 = vmatpush3.bf16.msra.mxu0 %v9425_v38  ;;  %v9429_v42 = vld [vmem:[%s12545_s3 + $0x10] sm:$0xff]   ;;  %v9430_v43 = vld [vmem:[%s12545_s3 + $0x58] sm:$0xff]   ;;  %v9436_v46 = vld [vmem:[%s12545_s3 + $0xc0] sm:$0xff]  }
   0xf   :  { %7755 = vmatprep.subr.bf16.mxu0 %v9426_v39  ;;  %v9431_v48 = vld [vmem:[%s12545_s3 + $0x18] sm:$0xff]   ;;  %v9437_v49 = vld [vmem:[%s12545_s3 + $0x80] sm:$0xff]   ;;  %v9438_v50 = vld [vmem:[%s12545_s3 + $0xc8] sm:$0xff]   ;;  %7865 = vmatprep.subr.bf16.mxu1 %v9436_v46 }
  0x10   :  { %v9432_v51 = vld [vmem:[%s12545_s3 + $0x60] sm:$0xff]   ;;  %7866 = vmatpush3.bf16.msra.mxu1 %v9437_v49  ;;  %v9439_v52 = vld [vmem:[%s12545_s3 + $0x88] sm:$0xff]   ;;  %v9441_v53 = vld [vmem:[%s12545_s3 + $0xd0] sm:$0xff]  }
  0x11   :  { %7867 = vmatprep.subr.bf16.mxu1 %v9438_v50  ;;  %v9433_v54 = vld [vmem:[%s12545_s3 + $0x20] sm:$0xff]   ;;  %v9434_v55 = vld [vmem:[%s12545_s3 + $0x68] sm:$0xff]   ;;  %v9443_v56 = vld [vmem:[%s12545_s3 + $0x90] sm:$0xff]  }
  0x12   :  { %8894 = vmatmul.mubr.msk.bf16.gmra.mrb[4].mxu1 %vm158_vm1, %v9395_v8  ;;  %8858 = vmatmul.mubr.msk.bf16.gmra.mrb[4].mxu0 %vm158_vm1, %v9411_v15  ;;  %v9435_v57 = vld [vmem:[%s12545_s3 + $0x28] sm:$0xff]   ;;  %v9444_v58 = vld [vmem:[%s12545_s3 + $0xd8] sm:$0xff]   ;;  %v9440_v59 = vld [vmem:[%s12545_s3 + $0x70] sm:$0xff]  }
  0x13   :  { %8897 = vmatprep.mubr.msk.bf16.mxu1 %vm158_vm1, %v9396_v9  ;;  %8861 = vmatprep.mubr.msk.bf16.mxu0 %vm158_vm1, %v9412_v16  ;;  %v9445_v60 = vld [vmem:[%s12545_s3 + $0x98] sm:$0xff]   ;;  %v9448_v61 = vld [vmem:[%s12545_s3 + $0xe0] sm:$0xff]   ;;  %v9442_v62 = vld [vmem:[%s12545_s3 + $0x30] sm:$0xff]  }
  0x14   :  { %7756 = vmatpush3.bf16.msra.mxu0 %v9427_v40  ;;  %7868 = vmatpush3.bf16.msra.mxu1 %v9439_v52  ;;  %v9446_v63 = vld [vmem:[%s12545_s3 + $0x78] sm:$0xff]   ;;  %v9449_v0 = vld [vmem:[%s12545_s3 + $0xa0] sm:$0xff]   ;;  %v9450_v1 = vld [vmem:[%s12545_s3 + $0xe8] sm:$0xff]  }
  0x15   :  { %7757 = vmatprep.subr.bf16.mxu0 %v9428_v41  ;;  %7869 = vmatprep.subr.bf16.mxu1 %v9441_v53  ;;  %v9447_v3 = vld [vmem:[%s12545_s3 + $0x38] sm:$0xff]   ;;  %v9452_v4 = vld [vmem:[%s12545_s3 + $0x140] sm:$0xff]   ;;  %v9451_v5 = vld [vmem:[%s12545_s3 + $0xa8] sm:$0xff]  }
  0x16   :  { %v9453_v6 = vld [vmem:[%s12545_s3 + $0xf0] sm:$0xff]   ;;  %v9454_v7 = vld [vmem:[%s12545_s3 + $0x100] sm:$0xff]   ;;  %v9456_v9 = vld [vmem:[%s12545_s3 + $0xf8] sm:$0xff]  }
  0x17   :  { %v9455_v8 = vld [vmem:[%s12545_s3 + $0xb0] sm:$0xff]   ;;  %v9457_v10 = vld [vmem:[%s12545_s3 + $0xb8] sm:$0xff]  }
  0x18   :  { %7758 = vmatpush3.bf16.msra.mxu0 %v9429_v42  ;;  %7870 = vmatpush3.bf16.msra.mxu1 %v9443_v56 }
  0x19   :  { %7759 = vmatprep.subr.bf16.mxu0 %v9430_v43  ;;  %7871 = vmatprep.subr.bf16.mxu1 %v9444_v58 }
  0x1a   :  { %8898 = vmatmul.mubr.msk.bf16.gmra.mrb[8].mxu1 %vm158_vm1, %v9397_v13  ;;  %8862 = vmatmul.mubr.msk.bf16.gmra.mrb[8].mxu0 %vm158_vm1, %v9413_v19 }
  0x1b   :  { %8901 = vmatprep.mubr.msk.bf16.mxu1 %vm158_vm1, %v9398_v14  ;;  %8865 = vmatprep.mubr.msk.bf16.mxu0 %vm158_vm1, %v9414_v20 }
  0x1c   :  { %7760 = vmatpush3.bf16.msra.mxu0 %v9431_v48  ;;  %7872 = vmatpush3.bf16.msra.mxu1 %v9445_v60 }
  0x1d   :  { %7761 = vmatprep.subr.bf16.mxu0 %v9432_v51  ;;  %7873 = vmatprep.subr.bf16.mxu1 %v9448_v61 }
  0x20   :  { %7762 = vmatpush3.bf16.msra.mxu0 %v9433_v54  ;;  %7874 = vmatpush3.bf16.msra.mxu1 %v9449_v0 }
  0x21   :  { %7763 = vmatprep.subr.bf16.mxu0 %v9434_v55  ;;  %7875 = vmatprep.subr.bf16.mxu1 %v9450_v1 }
  0x22   :  { %8902 = vmatmul.mubr.msk.bf16.gmra.mrb[12].mxu1 %vm158_vm1, %v9399_v17  ;;  %8866 = vmatmul.mubr.msk.bf16.gmra.mrb[12].mxu0 %vm158_vm1, %v9415_v23 }
  0x23   :  { %8905 = vmatprep.mubr.msk.bf16.mxu1 %vm158_vm1, %v9400_v18  ;;  %8869 = vmatprep.mubr.msk.bf16.mxu0 %vm158_vm1, %v9416_v24 }
  0x24   :  { %7764 = vmatpush3.bf16.msra.mxu0 %v9435_v57  ;;  %7876 = vmatpush3.bf16.msra.mxu1 %v9451_v5 }
  0x25   :  { %7765 = vmatprep.subr.bf16.mxu0 %v9440_v59  ;;  %7877 = vmatprep.subr.bf16.mxu1 %v9453_v6 }
  0x28   :  { %7766 = vmatpush3.bf16.msra.mxu0 %v9442_v62  ;;  %7878 = vmatpush3.bf16.msra.mxu1 %v9455_v8 }
  0x29   :  { %7767 = vmatprep.subr.bf16.mxu0 %v9446_v63  ;;  %7879 = vmatprep.subr.bf16.mxu1 %v9456_v9 }
  0x2a   :  { %8906 = vmatmul.mubr.msk.bf16.gmra.mrb[16].mxu1 %vm158_vm1, %v9401_v21  ;;  %8870 = vmatmul.mubr.msk.bf16.gmra.mrb[16].mxu0 %vm158_vm1, %v9417_v27 }
  0x2b   :  { %8909 = vmatprep.mubr.msk.bf16.mxu1 %vm158_vm1, %v9402_v22  ;;  %8873 = vmatprep.mubr.msk.bf16.mxu0 %vm158_vm1, %v9418_v28 }
  0x2c   :  { %7768 = vmatpush3.bf16.msra.mxu0 %v9447_v3  ;;  %7880 = vmatpush3.bf16.msra.mxu1 %v9457_v10 }
  0x2d   :  { %7977 = vmatprep.subr.bf16.mxu0 %v9452_v4 }
  0x32   :  { %8910 = vmatmul.mubr.msk.bf16.gmra.mrb[20].mxu1 %vm158_vm1, %v9403_v25  ;;  %8874 = vmatmul.mubr.msk.bf16.gmra.mrb[20].mxu0 %vm158_vm1, %v9419_v31 }
  0x33   :  { %8913 = vmatprep.mubr.msk.bf16.mxu1 %vm158_vm1, %v9404_v26  ;;  %8877 = vmatprep.mubr.msk.bf16.mxu0 %vm158_vm1, %v9420_v32 }
  0x3a   :  { %8914 = vmatmul.mubr.msk.bf16.gmra.mrb[24].mxu1 %vm158_vm1, %v9405_v29  ;;  %8878 = vmatmul.mubr.msk.bf16.gmra.mrb[24].mxu0 %vm158_vm1, %v9421_v34 }
  0x3b   :  { %8917 = vmatprep.mubr.msk.bf16.mxu1 %vm158_vm1, %v9406_v30  ;;  %8881 = vmatprep.mubr.msk.bf16.mxu0 %vm158_vm1, %v9422_v35 }
  0x42   :  { %8918 = vmatmul.mubr.msk.bf16.gmra.mrb[28].mxu1 %vm158_vm1, %v9407_v33  ;;  %8882 = vmatmul.mubr.msk.bf16.gmra.mrb[28].mxu0 %vm158_vm1, %v9423_v36 }
  0x73   :  { %v9925_v44 = vpop.permute.xlu0 %888 }
  0x74   :  { %12604 = vst [vmem:[#allocation5_spill] sm:$0xff] %v9925_v44  ;;  %v9929_v45 = vsel %vm954_vm2, 0, %v9925_v44 }
  0x75   :  { %v9936_v47 = vcombine.low %v9929_v45, %v9929_v45 }
  0x77   :  { %1825 = vmatprep.mubr.bf16.mxu0 %v9936_v47 }
  0x78   :  { %1826 = vmatmul.mubr.bf16.vlgmr.msra.gmra.mrb[32].mxu0 %v9936_v47 }
  0x79   :  { %7978 = vmatpush3.bf16.msra.mxu0 %v9454_v7 }
  0xdd   :  { %v8891_v11 = vpop.f32.mrb[0].mxu1 }
  0xde   :  { %v568_v12 = vpop.f32.mrb[1].mxu1 }
  0xdf   :  { %14 = vsyncpa [#allocation3], 0  ;;  %v7621_v13 = vpack.c.bf16 %v568_v12, %v568_v12  ;;  %v8892_v14 = vpop.f32.mrb[2].mxu1  ;;  %v9458_v15 = vld [vmem:[%s12545_s3 + $0x148] sm:$0xff]   ;;  %v7623_v20 = vpack.c.bf16 %v8891_v11, %v8891_v11  ;;  %v10028_v27 = vpop.f32.mrb[0].mxu0  ;;  %v9460_v34 = vld [vmem:[%s12545_s3 + $0x150] sm:$0xff]  }
  0xe0   :  { %v571_v16 = vpop.f32.mrb[3].mxu1  ;;  %v9459_v17 = vld [vmem:[%s12545_s3 + $0x108] sm:$0xff]   ;;  %7979 = vmatprep.subr.bf16.mxu0 %v9458_v15  ;;  %v7624_v19 = vpack.c.bf16 %v8892_v14, %v8892_v14  ;;  %12605 = vst [vmem:[#allocation6_spill] sm:$0xff] %v10028_v27  ;;  %v10030_v28 = vpop.f32.mrb[1].mxu0  ;;  %v9461_v39 = vld [vmem:[%s12545_s3 + $0x110] sm:$0xff]   ;;  %v9462_v3 = vld [vmem:[%s12545_s3 + $0x158] sm:$0xff]  }
  0xe1   :  { %890 = vrot.lane.b32.xlu0 %v7621_v13, %s9713_s15  ;;  %v7622_v18 = vpack.c.bf16 %v571_v16, %v571_v16  ;;  %7980 = vmatpush3.bf16.msra.mxu0 %v9459_v17  ;;  %12606 = vst [vmem:[#allocation7_spill] sm:$0xff] %v10030_v28  ;;  %v10034_v31 = vpop.f32.mrb[2].mxu0  ;;  %v9463_v9 = vld [vmem:[%s12545_s3 + $0x118] sm:$0xff]   ;;  %vm9715_vm3 = vmmov 0   ;;  %s9716_s10 = smov [#allocation2]  }
  0xe2   :  { %12607 = vst [vmem:[#allocation8_spill] sm:$0xff] %v10034_v31  ;;  %v10036_v32 = vpop.f32.mrb[3].mxu0  ;;  %7981 = vmatprep.subr.bf16.mxu0 %v9460_v34  ;;  %s7004_s11 = sshll.u32 %s9716_s10, 4  ;;  %s7005_s11 = int_to_ptr.vmem [resolvable:$true] %s7004_s11 }
  0xe3   :  { %892 = vrot.lane.b32.xlu1 %v7622_v18, %s9713_s15  ;;  %12608 = vst [vmem:[#allocation9_spill] sm:$0xff] %v10036_v32  ;;  %p9693_p1 = scmp.lt.s32.totalorder %s7005_s11, %s7005_s11 }
  0xe5   :  { %896 = vrot.lane.b32.xlu0 %v7624_v19, %s9713_s15  ;;  %v8895_v21 = vpop.f32.mrb[4].mxu1  ;;  %v10046_v41 = vpop.f32.mrb[4].mxu0  ;;  %7982 = vmatpush3.bf16.msra.mxu0 %v9461_v39 }
  0xe6   :  { %v584_v22 = vpop.f32.mrb[5].mxu1  ;;  %v7627_v29 = vpack.c.bf16 %v8895_v21, %v8895_v21  ;;  %v10048_v42 = vpop.f32.mrb[5].mxu0  ;;  %7983 = vmatprep.subr.bf16.mxu0 %v9462_v3 }
  0xe7   :  { %v7625_v23 = vpack.c.bf16 %v584_v22, %v584_v22  ;;  %894 = vrot.lane.b32.xlu1 %v7623_v20, %s9713_s15  ;;  %v8896_v24 = vpop.f32.mrb[6].mxu1  ;;  %v10052_v48 = vpop.f32.mrb[6].mxu0 }
  0xe8   :  { %v587_v25 = vpop.f32.mrb[7].mxu1  ;;  %v7628_v30 = vpack.c.bf16 %v8896_v24, %v8896_v24  ;;  %v10056_v50 = vpop.f32.mrb[7].mxu0 }
  0xe9   :  { %v7626_v26 = vpack.c.bf16 %v587_v25, %v587_v25  ;;  %7984 = vmatpush3.bf16.msra.mxu0 %v9463_v9 }
  0xeb   :  { %898 = vrot.lane.b32.xlu1 %v7625_v23, %s9713_s15  ;;  %900 = vrot.lane.b32.xlu0 %v7626_v26, %s9713_s15 }
  0xed   :  { %v8899_v33 = vpop.f32.mrb[8].mxu1  ;;  %v10062_v58 = vpop.f32.mrb[8].mxu0 }
  0xee   :  { %v600_v35 = vpop.f32.mrb[9].mxu1  ;;  %v7631_v43 = vpack.c.bf16 %v8899_v33, %v8899_v33  ;;  %v10064_v59 = vpop.f32.mrb[9].mxu0 }
  0xef   :  { %v7629_v36 = vpack.c.bf16 %v600_v35, %v600_v35  ;;  %902 = vrot.lane.b32.xlu1 %v7627_v29, %s9713_s15  ;;  %904 = vrot.lane.b32.xlu0 %v7628_v30, %s9713_s15  ;;  %v8900_v37 = vpop.f32.mrb[10].mxu1  ;;  %v10068_v62 = vpop.f32.mrb[10].mxu0 }
  0xf0   :  { %v603_v38 = vpop.f32.mrb[11].mxu1  ;;  %v7632_v46 = vpack.c.bf16 %v8900_v37, %v8900_v37  ;;  %12609 = vst [vmem:[#allocation10_spill] sm:$0xff] %v10068_v62  ;;  %v10070_v63 = vpop.f32.mrb[11].mxu0 }
  0xf1   :  { %v7630_v40 = vpack.c.bf16 %v603_v38, %v603_v38 }
  0xf3   :  { %906 = vrot.lane.b32.xlu1 %v7629_v36, %s9713_s15  ;;  %908 = vrot.lane.b32.xlu0 %v7630_v40, %s9713_s15  ;;  %v9464_v36 = vld [vmem:[%s12545_s3 + $0x160] sm:$0xff]  }
  0xf4   :  { %7985 = vmatprep.subr.bf16.mxu0 %v9464_v36  ;;  %v9468_v36 = vld [vmem:[%s12545_s3 + $0x170] sm:$0xff]  }
  0xf5   :  { %v8903_v51 = vpop.f32.mrb[12].mxu1  ;;  %v10084_v11 = vpop.f32.mrb[12].mxu0 }
  0xf6   :  { %v616_v53 = vpop.f32.mrb[13].mxu1  ;;  %v7635_v60 = vpack.c.bf16 %v8903_v51, %v8903_v51  ;;  %12610 = vst [vmem:[#allocation11_spill] sm:$0xff] %v10084_v11  ;;  %v10086_v12 = vpop.f32.mrb[13].mxu0 }
  0xf7   :  { %v7633_v54 = vpack.c.bf16 %v616_v53, %v616_v53  ;;  %912 = vrot.lane.b32.xlu0 %v7632_v46, %s9713_s15  ;;  %v8904_v55 = vpop.f32.mrb[14].mxu1  ;;  %910 = vrot.lane.b32.xlu1 %v7631_v43, %s9713_s15  ;;  %12611 = vst [vmem:[#allocation12_spill] sm:$0xff] %v10086_v12  ;;  %v10090_v15 = vpop.f32.mrb[14].mxu0  ;;  %v9465_v43 = vld [vmem:[%s12545_s3 + $0x120] sm:$0xff]  }
  0xf8   :  { %v619_v56 = vpop.f32.mrb[15].mxu1  ;;  %v7636_v61 = vpack.c.bf16 %v8904_v55, %v8904_v55  ;;  %12612 = vst [vmem:[#allocation13_spill] sm:$0xff] %v10090_v15  ;;  %v10092_v16 = vpop.f32.mrb[15].mxu0  ;;  %7986 = vmatpush3.bf16.msra.mxu0 %v9465_v43  ;;  %v9474_v43 = vld [vmem:[%s12545_s3 + $0x178] sm:$0xff]   ;;  %v7604_v19 = vpack.c.bf16 %v10090_v15, %v10090_v15 }
  0xf9   :  { %v7634_v57 = vpack.c.bf16 %v619_v56, %v619_v56  ;;  %12613 = vst [vmem:[#allocation14_spill] sm:$0xff] %v10092_v16 }
  0xfb   :  { %916 = vrot.lane.b32.xlu0 %v7634_v57, %s9713_s15  ;;  %914 = vrot.lane.b32.xlu1 %v7633_v54, %s9713_s15 }
  0xfd   :  { %v8907_v1 = vpop.f32.mrb[16].mxu1  ;;  %v10100_v25 = vpop.f32.mrb[16].mxu0 }
  0xfe   :  { %v632_v5 = vpop.f32.mrb[17].mxu1  ;;  %v7639_v13 = vpack.c.bf16 %v8907_v1, %v8907_v1  ;;  %12614 = vst [vmem:[#allocation15_spill] sm:$0xff] %v10100_v25  ;;  %v10102_v26 = vpop.f32.mrb[17].mxu0 }
  0xff   :  { %v7637_v6 = vpack.c.bf16 %v632_v5, %v632_v5  ;;  %920 = vrot.lane.b32.xlu0 %v7636_v61, %s9713_s15  ;;  %v8908_v7 = vpop.f32.mrb[18].mxu1  ;;  %918 = vrot.lane.b32.xlu1 %v7635_v60, %s9713_s15  ;;  %12615 = vst [vmem:[#allocation16_spill] sm:$0xff] %v10102_v26  ;;  %v10106_v33 = vpop.f32.mrb[18].mxu0 }
 0x100   :  { %v635_v8 = vpop.f32.mrb[19].mxu1  ;;  %v7640_v14 = vpack.c.bf16 %v8908_v7, %v8908_v7  ;;  %12616 = vst [vmem:[#allocation17_spill] sm:$0xff] %v10106_v33  ;;  %v10108_v34 = vpop.f32.mrb[19].mxu0 }
 0x101   :  { %v7638_v10 = vpack.c.bf16 %v635_v8, %v635_v8  ;;  %12617 = vst [vmem:[#allocation18_spill] sm:$0xff] %v10108_v34 }
 0x103   :  { %924 = vrot.lane.b32.xlu0 %v7638_v10, %s9713_s15  ;;  %922 = vrot.lane.b32.xlu1 %v7637_v6, %s9713_s15  ;;  %v9466_v10 = vld [vmem:[%s12545_s3 + $0x168] sm:$0xff]  }
 0x104   :  { %7987 = vmatprep.subr.bf16.mxu0 %v9466_v10 }
 0x105   :  { %v8911_v18 = vpop.f32.mrb[20].mxu1  ;;  %v10118_v51 = vpop.f32.mrb[20].mxu0 }
 0x106   :  { %v648_v20 = vpop.f32.mrb[21].mxu1  ;;  %v7643_v29 = vpack.c.bf16 %v8911_v18, %v8911_v18  ;;  %12618 = vst [vmem:[#allocation19_spill] sm:$0xff] %v10118_v51  ;;  %v10120_v53 = vpop.f32.mrb[21].mxu0 }
 0x107   :  { %v7641_v21 = vpack.c.bf16 %v648_v20, %v648_v20  ;;  %928 = vrot.lane.b32.xlu0 %v7640_v14, %s9713_s15  ;;  %v8912_v22 = vpop.f32.mrb[22].mxu1  ;;  %926 = vrot.lane.b32.xlu1 %v7639_v13, %s9713_s15  ;;  %12619 = vst [vmem:[#allocation20_spill] sm:$0xff] %v10120_v53  ;;  %v10128_v60 = vpop.f32.mrb[22].mxu0 }
 0x108   :  { %v651_v23 = vpop.f32.mrb[23].mxu1  ;;  %v7644_v30 = vpack.c.bf16 %v8912_v22, %v8912_v22  ;;  %12620 = vst [vmem:[#allocation21_spill] sm:$0xff] %v10128_v60  ;;  %v10130_v61 = vpop.f32.mrb[23].mxu0  ;;  %v9467_v22 = vld [vmem:[%s12545_s3 + $0x128] sm:$0xff]  }
 0x109   :  { %v7642_v24 = vpack.c.bf16 %v651_v23, %v651_v23  ;;  %12621 = vst [vmem:[#allocation22_spill] sm:$0xff] %v10130_v61  ;;  %7988 = vmatpush3.bf16.msra.mxu0 %v9467_v22 }
 0x10a   :  { %7989 = vmatprep.subr.bf16.mxu0 %v9468_v36  ;;  %v9472_v36 = vld [vmem:[%s12545_s3 + $0x1c8] sm:$0xff]  }
 0x10b   :  { %932 = vrot.lane.b32.xlu0 %v7642_v24, %s9713_s15  ;;  %930 = vrot.lane.b32.xlu1 %v7641_v21, %s9713_s15 }
 0x10d   :  { %v8915_v35 = vpop.f32.mrb[24].mxu1  ;;  %v10134_v9 = vpop.f32.mrb[24].mxu0 }
 0x10e   :  { %v664_v37 = vpop.f32.mrb[25].mxu1  ;;  %v7647_v56 = vpack.c.bf16 %v8915_v35, %v8915_v35  ;;  %12622 = vst [vmem:[#allocation23_spill] sm:$0xff] %v10134_v9  ;;  %v10139_v13 = vpop.f32.mrb[25].mxu0 }
 0x10f   :  { %v7645_v38 = vpack.c.bf16 %v664_v37, %v664_v37  ;;  %936 = vrot.lane.b32.xlu0 %v7644_v30, %s9713_s15  ;;  %v8916_v39 = vpop.f32.mrb[26].mxu1  ;;  %934 = vrot.lane.b32.xlu1 %v7643_v29, %s9713_s15  ;;  %12623 = vst [vmem:[#allocation24_spill] sm:$0xff] %v10139_v13  ;;  %v10143_v20 = vpop.f32.mrb[26].mxu0  ;;  %v9469_v37 = vld [vmem:[%s12545_s3 + $0x130] sm:$0xff]   ;;  %v7600_v29 = vpack.c.bf16 %v10068_v62, %v10068_v62 }
 0x110   :  { %v667_v40 = vpop.f32.mrb[27].mxu1  ;;  %v7648_v57 = vpack.c.bf16 %v8916_v39, %v8916_v39  ;;  %12624 = vst [vmem:[#allocation25_spill] sm:$0xff] %v10143_v20  ;;  %v10145_v21 = vpop.f32.mrb[27].mxu0  ;;  %7990 = vmatpush3.bf16.msra.mxu0 %v9469_v37 }
 0x111   :  { %v7646_v46 = vpack.c.bf16 %v667_v40, %v667_v40  ;;  %12625 = vst [vmem:[#allocation26_spill] sm:$0xff] %v10145_v21  ;;  %v9470_v40 = vld [vmem:[%s12545_s3 + $0x1c0] sm:$0xff]   ;;  %7991 = vmatprep.subr.bf16.mxu0 %v9474_v43  ;;  %v7591_v43 = vpack.c.bf16 %v10028_v27, %v10028_v27 }
 0x112   :  { %8089 = vmatprep.subr.bf16.mxu1 %v9470_v40 }
 0x113   :  { %940 = vrot.lane.b32.xlu0 %v7646_v46, %s9713_s15  ;;  %938 = vrot.lane.b32.xlu1 %v7645_v38, %s9713_s15 }
 0x115   :  { %v8919_v1 = vpop.f32.mrb[28].mxu1  ;;  %v10152_v23 = vpop.f32.mrb[28].mxu0 }
 0x116   :  { %v680_v3 = vpop.f32.mrb[29].mxu1  ;;  %v7651_v14 = vpack.c.bf16 %v8919_v1, %v8919_v1  ;;  %12626 = vst [vmem:[#allocation27_spill] sm:$0xff] %v10152_v23  ;;  %v10154_v24 = vpop.f32.mrb[29].mxu0 }
 0x117   :  { %v7649_v5 = vpack.c.bf16 %v680_v3, %v680_v3  ;;  %944 = vrot.lane.b32.xlu0 %v7648_v57, %s9713_s15  ;;  %v8920_v6 = vpop.f32.mrb[30].mxu1  ;;  %942 = vrot.lane.b32.xlu1 %v7647_v56, %s9713_s15  ;;  %12627 = vst [vmem:[#allocation28_spill] sm:$0xff] %v10154_v24  ;;  %v10160_v35 = vpop.f32.mrb[30].mxu0  ;;  %v9475_v56 = vld [vmem:[%s12545_s3 + $0x138] sm:$0xff]   ;;  %v10190_v3 = vld [vmem:[%s12545_s3 + $0x200] sm:$0xff]  }
 0x118   :  { %v683_v7 = vpop.f32.mrb[31].mxu1  ;;  %v7652_v18 = vpack.c.bf16 %v8920_v6, %v8920_v6  ;;  %12628 = vst [vmem:[#allocation29_spill] sm:$0xff] %v10160_v35  ;;  %v10178_v46 = vpop.f32.mrb[31].mxu0  ;;  %7992 = vmatpush3.bf16.msra.mxu0 %v9475_v56  ;;  %v7592_v56 = vpack.c.bf16 %v10034_v31, %v10034_v31 }
 0x119   :  { %v7650_v8 = vpack.c.bf16 %v683_v7, %v683_v7  ;;  %12629 = vst [vmem:[#allocation30_spill] sm:$0xff] %v10178_v46  ;;  %8921 = vmatprep.subr.bf16.mxu0 %v10190_v3  ;;  %v7590_v7 = vpack.c.bf16 %v10036_v32, %v10036_v32 }
 0x11b   :  { %948 = vrot.lane.b32.xlu0 %v7650_v8, %s9713_s15  ;;  %946 = vrot.lane.b32.xlu1 %v7649_v5, %s9713_s15  ;;  %v7589_v5 = vpack.c.bf16 %v10030_v28, %v10030_v28 }
 0x11f   :  { %952 = vrot.lane.b32.xlu0 %v7652_v18, %s9713_s15  ;;  %950 = vrot.lane.b32.xlu1 %v7651_v14, %s9713_s15  ;;  %v9471_v18 = vld [vmem:[%s12545_s3 + $0x180] sm:$0xff]  }
 0x153   :  { %v891_v6 = vpop.permute.xlu0 %890 }
 0x154   :  { %v960_v8 = vsel %vm954_vm2, %v7589_v5, %v891_v6 }
 0x155   :  { %v7143_v10 = vcombine.low %v9929_v45, %v960_v8  ;;  %v893_v14 = vpop.permute.xlu1 %892 }
 0x156   :  { %v963_v22 = vsel %vm954_vm2, %v7590_v7, %v893_v14  ;;  %v9473_v14 = vld [vmem:[%s12545_s3 + $0x188] sm:$0xff]  }
 0x157   :  { %v10206_v37 = vcombine.low %v960_v8, %v963_v22  ;;  %v897_v40 = vpop.permute.xlu0 %896  ;;  %1833 = vmatprep.mubr.bf16.mxu0 %v7143_v10  ;;  %1986 = vmatprep.mubr.bf16.mxu1 %v7143_v10  ;;  %v7593_v8 = vpack.c.bf16 %v10048_v42, %v10048_v42  ;;  %v7594_v10 = vpack.c.bf16 %v10056_v50, %v10056_v50 }
 0x158   :  { %1834 = vmatmul.mubr.bf16.gmra.mrb[36].mxu0 %v9936_v47  ;;  %1987 = vmatmul.mubr.bf16.vlgmr.msra.gmra.mrb[32].mxu1 %v9936_v47  ;;  %v969_v6 = vsel %vm954_vm2, %v7592_v56, %v897_v40  ;;  %v7595_v56 = vpack.c.bf16 %v10046_v41, %v10046_v41 }
 0x159   :  { %v895_v5 = vpop.permute.xlu1 %894  ;;  %8090 = vmatpush3.bf16.msra.mxu1 %v9471_v18  ;;  %v9476_v18 = vld [vmem:[%s12545_s3 + $0x1d0] sm:$0xff]  }
 0x15a   :  { %v966_v7 = vsel %vm954_vm2, %v7591_v43, %v895_v5  ;;  %8091 = vmatprep.subr.bf16.mxu1 %v9472_v36  ;;  %v7596_v5 = vpack.c.bf16 %v10052_v48, %v10052_v48 }
 0x15b   :  { %v10223_v1 = vcombine.low %v963_v22, %v966_v7  ;;  %v10225_v2 = vcombine.low %v966_v7, %v969_v6  ;;  %v9477_v7 = vld [vmem:[%s12545_s3 + $0x190] sm:$0xff]  }
 0x15d   :  { %v899_v40 = vpop.permute.xlu1 %898  ;;  %v901_v43 = vpop.permute.xlu0 %900  ;;  %1841 = vmatprep.mubr.bf16.mxu0 %v10223_v1  ;;  %1994 = vmatprep.mubr.bf16.mxu1 %v10223_v1 }
 0x15e   :  { %v972_v36 = vsel %vm954_vm2, %v7593_v8, %v899_v40  ;;  %v975_v22 = vsel %vm954_vm2, %v7594_v10, %v901_v43  ;;  %8092 = vmatpush3.bf16.msra.mxu1 %v9473_v14  ;;  %v9478_v8 = vld [vmem:[%s12545_s3 + $0x1d8] sm:$0xff]   ;;  %v7598_v43 = vpack.c.bf16 %v10070_v63, %v10070_v63 }
 0x15f   :  { %v10241_v57 = vcombine.low %v969_v6, %v972_v36  ;;  %v10243_v39 = vcombine.low %v972_v36, %v975_v22  ;;  %8093 = vmatprep.subr.bf16.mxu1 %v9476_v18  ;;  %v7597_v18 = vpack.c.bf16 %v10064_v59, %v10064_v59  ;;  %v9479_v36 = vld [vmem:[%s12545_s3 + $0x198] sm:$0xff]  }
 0x160   :  { %1842 = vmatmul.mubr.bf16.gmra.mrb[40].mxu0 %v10206_v37  ;;  %1995 = vmatmul.mubr.bf16.gmra.mrb[36].mxu1 %v10206_v37 }
 0x161   :  { %v903_v10 = vpop.permute.xlu1 %902  ;;  %v905_v40 = vpop.permute.xlu0 %904  ;;  %1849 = vmatprep.mubr.bf16.mxu0 %v10241_v57  ;;  %2002 = vmatprep.mubr.bf16.mxu1 %v10241_v57 }
 0x162   :  { %v978_v6 = vsel %vm954_vm2, %v7595_v56, %v903_v10  ;;  %v981_v14 = vsel %vm954_vm2, %v7596_v5, %v905_v40  ;;  %8094 = vmatpush3.bf16.msra.mxu1 %v9477_v7  ;;  %v9480_v56 = vld [vmem:[%s12545_s3 + $0x1e0] sm:$0xff]   ;;  %v7599_v7 = vpack.c.bf16 %v10062_v58, %v10062_v58 }
 0x163   :  { %v10261_v38 = vcombine.low %v975_v22, %v978_v6  ;;  %v10263_v30 = vcombine.low %v978_v6, %v981_v14  ;;  %8095 = vmatprep.subr.bf16.mxu1 %v9478_v8  ;;  %v9481_v8 = vld [vmem:[%s12545_s3 + $0x1a0] sm:$0xff]  }
 0x165   :  { %v907_v5 = vpop.permute.xlu1 %906  ;;  %v909_v10 = vpop.permute.xlu0 %908 }
 0x166   :  { %v984_v40 = vsel %vm954_vm2, %v7597_v18, %v907_v5  ;;  %v987_v22 = vsel %vm954_vm2, %v7598_v43, %v909_v10  ;;  %8096 = vmatpush3.bf16.msra.mxu1 %v9479_v36  ;;  %v9482_v18 = vld [vmem:[%s12545_s3 + $0x1e8] sm:$0xff]   ;;  %v7602_v10 = vpack.c.bf16 %v10092_v16, %v10092_v16 }
 0x167   :  { %v10277_v6 = vcombine.low %v981_v14, %v984_v40  ;;  %v10279_v55 = vcombine.low %v984_v40, %v987_v22  ;;  %8097 = vmatprep.subr.bf16.mxu1 %v9480_v56  ;;  %v7601_v56 = vpack.c.bf16 %v10086_v12, %v10086_v12  ;;  %v9483_v40 = vld [vmem:[%s12545_s3 + $0x1a8] sm:$0xff]  }
 0x168   :  { %1850 = vmatmul.mubr.bf16.gmra.mrb[44].mxu0 %v10225_v2  ;;  %2003 = vmatmul.mubr.bf16.gmra.mrb[40].mxu1 %v10225_v2 }
 0x169   :  { %v913_v5 = vpop.permute.xlu0 %912  ;;  %1857 = vmatprep.mubr.bf16.mxu0 %v10261_v38  ;;  %2010 = vmatprep.mubr.bf16.mxu1 %v10261_v38  ;;  %v911_v43 = vpop.permute.xlu1 %910 }
 0x16a   :  { %v990_v14 = vsel %vm954_vm2, %v7599_v7, %v911_v43  ;;  %v993_v36 = vsel %vm954_vm2, %v7600_v29, %v913_v5  ;;  %8098 = vmatpush3.bf16.msra.mxu1 %v9481_v8  ;;  %v9485_v29 = vld [vmem:[%s12545_s3 + $0x1f0] sm:$0xff]   ;;  %v7603_v8 = vpack.c.bf16 %v10084_v11, %v10084_v11 }
 0x16b   :  { %v10297_v54 = vcombine.low %v990_v14, %v993_v36  ;;  %v10299_v17 = vcombine.low %v987_v22, %v990_v14  ;;  %8099 = vmatprep.subr.bf16.mxu1 %v9482_v18  ;;  %v9486_v22 = vld [vmem:[%s12545_s3 + $0x1b0] sm:$0xff]  }
 0x16d   :  { %v917_v7 = vpop.permute.xlu0 %916  ;;  %v915_v5 = vpop.permute.xlu1 %914 }
 0x16e   :  { %v996_v43 = vsel %vm954_vm2, %v7601_v56, %v915_v5  ;;  %v999_v0 = vsel %vm954_vm2, %v7602_v10, %v917_v7  ;;  %8100 = vmatpush3.bf16.msra.mxu1 %v9483_v40  ;;  %v9487_v56 = vld [vmem:[%s12545_s3 + $0x1f8] sm:$0xff]   ;;  %v7606_v7 = vpack.c.bf16 %v10108_v34, %v10108_v34 }
 0x16f   :  { %v10313_v18 = vcombine.low %v993_v36, %v996_v43  ;;  %v10315_v14 = vcombine.low %v996_v43, %v999_v0  ;;  %8101 = vmatprep.subr.bf16.mxu1 %v9485_v29  ;;  %v7605_v29 = vpack.c.bf16 %v10102_v26, %v10102_v26  ;;  %v9488_v43 = vld [vmem:[%s12545_s3 + $0x1b8] sm:$0xff]  }
 0x170   :  { %1858 = vmatmul.mubr.bf16.gmra.mrb[48].mxu0 %v10243_v39  ;;  %2011 = vmatmul.mubr.bf16.gmra.mrb[44].mxu1 %v10243_v39 }
 0x171   :  { %v921_v5 = vpop.permute.xlu0 %920  ;;  %1865 = vmatprep.mubr.bf16.mxu0 %v10277_v6  ;;  %2018 = vmatprep.mubr.bf16.mxu1 %v10277_v6  ;;  %v919_v10 = vpop.permute.xlu1 %918 }
 0x172   :  { %v1002_v36 = vsel %vm954_vm2, %v7603_v8, %v919_v10  ;;  %v1005_v40 = vsel %vm954_vm2, %v7604_v19, %v921_v5  ;;  %8102 = vmatpush3.bf16.msra.mxu1 %v9486_v22  ;;  %v7607_v5 = vpack.c.bf16 %v10100_v25, %v10100_v25  ;;  %v7608_v10 = vpack.c.bf16 %v10106_v33, %v10106_v33 }
 0x173   :  { %v10333_v4 = vcombine.low %v1002_v36, %v1005_v40  ;;  %v10335_v49 = vcombine.low %v999_v0, %v1002_v36  ;;  %8103 = vmatprep.subr.bf16.mxu1 %v9487_v56 }
 0x175   :  { %v925_v52 = vpop.permute.xlu0 %924  ;;  %v923_v8 = vpop.permute.xlu1 %922 }
 0x176   :  { %v1008_v19 = vsel %vm954_vm2, %v7605_v29, %v923_v8  ;;  %v1011_v22 = vsel %vm954_vm2, %v7606_v7, %v925_v52  ;;  %8104 = vmatpush3.bf16.msra.mxu1 %v9488_v43  ;;  %v7609_v52 = vpack.c.bf16 %v10120_v53, %v10120_v53 }
 0x177   :  { %v10343_v44 = vcombine.low %v1005_v40, %v1008_v19  ;;  %v10345_v31 = vcombine.low %v1008_v19, %v1011_v22  ;;  %v7610_v40 = vpack.c.bf16 %v10130_v61, %v10130_v61 }
 0x178   :  { %1866 = vmatmul.mubr.bf16.gmra.mrb[52].mxu0 %v10263_v30  ;;  %2019 = vmatmul.mubr.bf16.gmra.mrb[48].mxu1 %v10263_v30 }
 0x179   :  { %v929_v0 = vpop.permute.xlu0 %928  ;;  %1873 = vmatprep.mubr.bf16.mxu0 %v10299_v17  ;;  %2026 = vmatprep.mubr.bf16.mxu1 %v10299_v17  ;;  %v927_v56 = vpop.permute.xlu1 %926 }
 0x17a   :  { %v1014_v36 = vsel %vm954_vm2, %v7607_v5, %v927_v56  ;;  %v1017_v29 = vsel %vm954_vm2, %v7608_v10, %v929_v0  ;;  %v7611_v5 = vpack.c.bf16 %v10118_v51, %v10118_v51  ;;  %v7612_v10 = vpack.c.bf16 %v10128_v60, %v10128_v60 }
 0x17b   :  { %v10357_v7 = vcombine.low %v1011_v22, %v1014_v36  ;;  %v10359_v43 = vcombine.low %v1014_v36, %v1017_v29 }
 0x17d   :  { %v933_v8 = vpop.permute.xlu0 %932  ;;  %v931_v19 = vpop.permute.xlu1 %930 }
 0x17e   :  { %v1020_v27 = vsel %vm954_vm2, %v7609_v52, %v931_v19  ;;  %v1023_v32 = vsel %vm954_vm2, %v7610_v40, %v933_v8 }
 0x17f   :  { %v10367_v0 = vcombine.low %v1017_v29, %v1020_v27  ;;  %v10369_v56 = vcombine.low %v1020_v27, %v1023_v32  ;;  %v7613_v29 = vpack.c.bf16 %v10139_v13, %v10139_v13  ;;  %v7614_v27 = vpack.c.bf16 %v10145_v21, %v10145_v21 }
 0x180   :  { %1874 = vmatmul.mubr.bf16.gmra.mrb[56].mxu0 %v10279_v55  ;;  %2027 = vmatmul.mubr.bf16.gmra.mrb[52].mxu1 %v10279_v55  ;;  %v7620_v13 = vpack.c.bf16 %v10160_v35, %v10160_v35 }
 0x181   :  { %v937_v22 = vpop.permute.xlu0 %936  ;;  %1881 = vmatprep.mubr.bf16.mxu0 %v10313_v18  ;;  %2034 = vmatprep.mubr.bf16.mxu1 %v10313_v18  ;;  %v935_v36 = vpop.permute.xlu1 %934 }
 0x182   :  { %v1026_v52 = vsel %vm954_vm2, %v7611_v5, %v935_v36  ;;  %v1029_v40 = vsel %vm954_vm2, %v7612_v10, %v937_v22  ;;  %v7615_v5 = vpack.c.bf16 %v10134_v9, %v10134_v9  ;;  %v7616_v10 = vpack.c.bf16 %v10143_v20, %v10143_v20 }
 0x183   :  { %v10381_v8 = vcombine.low %v1023_v32, %v1026_v52  ;;  %v10383_v19 = vcombine.low %v1026_v52, %v1029_v40 }
 0x185   :  { %v941_v28 = vpop.permute.xlu0 %940  ;;  %v939_v51 = vpop.permute.xlu1 %938 }
 0x186   :  { %v1032_v60 = vsel %vm954_vm2, %v7613_v29, %v939_v51  ;;  %v1035_v53 = vsel %vm954_vm2, %v7614_v27, %v941_v28 }
 0x187   :  { %v10391_v22 = vcombine.low %v1029_v40, %v1032_v60  ;;  %v10393_v36 = vcombine.low %v1032_v60, %v1035_v53  ;;  %v7617_v40 = vpack.c.bf16 %v10154_v24, %v10154_v24  ;;  %v7618_v60 = vpack.c.bf16 %v10178_v46, %v10178_v46 }
 0x188   :  { %1882 = vmatmul.mubr.bf16.gmra.mrb[60].mxu0 %v10297_v54  ;;  %2035 = vmatmul.mubr.bf16.gmra.mrb[56].mxu1 %v10297_v54 }
 0x189   :  { %v945_v32 = vpop.permute.xlu0 %944  ;;  %1889 = vmatprep.mubr.bf16.mxu0 %v10335_v49  ;;  %2042 = vmatprep.mubr.bf16.mxu1 %v10335_v49  ;;  %v943_v28 = vpop.permute.xlu1 %942 }
 0x18a   :  { %v1038_v51 = vsel %vm954_vm2, %v7615_v5, %v943_v28  ;;  %v1041_v52 = vsel %vm954_vm2, %v7616_v10, %v945_v32  ;;  %v7619_v5 = vpack.c.bf16 %v10152_v23, %v10152_v23 }
 0x18b   :  { %v10405_v29 = vcombine.low %v1035_v53, %v1038_v51  ;;  %v10407_v27 = vcombine.low %v1038_v51, %v1041_v52 }
 0x18d   :  { %v949_v9 = vpop.permute.xlu0 %948  ;;  %v947_v20 = vpop.permute.xlu1 %946 }
 0x18e   :  { %v1044_v21 = vsel %vm954_vm2, %v7617_v40, %v947_v20  ;;  %v1047_v10 = vsel %vm954_vm2, %v7618_v60, %v949_v9 }
 0x18f   :  { %v10415_v32 = vcombine.low %v1041_v52, %v1044_v21  ;;  %v10417_v28 = vcombine.low %v1044_v21, %v1047_v10  ;;  %v7769_v52 = vpop.f32.mrb[32].mxu0 }
 0x190   :  { %1890 = vmatmul.mubr.bf16.gmra.mrb[64].mxu0 %v10315_v14  ;;  %2043 = vmatmul.mubr.bf16.gmra.mrb[60].mxu1 %v10315_v14  ;;  %v7770_v60 = vpop.f32.mrb[33].mxu0 }
 0x191   :  { %v953_v53 = vpop.permute.xlu0 %952  ;;  %1897 = vmatprep.mubr.bf16.mxu0 %v10343_v44  ;;  %2050 = vmatprep.mubr.bf16.mxu1 %v10343_v44  ;;  %v951_v51 = vpop.permute.xlu1 %950  ;;  %v10436_v23 = vadd.f32 %v7770_v60, %v7769_v52  ;;  %v9496_v52 = vld [vmem:[%s12546_s4 + $0x50] sm:$0xff]   ;;  %v9499_v60 = vld [vmem:[%s12546_s4 + $0x18] sm:$0xff]  }
 0x192   :  { %v10424_v20 = vsel %vm954_vm2, %v7620_v13, %v953_v53  ;;  %v1050_v40 = vsel %vm954_vm2, %v7619_v5, %v951_v51  ;;  %v7772_v13 = vpop.f32.mrb[34].mxu0  ;;  %v9492_v53 = vld [vmem:[%s12546_s4 + $0x40] sm:$0xff]   ;;  %v9489_v51 = vld [vmem:[%s12545_s3 + $0x208] sm:$0xff]  }
 0x193   :  { %v10427_v9 = vcombine.low %v1047_v10, %v1050_v40  ;;  %v10430_v21 = vcombine.low %v1050_v40, %v10424_v20  ;;  %v7773_v5 = vpop.f32.mrb[35].mxu0  ;;  %8221 = vmatprep.subr.bf16.mxu1 %v9492_v53  ;;  %v9490_v40 = vld [vmem:[%s12545_s3 + $0x210] sm:$0xff]  }
 0x194   :  { %v10442_v10 = vadd.f32 %v7773_v5, %v7772_v13  ;;  %v9500_v13 = vld [vmem:[%s12546_s4 + $0x60] sm:$0xff]   ;;  %v9504_v53 = vld [vmem:[%s12546_s4 + $0x70] sm:$0xff]  }
 0x195   :  { %v9501_v5 = vld [vmem:[%s12546_s4 + $0x20] sm:$0xff]  }
 0x198   :  { %1898 = vmatmul.mubr.bf16.gmra.mrb[68].mxu0 %v10333_v4  ;;  %2051 = vmatmul.mubr.bf16.gmra.mrb[64].mxu1 %v10333_v4 }
 0x199   :  { %1905 = vmatprep.mubr.bf16.mxu0 %v10357_v7  ;;  %2058 = vmatprep.mubr.bf16.mxu1 %v10357_v7 }
 0x1a0   :  { %1906 = vmatmul.mubr.bf16.gmra.mrb[72].mxu0 %v10345_v31  ;;  %2059 = vmatmul.mubr.bf16.gmra.mrb[68].mxu1 %v10345_v31 }
 0x1a1   :  { %1913 = vmatprep.mubr.bf16.mxu0 %v10367_v0  ;;  %2066 = vmatprep.mubr.bf16.mxu1 %v10367_v0 }
 0x1a8   :  { %1914 = vmatmul.mubr.bf16.gmra.mrb[76].mxu0 %v10359_v43  ;;  %2067 = vmatmul.mubr.bf16.gmra.mrb[72].mxu1 %v10359_v43 }
 0x1a9   :  { %1921 = vmatprep.mubr.bf16.mxu0 %v10381_v8  ;;  %2074 = vmatprep.mubr.bf16.mxu1 %v10381_v8 }
 0x1b0   :  { %1922 = vmatmul.mubr.bf16.gmra.mrb[80].mxu0 %v10369_v56  ;;  %2075 = vmatmul.mubr.bf16.gmra.mrb[76].mxu1 %v10369_v56 }
 0x1b1   :  { %1929 = vmatprep.mubr.bf16.mxu0 %v10391_v22  ;;  %2082 = vmatprep.mubr.bf16.mxu1 %v10391_v22 }
 0x1b8   :  { %1930 = vmatmul.mubr.bf16.gmra.mrb[84].mxu0 %v10383_v19  ;;  %2083 = vmatmul.mubr.bf16.gmra.mrb[80].mxu1 %v10383_v19 }
 0x1b9   :  { %1937 = vmatprep.mubr.bf16.mxu0 %v10405_v29  ;;  %2090 = vmatprep.mubr.bf16.mxu1 %v10405_v29 }
 0x1c0   :  { %1938 = vmatmul.mubr.bf16.gmra.mrb[88].mxu0 %v10393_v36  ;;  %2091 = vmatmul.mubr.bf16.gmra.mrb[84].mxu1 %v10393_v36 }
 0x1c1   :  { %1945 = vmatprep.mubr.bf16.mxu0 %v10415_v32  ;;  %2098 = vmatprep.mubr.bf16.mxu1 %v10415_v32 }
 0x1c8   :  { %1946 = vmatmul.mubr.bf16.gmra.mrb[92].mxu0 %v10407_v27  ;;  %2099 = vmatmul.mubr.bf16.gmra.mrb[88].mxu1 %v10407_v27 }
 0x1c9   :  { %2106 = vmatprep.mubr.bf16.mxu1 %v10427_v9  ;;  %2147 = vmatprep.mubr.bf16.mxu0 %v10223_v1  ;;  %v9493_v1 = vld [vmem:[%s12546_s4] sm:$0xff]  }
 0x1d0   :  { %2107 = vmatmul.mubr.bf16.gmra.mrb[92].mxu1 %v10417_v28  ;;  %2148 = vmatmul.mubr.bf16.vlgmr.msra.gmra.mrb[96].mxu0 %v10206_v37  ;;  %v9491_v37 = vld [vmem:[%s12545_s3 + $0x218] sm:$0xff]  }
 0x1d1   :  { %8922 = vmatpush3.bf16.msra.mxu0 %v10190_v3  ;;  %2155 = vmatprep.mubr.bf16.mxu0 %v10241_v57  ;;  %v9494_v3 = vld [vmem:[%s12546_s4 + $0x48] sm:$0xff]  }
 0x1d2   :  { %2308 = vmatprep.mubr.bf16.mxu1 %v10241_v57  ;;  %8923 = vmatprep.subr.bf16.mxu0 %v9489_v51  ;;  %v9495_v57 = vld [vmem:[%s12546_s4 + $0x8] sm:$0xff]  }
 0x1d5   :  { %8924 = vmatpush3.bf16.msra.mxu0 %v9489_v51  ;;  %v9505_v51 = vld [vmem:[%s12546_s4 + $0x30] sm:$0xff]  }
 0x1d6   :  { %8925 = vmatprep.subr.bf16.mxu0 %v9490_v40 }
 0x1d8   :  { %2156 = vmatmul.mubr.bf16.gmra.mrb[100].mxu0 %v10225_v2  ;;  %2309 = vmatmul.mubr.bf16.vlgmr.msra.gmra.mrb[96].mxu1 %v10225_v2  ;;  %v9497_v2 = vld [vmem:[%s12546_s4 + $0x10] sm:$0xff]  }
 0x1d9   :  { %2163 = vmatprep.mubr.bf16.mxu0 %v10261_v38  ;;  %2316 = vmatprep.mubr.bf16.mxu1 %v10261_v38  ;;  %v9498_v38 = vld [vmem:[%s12546_s4 + $0x58] sm:$0xff]  }
 0x1da   :  { %8926 = vmatpush3.bf16.msra.mxu0 %v9490_v40  ;;  %8222 = vmatpush3.bf16.msra.mxu1 %v9493_v1 }
 0x1db   :  { %8927 = vmatprep.subr.bf16.mxu0 %v9491_v37  ;;  %8223 = vmatprep.subr.bf16.mxu1 %v9494_v3 }
 0x1de   :  { %8928 = vmatpush3.bf16.msra.mxu0 %v9491_v37  ;;  %8224 = vmatpush3.bf16.msra.mxu1 %v9495_v57 }
 0x1df   :  { %8225 = vmatprep.subr.bf16.mxu1 %v9496_v52 }
 0x1e0   :  { %2164 = vmatmul.mubr.bf16.gmra.mrb[104].mxu0 %v10243_v39  ;;  %2317 = vmatmul.mubr.bf16.gmra.mrb[100].mxu1 %v10243_v39  ;;  %v9502_v39 = vld [vmem:[%s12546_s4 + $0x68] sm:$0xff]  }
 0x1e1   :  { %2171 = vmatprep.mubr.bf16.mxu0 %v10277_v6  ;;  %2324 = vmatprep.mubr.bf16.mxu1 %v10277_v6  ;;  %v9503_v6 = vld [vmem:[%s12546_s4 + $0x28] sm:$0xff]  }
 0x1e2   :  { %8226 = vmatpush3.bf16.msra.mxu1 %v9497_v2 }
 0x1e3   :  { %8227 = vmatprep.subr.bf16.mxu1 %v9498_v38 }
 0x1e6   :  { %8228 = vmatpush3.bf16.msra.mxu1 %v9499_v60 }
 0x1e7   :  { %8229 = vmatprep.subr.bf16.mxu1 %v9500_v13 }
 0x1e8   :  { %2172 = vmatmul.mubr.bf16.gmra.mrb[108].mxu0 %v10263_v30  ;;  %2325 = vmatmul.mubr.bf16.gmra.mrb[104].mxu1 %v10263_v30  ;;  %v9507_v30 = vld [vmem:[%s12546_s4 + $0x38] sm:$0xff]  }
 0x1e9   :  { %2179 = vmatprep.mubr.bf16.mxu0 %v10299_v17  ;;  %2332 = vmatprep.mubr.bf16.mxu1 %v10299_v17  ;;  %v9506_v17 = vld [vmem:[%s12546_s4 + $0x78] sm:$0xff]  }
 0x1ea   :  { %8230 = vmatpush3.bf16.msra.mxu1 %v9501_v5 }
 0x1eb   :  { %8231 = vmatprep.subr.bf16.mxu1 %v9502_v39 }
 0x1ee   :  { %8232 = vmatpush3.bf16.msra.mxu1 %v9503_v6 }
 0x1ef   :  { %8233 = vmatprep.subr.bf16.mxu1 %v9504_v53 }
 0x1f0   :  { %2180 = vmatmul.mubr.bf16.gmra.mrb[112].mxu0 %v10279_v55  ;;  %2333 = vmatmul.mubr.bf16.gmra.mrb[108].mxu1 %v10279_v55 }
 0x1f1   :  { %2187 = vmatprep.mubr.bf16.mxu0 %v10313_v18  ;;  %2340 = vmatprep.mubr.bf16.mxu1 %v10313_v18 }
 0x1f2   :  { %8234 = vmatpush3.bf16.msra.mxu1 %v9505_v51 }
 0x1f3   :  { %8235 = vmatprep.subr.bf16.mxu1 %v9506_v17 }
 0x1f6   :  { %8236 = vmatpush3.bf16.msra.mxu1 %v9507_v30 }
 0x1f8   :  { %2188 = vmatmul.mubr.bf16.gmra.mrb[116].mxu0 %v10297_v54  ;;  %2341 = vmatmul.mubr.bf16.gmra.mrb[112].mxu1 %v10297_v54 }
 0x1f9   :  { %2195 = vmatprep.mubr.bf16.mxu0 %v10335_v49  ;;  %2348 = vmatprep.mubr.bf16.mxu1 %v10335_v49 }
 0x200   :  { %2196 = vmatmul.mubr.bf16.gmra.mrb[120].mxu0 %v10315_v14  ;;  %2349 = vmatmul.mubr.bf16.gmra.mrb[116].mxu1 %v10315_v14 }
 0x201   :  { %2203 = vmatprep.mubr.bf16.mxu0 %v10343_v44  ;;  %2356 = vmatprep.mubr.bf16.mxu1 %v10343_v44 }
 0x208   :  { %2204 = vmatmul.mubr.bf16.gmra.mrb[124].mxu0 %v10333_v4  ;;  %2357 = vmatmul.mubr.bf16.gmra.mrb[120].mxu1 %v10333_v4 }
 0x209   :  { %2211 = vmatprep.mubr.bf16.mxu0 %v10357_v7  ;;  %2364 = vmatprep.mubr.bf16.mxu1 %v10357_v7 }
 0x210   :  { %2212 = vmatmul.mubr.bf16.gmra.mrb[128].mxu0 %v10345_v31  ;;  %2365 = vmatmul.mubr.bf16.gmra.mrb[124].mxu1 %v10345_v31 }
 0x211   :  { %2219 = vmatprep.mubr.bf16.mxu0 %v10367_v0  ;;  %2372 = vmatprep.mubr.bf16.mxu1 %v10367_v0 }
 0x218   :  { %2220 = vmatmul.mubr.bf16.gmra.mrb[132].mxu0 %v10359_v43  ;;  %2373 = vmatmul.mubr.bf16.gmra.mrb[128].mxu1 %v10359_v43 }
 0x219   :  { %2227 = vmatprep.mubr.bf16.mxu0 %v10381_v8  ;;  %2380 = vmatprep.mubr.bf16.mxu1 %v10381_v8 }
 0x220   :  { %2228 = vmatmul.mubr.bf16.gmra.mrb[136].mxu0 %v10369_v56  ;;  %2381 = vmatmul.mubr.bf16.gmra.mrb[132].mxu1 %v10369_v56 }
 0x221   :  { %2235 = vmatprep.mubr.bf16.mxu0 %v10391_v22  ;;  %2388 = vmatprep.mubr.bf16.mxu1 %v10391_v22 }
 0x228   :  { %2236 = vmatmul.mubr.bf16.gmra.mrb[140].mxu0 %v10383_v19  ;;  %2389 = vmatmul.mubr.bf16.gmra.mrb[136].mxu1 %v10383_v19 }
 0x229   :  { %2243 = vmatprep.mubr.bf16.mxu0 %v10405_v29  ;;  %2396 = vmatprep.mubr.bf16.mxu1 %v10405_v29 }
 0x22b   :  { %v7775_v44 = vpop.f32.mrb[36].mxu0  ;;  %v7881_v31 = vpop.f32.mrb[32].mxu1 }
 0x22c   :  { %v7776_v49 = vpop.f32.mrb[37].mxu0  ;;  %v7882_v4 = vpop.f32.mrb[33].mxu1 }
 0x22d   :  { %v7777_v54 = vadd.f32 %v7776_v49, %v7775_v44  ;;  %v7883_v55 = vadd.f32 %v7882_v4, %v7881_v31  ;;  %v7778_v18 = vpop.f32.mrb[38].mxu0  ;;  %v7884_v14 = vpop.f32.mrb[34].mxu1  ;;  %v7175_v31 = vcombine.low %v10424_v20, %v9929_v45 }
 0x22e   :  { %v7779_v7 = vpop.f32.mrb[39].mxu0  ;;  %v7885_v43 = vpop.f32.mrb[35].mxu1 }
 0x22f   :  { %v10571_v0 = vadd.f32 %v7883_v55, %v10436_v23  ;;  %v7780_v56 = vadd.f32 %v7779_v7, %v7778_v18  ;;  %v7886_v8 = vadd.f32 %v7885_v43, %v7884_v14 }
 0x230   :  { %2244 = vmatmul.mubr.bf16.gmra.mrb[144].mxu0 %v10393_v36  ;;  %2397 = vmatmul.mubr.bf16.gmra.mrb[140].mxu1 %v10393_v36 }
 0x231   :  { %v10576_v19 = vadd.f32 %v7886_v8, %v10442_v10  ;;  %2251 = vmatprep.mubr.bf16.mxu0 %v10415_v32  ;;  %2404 = vmatprep.mubr.bf16.mxu1 %v10415_v32 }
 0x233   :  { %v7781_v22 = vpop.f32.mrb[40].mxu0  ;;  %v7887_v29 = vpop.f32.mrb[36].mxu1 }
 0x234   :  { %v7782_v40 = vpop.f32.mrb[41].mxu0  ;;  %v7888_v1 = vpop.f32.mrb[37].mxu1 }
 0x235   :  { %v7783_v37 = vadd.f32 %v7782_v40, %v7781_v22  ;;  %v7889_v23 = vadd.f32 %v7888_v1, %v7887_v29  ;;  %v7784_v3 = vpop.f32.mrb[42].mxu0  ;;  %v7890_v57 = vpop.f32.mrb[38].mxu1 }
 0x236   :  { %v7785_v52 = vpop.f32.mrb[43].mxu0  ;;  %v7891_v2 = vpop.f32.mrb[39].mxu1 }
 0x237   :  { %v10580_v38 = vadd.f32 %v7889_v23, %v7777_v54  ;;  %v7786_v36 = vadd.f32 %v7785_v52, %v7784_v3  ;;  %v7892_v60 = vadd.f32 %v7891_v2, %v7890_v57 }
 0x238   :  { %2252 = vmatmul.mubr.bf16.gmra.mrb[148].mxu0 %v10407_v27  ;;  %2405 = vmatmul.mubr.bf16.gmra.mrb[144].mxu1 %v10407_v27 }
 0x239   :  { %v10584_v10 = vadd.f32 %v7892_v60, %v7780_v56  ;;  %2259 = vmatprep.mubr.bf16.mxu0 %v10427_v9  ;;  %2412 = vmatprep.mubr.bf16.mxu1 %v10427_v9 }
 0x23b   :  { %v7787_v32 = vpop.f32.mrb[44].mxu0  ;;  %v7893_v13 = vpop.f32.mrb[40].mxu1 }
 0x23c   :  { %v7788_v5 = vpop.f32.mrb[45].mxu0  ;;  %v7894_v39 = vpop.f32.mrb[41].mxu1 }
 0x23d   :  { %v7789_v6 = vadd.f32 %v7788_v5, %v7787_v32  ;;  %v7895_v53 = vadd.f32 %v7894_v39, %v7893_v13  ;;  %v7790_v51 = vpop.f32.mrb[46].mxu0  ;;  %v7896_v17 = vpop.f32.mrb[42].mxu1 }
 0x23e   :  { %v7791_v30 = vpop.f32.mrb[47].mxu0  ;;  %v7897_v44 = vpop.f32.mrb[43].mxu1 }
 0x23f   :  { %v10590_v27 = vadd.f32 %v7895_v53, %v7783_v37  ;;  %v7792_v49 = vadd.f32 %v7791_v30, %v7790_v51  ;;  %v7898_v4 = vadd.f32 %v7897_v44, %v7896_v17  ;;  %v12630_v37 = vpack.c.bf16 %v10056_v50, %v10048_v42 }
 0x240   :  { %2260 = vmatmul.mubr.bf16.gmra.mrb[152].mxu0 %v10417_v28  ;;  %2413 = vmatmul.mubr.bf16.gmra.mrb[148].mxu1 %v10417_v28  ;;  %v12631_v53 = vpack.c.bf16 %v10052_v48, %v10046_v41  ;;  %v12632_v17 = vpack.c.bf16 %v10070_v63, %v10064_v59 }
 0x241   :  { %v10594_v9 = vadd.f32 %v7898_v4, %v7786_v36  ;;  %2267 = vmatprep.mubr.bf16.mxu0 %v7175_v31  ;;  %2420 = vmatprep.mubr.bf16.mxu1 %v7175_v31 }
 0x243   :  { %v7793_v54 = vpop.f32.mrb[48].mxu0  ;;  %v7899_v55 = vpop.f32.mrb[44].mxu1 }
 0x244   :  { %v7794_v18 = vpop.f32.mrb[49].mxu0  ;;  %v7900_v14 = vpop.f32.mrb[45].mxu1 }
 0x245   :  { %v7795_v7 = vadd.f32 %v7794_v18, %v7793_v54  ;;  %v7901_v43 = vadd.f32 %v7900_v14, %v7899_v55  ;;  %v7796_v56 = vpop.f32.mrb[50].mxu0  ;;  %v7902_v20 = vpop.f32.mrb[46].mxu1 }
 0x246   :  { %v7797_v8 = vpop.f32.mrb[51].mxu0  ;;  %v7903_v22 = vpop.f32.mrb[47].mxu1 }
 0x247   :  { %v10596_v29 = vadd.f32 %v7901_v43, %v7789_v6  ;;  %v7798_v40 = vadd.f32 %v7797_v8, %v7796_v56  ;;  %v7904_v1 = vadd.f32 %v7903_v22, %v7902_v20  ;;  %v12633_v8 = vpack.c.bf16 %v10068_v62, %v10062_v58 }
 0x248   :  { %2268 = vmatmul.mubr.bf16.gmra.mrb[156].mxu0 %v10430_v21  ;;  %2421 = vmatmul.mubr.bf16.gmra.mrb[152].mxu1 %v10430_v21 }
 0x249   :  { %v10600_v28 = vadd.f32 %v7904_v1, %v7792_v49  ;;  %2428 = vmatprep.mubr.bf16.mxu1 %v9936_v47  ;;  %8929 = vmatprep.mubr.msk.bf16.mxu0 %vm954_vm2, %v12630_v37 }
 0x24b   :  { %v7799_v23 = vpop.f32.mrb[52].mxu0  ;;  %v7905_v3 = vpop.f32.mrb[48].mxu1 }
 0x24c   :  { %v7800_v57 = vpop.f32.mrb[53].mxu0  ;;  %v7906_v52 = vpop.f32.mrb[49].mxu1 }
 0x24d   :  { %v7801_v2 = vadd.f32 %v7800_v57, %v7799_v23  ;;  %v7907_v36 = vadd.f32 %v7906_v52, %v7905_v3  ;;  %v7802_v60 = vpop.f32.mrb[54].mxu0  ;;  %v7908_v32 = vpop.f32.mrb[50].mxu1 }
 0x24e   :  { %v7803_v13 = vpop.f32.mrb[55].mxu0  ;;  %v7909_v5 = vpop.f32.mrb[51].mxu1 }
 0x24f   :  { %v10607_v21 = vadd.f32 %v7907_v36, %v7795_v7  ;;  %v7804_v39 = vadd.f32 %v7803_v13, %v7802_v60  ;;  %v7910_v6 = vadd.f32 %v7909_v5, %v7908_v32 }
 0x250   :  { %2429 = vmatmul.mubr.bf16.gmra.mrb[156].mxu1 %v9936_v47  ;;  %8930 = vmatmul.mubr.msk.bf16.vlgmr.msra.gmra.mrb[160].mxu0 %vm954_vm2, %v12631_v53 }
 0x251   :  { %v10614_v51 = vadd.f32 %v7910_v6, %v7798_v40  ;;  %8933 = vmatprep.mubr.msk.bf16.mxu0 %vm954_vm2, %v12632_v17  ;;  %3579 = vmatprep.mubr.bf16.mxu1 %v9936_v47  ;;  %v12634_v40 = vpack.c.bf16 %v10092_v16, %v10086_v12  ;;  %v12635_v6 = vpack.c.bf16 %v10090_v15, %v10084_v11 }
 0x252   :  { %v12636_v17 = vpack.c.bf16 %v10108_v34, %v10102_v26 }
 0x253   :  { %v7805_v30 = vpop.f32.mrb[56].mxu0  ;;  %v7911_v44 = vpop.f32.mrb[52].mxu1 }
 0x254   :  { %v7806_v31 = vpop.f32.mrb[57].mxu0  ;;  %v7912_v49 = vpop.f32.mrb[53].mxu1 }
 0x255   :  { %v7807_v4 = vadd.f32 %v7806_v31, %v7805_v30  ;;  %v7913_v54 = vadd.f32 %v7912_v49, %v7911_v44  ;;  %v7808_v55 = vpop.f32.mrb[58].mxu0  ;;  %v7914_v18 = vpop.f32.mrb[54].mxu1 }
 0x256   :  { %v7809_v14 = vpop.f32.mrb[59].mxu0  ;;  %v7915_v7 = vpop.f32.mrb[55].mxu1 }
 0x257   :  { %v10621_v43 = vadd.f32 %v7913_v54, %v7801_v2  ;;  %v7810_v56 = vadd.f32 %v7809_v14, %v7808_v55  ;;  %v7916_v20 = vadd.f32 %v7915_v7, %v7914_v18 }
 0x258   :  { %8934 = vmatmul.mubr.msk.bf16.gmra.mrb[164].mxu0 %vm954_vm2, %v12633_v8  ;;  %3580 = vmatmul.mubr.bf16.vlgmr.msra.gmra.mrb[160].mxu1 %v9936_v47 }
 0x259   :  { %v10628_v22 = vadd.f32 %v7916_v20, %v7804_v39  ;;  %8937 = vmatprep.mubr.msk.bf16.mxu0 %vm954_vm2, %v12634_v40  ;;  %3587 = vmatprep.mubr.bf16.mxu1 %v9936_v47  ;;  %v12637_v40 = vpack.c.bf16 %v10106_v33, %v10100_v25 }
 0x25b   :  { %v7811_v1 = vpop.f32.mrb[60].mxu0  ;;  %v7917_v37 = vpop.f32.mrb[56].mxu1 }
 0x25c   :  { %v7812_v23 = vpop.f32.mrb[61].mxu0  ;;  %v7918_v3 = vpop.f32.mrb[57].mxu1 }
 0x25d   :  { %v7813_v57 = vadd.f32 %v7812_v23, %v7811_v1  ;;  %v7919_v52 = vadd.f32 %v7918_v3, %v7917_v37  ;;  %v7814_v2 = vpop.f32.mrb[62].mxu0  ;;  %v7920_v36 = vpop.f32.mrb[58].mxu1  ;;  %v12638_v37 = vld [vmem:[#allocation20_spill] sm:$0xff] }
 0x25e   :  { %v7815_v60 = vpop.f32.mrb[63].mxu0  ;;  %v7921_v32 = vpop.f32.mrb[59].mxu1  ;;  %v12639_v23 = vpack.c.bf16 %v10130_v61, %v12638_v37 }
 0x25f   :  { %v10635_v13 = vadd.f32 %v7919_v52, %v7807_v4  ;;  %v7816_v5 = vadd.f32 %v7815_v60, %v7814_v2  ;;  %v7922_v39 = vadd.f32 %v7921_v32, %v7920_v36 }
 0x260   :  { %8938 = vmatmul.mubr.msk.bf16.gmra.mrb[168].mxu0 %vm954_vm2, %v12635_v6  ;;  %3588 = vmatmul.mubr.bf16.gmra.mrb[164].mxu1 %v9936_v47 }
 0x261   :  { %v10642_v53 = vadd.f32 %v7922_v39, %v7810_v56  ;;  %8941 = vmatprep.mubr.msk.bf16.mxu0 %vm954_vm2, %v12636_v17 }
 0x263   :  { %v7817_v30 = vpop.f32.mrb[64].mxu0  ;;  %v7923_v44 = vpop.f32.mrb[60].mxu1 }
 0x264   :  { %v7818_v31 = vpop.f32.mrb[65].mxu0  ;;  %v7924_v49 = vpop.f32.mrb[61].mxu1 }
 0x265   :  { %v7819_v4 = vadd.f32 %v7818_v31, %v7817_v30  ;;  %v7925_v54 = vadd.f32 %v7924_v49, %v7923_v44  ;;  %v7820_v55 = vpop.f32.mrb[66].mxu0  ;;  %v7926_v18 = vpop.f32.mrb[62].mxu1  ;;  %v12641_v49 = vld [vmem:[#allocation19_spill] sm:$0xff] }
 0x266   :  { %v7821_v14 = vpop.f32.mrb[67].mxu0  ;;  %v7927_v7 = vpop.f32.mrb[63].mxu1 }
 0x267   :  { %v10648_v20 = vadd.f32 %v7925_v54, %v7813_v57  ;;  %v7822_v8 = vadd.f32 %v7821_v14, %v7820_v55  ;;  %v7928_v56 = vadd.f32 %v7927_v7, %v7926_v18  ;;  %v12643_v55 = vld [vmem:[#allocation26_spill] sm:$0xff]  ;;  %v12644_v18 = vld [vmem:[#allocation24_spill] sm:$0xff] }
 0x268   :  { %8942 = vmatmul.mubr.msk.bf16.gmra.mrb[172].mxu0 %vm954_vm2, %v12637_v40  ;;  %v12645_v14 = vpack.c.bf16 %v12643_v55, %v12644_v18  ;;  %v12647_v55 = vld [vmem:[#allocation23_spill] sm:$0xff] }
 0x269   :  { %v10654_v1 = vadd.f32 %v7928_v56, %v7816_v5  ;;  %8945 = vmatprep.mubr.msk.bf16.mxu0 %vm954_vm2, %v12639_v23  ;;  %v12640_v5 = vld [vmem:[#allocation21_spill] sm:$0xff] }
 0x26a   :  { %v12642_v54 = vpack.c.bf16 %v12640_v5, %v12641_v49 }
 0x26b   :  { %v7823_v3 = vpop.f32.mrb[68].mxu0  ;;  %v7929_v52 = vpop.f32.mrb[64].mxu1 }
 0x26c   :  { %v7824_v2 = vpop.f32.mrb[69].mxu0  ;;  %v7930_v36 = vpop.f32.mrb[65].mxu1 }
 0x26d   :  { %v7825_v57 = vadd.f32 %v7824_v2, %v7823_v3  ;;  %v7931_v60 = vadd.f32 %v7930_v36, %v7929_v52  ;;  %v7826_v32 = vpop.f32.mrb[70].mxu0  ;;  %v7932_v39 = vpop.f32.mrb[66].mxu1 }
 0x26e   :  { %v7827_v6 = vpop.f32.mrb[71].mxu0  ;;  %v7933_v17 = vpop.f32.mrb[67].mxu1 }
 0x26f   :  { %v7828_v30 = vadd.f32 %v7827_v6, %v7826_v32  ;;  %v7934_v44 = vadd.f32 %v7933_v17, %v7932_v39  ;;  %v10660_v31 = vadd.f32 %v7931_v60, %v7819_v4 }
 0x270   :  { %8946 = vmatmul.mubr.msk.bf16.gmra.mrb[176].mxu0 %vm954_vm2, %v12642_v54  ;;  %v12646_v54 = vld [vmem:[#allocation25_spill] sm:$0xff] }
 0x271   :  { %8949 = vmatprep.mubr.msk.bf16.mxu0 %vm954_vm2, %v12645_v14  ;;  %v10670_v7 = vadd.f32 %v7934_v44, %v7822_v8  ;;  %v12648_v18 = vpack.c.bf16 %v12646_v54, %v12647_v55  ;;  %v12649_v8 = vpack.c.bf16 %v10178_v46, %v10154_v24 }
 0x273   :  { %v7829_v56 = vpop.f32.mrb[72].mxu0  ;;  %v7935_v40 = vpop.f32.mrb[68].mxu1 }
 0x274   :  { %v7830_v23 = vpop.f32.mrb[73].mxu0  ;;  %v7936_v3 = vpop.f32.mrb[69].mxu1 }
 0x275   :  { %v7831_v52 = vadd.f32 %v7830_v23, %v7829_v56  ;;  %v7937_v2 = vadd.f32 %v7936_v3, %v7935_v40  ;;  %v7832_v4 = vpop.f32.mrb[74].mxu0  ;;  %v7938_v36 = vpop.f32.mrb[70].mxu1  ;;  %v12650_v3 = vmov 0  }
 0x276   :  { %v7833_v60 = vpop.f32.mrb[75].mxu0  ;;  %v7939_v32 = vpop.f32.mrb[71].mxu1 }
 0x277   :  { %v7834_v39 = vadd.f32 %v7833_v60, %v7832_v4  ;;  %v7940_v6 = vadd.f32 %v7939_v32, %v7938_v36  ;;  %v10672_v17 = vadd.f32 %v7937_v2, %v7825_v57  ;;  %v10686_v57 = vcombine.low %v12650_v3, %v12650_v3 }
 0x278   :  { %8950 = vmatmul.mubr.msk.bf16.gmra.mrb[180].mxu0 %vm954_vm2, %v12648_v18 }
 0x279   :  { %8953 = vmatprep.mubr.msk.bf16.mxu0 %vm954_vm2, %v12649_v8  ;;  %v10682_v44 = vadd.f32 %v7940_v6, %v7828_v30  ;;  %12651 = vst [vmem:[#allocation31_spill] sm:$0xff] %v10686_v57  ;;  %v12652_v30 = vld [vmem:[#allocation27_spill] sm:$0xff] }
 0x27a   :  { %v12653_v6 = vpack.c.bf16 %v10160_v35, %v12652_v30 }
 0x27b   :  { %v7835_v14 = vpop.f32.mrb[76].mxu0  ;;  %v7941_v56 = vpop.f32.mrb[72].mxu1 }
 0x27c   :  { %v7836_v40 = vpop.f32.mrb[77].mxu0  ;;  %v7942_v23 = vpop.f32.mrb[73].mxu1 }
 0x27d   :  { %v7837_v2 = vadd.f32 %v7836_v40, %v7835_v14  ;;  %v7943_v4 = vadd.f32 %v7942_v23, %v7941_v56  ;;  %v7838_v36 = vpop.f32.mrb[78].mxu0  ;;  %v7944_v60 = vpop.f32.mrb[74].mxu1 }
 0x27e   :  { %v7839_v18 = vpop.f32.mrb[79].mxu0  ;;  %v7945_v32 = vpop.f32.mrb[75].mxu1 }
 0x27f   :  { %v7840_v54 = vadd.f32 %v7839_v18, %v7838_v36  ;;  %v7946_v46 = vadd.f32 %v7945_v32, %v7944_v60  ;;  %v10688_v24 = vadd.f32 %v7943_v4, %v7831_v52 }
 0x280   :  { %8954 = vmatmul.mubr.msk.bf16.gmra.mrb[184].mxu0 %vm954_vm2, %v12653_v6 }
 0x281   :  { %8957 = vmatprep.mubr.msk.bf16.mxu0 %vm954_vm2, %v10686_v57  ;;  %v10696_v8 = vadd.f32 %v7946_v46, %v7834_v39 }
 0x283   :  { %v7841_v14 = vpop.f32.mrb[80].mxu0  ;;  %v7947_v56 = vpop.f32.mrb[76].mxu1 }
 0x284   :  { %v7842_v40 = vpop.f32.mrb[81].mxu0  ;;  %v7948_v23 = vpop.f32.mrb[77].mxu1 }
 0x285   :  { %v7843_v3 = vadd.f32 %v7842_v40, %v7841_v14  ;;  %v7949_v55 = vadd.f32 %v7948_v23, %v7947_v56  ;;  %v7844_v36 = vpop.f32.mrb[82].mxu0  ;;  %v7950_v60 = vpop.f32.mrb[78].mxu1 }
 0x286   :  { %v7845_v52 = vpop.f32.mrb[83].mxu0  ;;  %v7951_v4 = vpop.f32.mrb[79].mxu1 }
 0x287   :  { %v7846_v18 = vadd.f32 %v7845_v52, %v7844_v36  ;;  %v7952_v32 = vadd.f32 %v7951_v4, %v7950_v60  ;;  %v10698_v35 = vadd.f32 %v7949_v55, %v7837_v2 }
 0x288   :  { %8958 = vmatmul.mubr.msk.bf16.gmra.mrb[188].mxu0 %vm954_vm2, %v10686_v57 }
 0x289   :  { %v10702_v6 = vadd.f32 %v7952_v32, %v7840_v54 }
 0x28b   :  { %v7847_v46 = vpop.f32.mrb[84].mxu0  ;;  %v7953_v39 = vpop.f32.mrb[80].mxu1 }
 0x28c   :  { %v7848_v30 = vpop.f32.mrb[85].mxu0  ;;  %v7954_v5 = vpop.f32.mrb[81].mxu1 }
 0x28d   :  { %v7849_v49 = vadd.f32 %v7848_v30, %v7847_v46  ;;  %v7955_v14 = vadd.f32 %v7954_v5, %v7953_v39  ;;  %v7850_v56 = vpop.f32.mrb[86].mxu0  ;;  %v7956_v40 = vpop.f32.mrb[82].mxu1 }
 0x28e   :  { %v7851_v23 = vpop.f32.mrb[87].mxu0  ;;  %v7957_v61 = vpop.f32.mrb[83].mxu1 }
 0x28f   :  { %v7852_v37 = vadd.f32 %v7851_v23, %v7850_v56  ;;  %v7958_v36 = vadd.f32 %v7957_v61, %v7956_v40  ;;  %v10704_v60 = vadd.f32 %v7955_v14, %v7843_v3 }
 0x291   :  { %v10706_v55 = vadd.f32 %v7958_v36, %v7846_v18 }
 0x293   :  { %v7853_v2 = vpop.f32.mrb[88].mxu0  ;;  %v7959_v52 = vpop.f32.mrb[84].mxu1 }
 0x294   :  { %v7854_v54 = vpop.f32.mrb[89].mxu0  ;;  %v7960_v4 = vpop.f32.mrb[85].mxu1 }
 0x295   :  { %v7855_v32 = vadd.f32 %v7854_v54, %v7853_v2  ;;  %v7961_v57 = vadd.f32 %v7960_v4, %v7959_v52  ;;  %v7856_v33 = vpop.f32.mrb[90].mxu0  ;;  %v7962_v25 = vpop.f32.mrb[86].mxu1 }
 0x296   :  { %v7857_v30 = vpop.f32.mrb[91].mxu0  ;;  %v7963_v5 = vpop.f32.mrb[87].mxu1 }
 0x297   :  { %v7858_v46 = vadd.f32 %v7857_v30, %v7856_v33  ;;  %v7964_v39 = vadd.f32 %v7963_v5, %v7962_v25  ;;  %v10708_v34 = vadd.f32 %v7961_v57, %v7849_v49 }
 0x299   :  { %v10710_v56 = vadd.f32 %v7964_v39, %v7852_v37 }
 0x29b   :  { %v7859_v61 = vpop.f32.mrb[92].mxu0  ;;  %v7965_v3 = vpop.f32.mrb[88].mxu1 }
 0x29c   :  { %v7860_v18 = vpop.f32.mrb[93].mxu0  ;;  %v7966_v14 = vpop.f32.mrb[89].mxu1 }
 0x29d   :  { %v7861_v40 = vadd.f32 %v7860_v18, %v7859_v61  ;;  %v7967_v23 = vadd.f32 %v7966_v14, %v7965_v3  ;;  %v7862_v36 = vpop.f32.mrb[94].mxu0  ;;  %v7968_v26 = vpop.f32.mrb[90].mxu1 }
 0x29e   :  { %v7863_v2 = vpop.f32.mrb[95].mxu0  ;;  %v7969_v52 = vpop.f32.mrb[91].mxu1 }
 0x29f   :  { %v7864_v54 = vadd.f32 %v7863_v2, %v7862_v36  ;;  %v7970_v4 = vadd.f32 %v7969_v52, %v7968_v26  ;;  %v10712_v15 = vadd.f32 %v7967_v23, %v7855_v32 }
 0x2a1   :  { %v10714_v33 = vadd.f32 %v7970_v4, %v7858_v46 }
 0x2a3   :  { %v7971_v25 = vpop.f32.mrb[92].mxu1  ;;  %v7993_v49 = vpop.f32.mrb[96].mxu0 }
 0x2a4   :  { %v7972_v37 = vpop.f32.mrb[93].mxu1  ;;  %v7994_v57 = vpop.f32.mrb[97].mxu0 }
 0x2a5   :  { %v7973_v30 = vadd.f32 %v7972_v37, %v7971_v25  ;;  %v7995_v5 = vadd.f32 %v7994_v57, %v7993_v49  ;;  %v7974_v39 = vpop.f32.mrb[94].mxu1  ;;  %v7996_v11 = vpop.f32.mrb[98].mxu0 }
 0x2a6   :  { %v7975_v61 = vpop.f32.mrb[95].mxu1  ;;  %v7997_v3 = vpop.f32.mrb[99].mxu0 }
 0x2a7   :  { %v7976_v18 = vadd.f32 %v7975_v61, %v7974_v39  ;;  %v7998_v14 = vadd.f32 %v7997_v3, %v7996_v11  ;;  %v10716_v16 = vadd.f32 %v7973_v30, %v7861_v40  ;;  %v2150_v26 = vadd.f32 %v7995_v5, %v10571_v0 }
 0x2a9   :  { %v10719_v32 = vadd.f32 %v7976_v18, %v7864_v54  ;;  %v2153_v46 = vadd.f32 %v7998_v14, %v10576_v19 }
 0x2ab   :  { %v7999_v23 = vpop.f32.mrb[100].mxu0  ;;  %v8105_v36 = vpop.f32.mrb[96].mxu1 }
 0x2ac   :  { %v8000_v2 = vpop.f32.mrb[101].mxu0  ;;  %v8106_v52 = vpop.f32.mrb[97].mxu1 }
 0x2ad   :  { %v8001_v4 = vadd.f32 %v8000_v2, %v7999_v23  ;;  %v8107_v25 = vadd.f32 %v8106_v52, %v8105_v36  ;;  %v8002_v49 = vpop.f32.mrb[102].mxu0  ;;  %v8108_v37 = vpop.f32.mrb[98].mxu1 }
 0x2ae   :  { %v8003_v57 = vpop.f32.mrb[103].mxu0  ;;  %v8109_v12 = vpop.f32.mrb[99].mxu1 }
 0x2af   :  { %v8004_v39 = vadd.f32 %v8003_v57, %v8002_v49  ;;  %v8110_v11 = vadd.f32 %v8109_v12, %v8108_v37  ;;  %v2158_v40 = vadd.f32 %v8001_v4, %v10580_v38  ;;  %v10723_v30 = vadd.f32 %v8107_v25, %v2150_v26 }
 0x2b1   :  { %v2161_v0 = vadd.f32 %v8004_v39, %v10584_v10  ;;  %v10726_v54 = vadd.f32 %v8110_v11, %v2153_v46 }
 0x2b3   :  { %v8005_v19 = vpop.f32.mrb[104].mxu0  ;;  %v8111_v5 = vpop.f32.mrb[100].mxu1 }
 0x2b4   :  { %v8006_v61 = vpop.f32.mrb[105].mxu0  ;;  %v8112_v3 = vpop.f32.mrb[101].mxu1 }
 0x2b5   :  { %v8007_v18 = vadd.f32 %v8006_v61, %v8005_v19  ;;  %v8113_v14 = vadd.f32 %v8112_v3, %v8111_v5  ;;  %v8008_v23 = vpop.f32.mrb[106].mxu0  ;;  %v8114_v36 = vpop.f32.mrb[102].mxu1 }
 0x2b6   :  { %v8009_v2 = vpop.f32.mrb[107].mxu0  ;;  %v8115_v52 = vpop.f32.mrb[103].mxu1 }
 0x2b7   :  { %v8010_v49 = vadd.f32 %v8009_v2, %v8008_v23  ;;  %v8116_v12 = vadd.f32 %v8115_v52, %v8114_v36  ;;  %v10728_v37 = vadd.f32 %v8113_v14, %v2158_v40  ;;  %v2166_v38 = vadd.f32 %v8007_v18, %v10590_v27 }
 0x2b9   :  { %v10731_v26 = vadd.f32 %v8116_v12, %v2161_v0  ;;  %v2169_v10 = vadd.f32 %v8010_v49, %v10594_v9 }
 0x2bb   :  { %v8011_v46 = vpop.f32.mrb[108].mxu0  ;;  %v8117_v4 = vpop.f32.mrb[104].mxu1 }
 0x2bc   :  { %v8012_v25 = vpop.f32.mrb[109].mxu0  ;;  %v8118_v57 = vpop.f32.mrb[105].mxu1 }
 0x2bd   :  { %v8013_v39 = vadd.f32 %v8012_v25, %v8011_v46  ;;  %v8119_v11 = vadd.f32 %v8118_v57, %v8117_v4  ;;  %v8014_v19 = vpop.f32.mrb[110].mxu0  ;;  %v8120_v5 = vpop.f32.mrb[106].mxu1 }
 0x2be   :  { %v8015_v61 = vpop.f32.mrb[111].mxu0  ;;  %v8121_v3 = vpop.f32.mrb[107].mxu1 }
 0x2bf   :  { %v8016_v23 = vadd.f32 %v8015_v61, %v8014_v19  ;;  %v8122_v36 = vadd.f32 %v8121_v3, %v8120_v5  ;;  %v2174_v40 = vadd.f32 %v8013_v39, %v10596_v29  ;;  %v10735_v14 = vadd.f32 %v8119_v11, %v2166_v38 }
 0x2c1   :  { %v2177_v27 = vadd.f32 %v8016_v23, %v10600_v28  ;;  %v10738_v0 = vadd.f32 %v8122_v36, %v2169_v10 }
 0x2c3   :  { %v8017_v9 = vpop.f32.mrb[112].mxu0  ;;  %v8123_v18 = vpop.f32.mrb[108].mxu1 }
 0x2c4   :  { %v8018_v2 = vpop.f32.mrb[113].mxu0  ;;  %v8124_v52 = vpop.f32.mrb[109].mxu1 }
 0x2c5   :  { %v8019_v49 = vadd.f32 %v8018_v2, %v8017_v9  ;;  %v8125_v12 = vadd.f32 %v8124_v52, %v8123_v18  ;;  %v8020_v46 = vpop.f32.mrb[114].mxu0  ;;  %v8126_v4 = vpop.f32.mrb[110].mxu1 }
 0x2c6   :  { %v8021_v25 = vpop.f32.mrb[115].mxu0  ;;  %v8127_v57 = vpop.f32.mrb[111].mxu1 }
 0x2c7   :  { %v8022_v19 = vadd.f32 %v8021_v25, %v8020_v46  ;;  %v8128_v5 = vadd.f32 %v8127_v57, %v8126_v4  ;;  %v10740_v61 = vadd.f32 %v8125_v12, %v2174_v40  ;;  %v2182_v29 = vadd.f32 %v8019_v49, %v10607_v21 }
 0x2c9   :  { %v10743_v38 = vadd.f32 %v8128_v5, %v2177_v27  ;;  %v2185_v28 = vadd.f32 %v8022_v19, %v10614_v51 }
 0x2cb   :  { %v8023_v10 = vpop.f32.mrb[116].mxu0  ;;  %v8129_v39 = vpop.f32.mrb[112].mxu1 }
 0x2cc   :  { %v8024_v11 = vpop.f32.mrb[117].mxu0  ;;  %v8130_v3 = vpop.f32.mrb[113].mxu1 }
 0x2cd   :  { %v8025_v23 = vadd.f32 %v8024_v11, %v8023_v10  ;;  %v8131_v36 = vadd.f32 %v8130_v3, %v8129_v39  ;;  %v8026_v9 = vpop.f32.mrb[118].mxu0  ;;  %v8132_v18 = vpop.f32.mrb[114].mxu1 }
 0x2ce   :  { %v8027_v2 = vpop.f32.mrb[119].mxu0  ;;  %v8133_v52 = vpop.f32.mrb[115].mxu1 }
 0x2cf   :  { %v8028_v46 = vadd.f32 %v8027_v2, %v8026_v9  ;;  %v8134_v4 = vadd.f32 %v8133_v52, %v8132_v18  ;;  %v2190_v40 = vadd.f32 %v8025_v23, %v10621_v43  ;;  %v10747_v12 = vadd.f32 %v8131_v36, %v2182_v29 }
 0x2d1   :  { %v2193_v21 = vadd.f32 %v8028_v46, %v10628_v22  ;;  %v10750_v27 = vadd.f32 %v8134_v4, %v2185_v28 }
 0x2d3   :  { %v8029_v51 = vpop.f32.mrb[120].mxu0  ;;  %v8135_v49 = vpop.f32.mrb[116].mxu1 }
 0x2d4   :  { %v8030_v25 = vpop.f32.mrb[121].mxu0  ;;  %v8136_v57 = vpop.f32.mrb[117].mxu1 }
 0x2d5   :  { %v8031_v19 = vadd.f32 %v8030_v25, %v8029_v51  ;;  %v8137_v5 = vadd.f32 %v8136_v57, %v8135_v49  ;;  %v8032_v10 = vpop.f32.mrb[122].mxu0  ;;  %v8138_v39 = vpop.f32.mrb[118].mxu1 }
 0x2d6   :  { %v8033_v11 = vpop.f32.mrb[123].mxu0  ;;  %v8139_v3 = vpop.f32.mrb[119].mxu1 }
 0x2d7   :  { %v8034_v9 = vadd.f32 %v8033_v11, %v8032_v10  ;;  %v8140_v18 = vadd.f32 %v8139_v3, %v8138_v39  ;;  %v10752_v2 = vadd.f32 %v8137_v5, %v2190_v40  ;;  %v2198_v43 = vadd.f32 %v8031_v19, %v10635_v13 }
 0x2d9   :  { %v10755_v29 = vadd.f32 %v8140_v18, %v2193_v21  ;;  %v2201_v22 = vadd.f32 %v8034_v9, %v10642_v53 }
 0x2db   :  { %v8035_v28 = vpop.f32.mrb[124].mxu0  ;;  %v8141_v23 = vpop.f32.mrb[120].mxu1 }
 0x2dc   :  { %v8036_v36 = vpop.f32.mrb[125].mxu0  ;;  %v8142_v52 = vpop.f32.mrb[121].mxu1 }
 0x2dd   :  { %v8037_v46 = vadd.f32 %v8036_v36, %v8035_v28  ;;  %v8143_v4 = vadd.f32 %v8142_v52, %v8141_v23  ;;  %v8038_v51 = vpop.f32.mrb[126].mxu0  ;;  %v8144_v49 = vpop.f32.mrb[122].mxu1 }
 0x2de   :  { %v8039_v25 = vpop.f32.mrb[127].mxu0  ;;  %v8145_v57 = vpop.f32.mrb[123].mxu1 }
 0x2df   :  { %v8040_v10 = vadd.f32 %v8039_v25, %v8038_v51  ;;  %v8146_v39 = vadd.f32 %v8145_v57, %v8144_v49  ;;  %v2206_v40 = vadd.f32 %v8037_v46, %v10648_v20  ;;  %v10759_v5 = vadd.f32 %v8143_v4, %v2198_v43  ;;  %v9510_v46 = vld [vmem:[%s12546_s4 + $0xc8] sm:$0xff]  }
 0x2e0   :  { %v9511_v57 = vld [vmem:[%s12546_s4 + $0x88] sm:$0xff]  }
 0x2e1   :  { %v2209_v13 = vadd.f32 %v8040_v10, %v10654_v1  ;;  %v10762_v21 = vadd.f32 %v8146_v39, %v2201_v22  ;;  %v9508_v1 = vld [vmem:[%s12546_s4 + $0xc0] sm:$0xff]  }
 0x2e2   :  { %v9509_v22 = vld [vmem:[%s12546_s4 + $0x80] sm:$0xff]   ;;  %8333 = vmatprep.subr.bf16.mxu0 %v9508_v1  ;;  %v9514_v1 = vld [vmem:[%s12546_s4 + $0xd8] sm:$0xff]  }
 0x2e3   :  { %v8041_v53 = vpop.f32.mrb[128].mxu0  ;;  %v8147_v19 = vpop.f32.mrb[124].mxu1  ;;  %8334 = vmatpush3.bf16.msra.mxu0 %v9509_v22  ;;  %v9518_v10 = vld [vmem:[%s12546_s4 + $0x100] sm:$0xff]  }
 0x2e4   :  { %v8042_v11 = vpop.f32.mrb[129].mxu0  ;;  %v8148_v3 = vpop.f32.mrb[125].mxu1  ;;  %8335 = vmatprep.subr.bf16.mxu0 %v9510_v46 }
 0x2e5   :  { %v8043_v9 = vadd.f32 %v8042_v11, %v8041_v53  ;;  %v8149_v18 = vadd.f32 %v8148_v3, %v8147_v19  ;;  %v8044_v28 = vpop.f32.mrb[130].mxu0  ;;  %v8150_v23 = vpop.f32.mrb[126].mxu1 }
 0x2e6   :  { %v8045_v36 = vpop.f32.mrb[131].mxu0  ;;  %v8151_v52 = vpop.f32.mrb[127].mxu1 }
 0x2e7   :  { %v2214_v51 = vadd.f32 %v8043_v9, %v10660_v31  ;;  %v8046_v49 = vadd.f32 %v8045_v36, %v8044_v28  ;;  %v8152_v20 = vadd.f32 %v8151_v52, %v8150_v23  ;;  %v10765_v43 = vadd.f32 %v8149_v18, %v2206_v40  ;;  %v9516_v31 = vld [vmem:[%s12546_s4 + $0x140] sm:$0xff]   ;;  %8336 = vmatpush3.bf16.msra.mxu0 %v9511_v57  ;;  %v9513_v23 = vld [vmem:[%s12546_s4 + $0x90] sm:$0xff]  }
 0x2e8   :  { %8445 = vmatprep.subr.bf16.mxu1 %v9516_v31  ;;  %v9515_v31 = vld [vmem:[%s12546_s4 + $0x98] sm:$0xff]  }
 0x2e9   :  { %v2217_v4 = vadd.f32 %v8046_v49, %v10670_v7  ;;  %v10777_v25 = vadd.f32 %v8152_v20, %v2209_v13  ;;  %v9512_v7 = vld [vmem:[%s12546_s4 + $0xd0] sm:$0xff]   ;;  %8446 = vmatpush3.bf16.msra.mxu1 %v9518_v10 }
 0x2ea   :  { %8337 = vmatprep.subr.bf16.mxu0 %v9512_v7 }
 0x2eb   :  { %v8047_v39 = vpop.f32.mrb[132].mxu0  ;;  %v8153_v40 = vpop.f32.mrb[128].mxu1  ;;  %8338 = vmatpush3.bf16.msra.mxu0 %v9513_v23 }
 0x2ec   :  { %v8048_v13 = vpop.f32.mrb[133].mxu0  ;;  %v8154_v53 = vpop.f32.mrb[129].mxu1  ;;  %8339 = vmatprep.subr.bf16.mxu0 %v9514_v1 }
 0x2ed   :  { %v8049_v19 = vadd.f32 %v8048_v13, %v8047_v39  ;;  %v8155_v11 = vadd.f32 %v8154_v53, %v8153_v40  ;;  %v8050_v3 = vpop.f32.mrb[134].mxu0  ;;  %v8156_v9 = vpop.f32.mrb[130].mxu1 }
 0x2ee   :  { %v8051_v18 = vpop.f32.mrb[135].mxu0  ;;  %v8157_v28 = vpop.f32.mrb[131].mxu1 }
 0x2ef   :  { %v2222_v36 = vadd.f32 %v8049_v19, %v10672_v17  ;;  %v8052_v52 = vadd.f32 %v8051_v18, %v8050_v3  ;;  %v8158_v49 = vadd.f32 %v8157_v28, %v8156_v9  ;;  %v10795_v20 = vadd.f32 %v8155_v11, %v2214_v51  ;;  %v9517_v51 = vld [vmem:[%s12546_s4 + $0xe0] sm:$0xff]   ;;  %8340 = vmatpush3.bf16.msra.mxu0 %v9515_v31  ;;  %v9520_v28 = vld [vmem:[%s12546_s4 + $0xe8] sm:$0xff]  }
 0x2f0   :  { %v9519_v19 = vld [vmem:[%s12546_s4 + $0xa0] sm:$0xff]   ;;  %8341 = vmatprep.subr.bf16.mxu0 %v9517_v51 }
 0x2f1   :  { %v2225_v22 = vadd.f32 %v8052_v52, %v10682_v44  ;;  %v10801_v46 = vadd.f32 %v8158_v49, %v2217_v4  ;;  %v9521_v49 = vld [vmem:[%s12546_s4 + $0xa8] sm:$0xff]  }
 0x2f3   :  { %v8053_v57 = vpop.f32.mrb[136].mxu0  ;;  %v8159_v17 = vpop.f32.mrb[132].mxu1  ;;  %8342 = vmatpush3.bf16.msra.mxu0 %v9519_v19 }
 0x2f4   :  { %v8054_v10 = vpop.f32.mrb[137].mxu0  ;;  %v8160_v39 = vpop.f32.mrb[133].mxu1  ;;  %8343 = vmatprep.subr.bf16.mxu0 %v9520_v28 }
 0x2f5   :  { %v8055_v40 = vadd.f32 %v8054_v10, %v8053_v57  ;;  %v8161_v7 = vadd.f32 %v8160_v39, %v8159_v17  ;;  %v8056_v13 = vpop.f32.mrb[138].mxu0  ;;  %v8162_v44 = vpop.f32.mrb[134].mxu1 }
 0x2f6   :  { %v8057_v4 = vpop.f32.mrb[139].mxu0  ;;  %v8163_v53 = vpop.f32.mrb[135].mxu1 }
 0x2f7   :  { %v2230_v11 = vadd.f32 %v8055_v40, %v10688_v24  ;;  %v8058_v3 = vadd.f32 %v8057_v4, %v8056_v13  ;;  %v8164_v9 = vadd.f32 %v8163_v53, %v8162_v44  ;;  %v10813_v18 = vadd.f32 %v8161_v7, %v2222_v36  ;;  %v9522_v36 = vld [vmem:[%s12546_s4 + $0xf0] sm:$0xff]   ;;  %8344 = vmatpush3.bf16.msra.mxu0 %v9521_v49 }
 0x2f8   :  { %v9523_v40 = vld [vmem:[%s12546_s4 + $0xb0] sm:$0xff]   ;;  %8345 = vmatprep.subr.bf16.mxu0 %v9522_v36 }
 0x2f9   :  { %v2233_v23 = vadd.f32 %v8058_v3, %v10696_v8  ;;  %v10819_v52 = vadd.f32 %v8164_v9, %v2225_v22 }
 0x2fb   :  { %v8059_v1 = vpop.f32.mrb[140].mxu0  ;;  %v8165_v24 = vpop.f32.mrb[136].mxu1  ;;  %8346 = vmatpush3.bf16.msra.mxu0 %v9523_v40 }
 0x2fc   :  { %v8060_v31 = vpop.f32.mrb[141].mxu0  ;;  %v8166_v57 = vpop.f32.mrb[137].mxu1 }
 0x2fd   :  { %v8061_v17 = vadd.f32 %v8060_v31, %v8059_v1  ;;  %v8167_v51 = vadd.f32 %v8166_v57, %v8165_v24  ;;  %v8062_v10 = vpop.f32.mrb[142].mxu0  ;;  %v8168_v8 = vpop.f32.mrb[138].mxu1 }
 0x2fe   :  { %v8063_v22 = vpop.f32.mrb[143].mxu0  ;;  %v8169_v39 = vpop.f32.mrb[139].mxu1 }
 0x2ff   :  { %v2238_v7 = vadd.f32 %v8061_v17, %v10698_v35  ;;  %v8064_v13 = vadd.f32 %v8063_v22, %v8062_v10  ;;  %v8170_v44 = vadd.f32 %v8169_v39, %v8168_v8  ;;  %v10831_v4 = vadd.f32 %v8167_v51, %v2230_v11 }
 0x301   :  { %v2241_v53 = vadd.f32 %v8064_v13, %v10702_v6  ;;  %v10834_v19 = vadd.f32 %v8170_v44, %v2233_v23 }
 0x303   :  { %v8065_v3 = vpop.f32.mrb[144].mxu0  ;;  %v8171_v9 = vpop.f32.mrb[140].mxu1 }
 0x304   :  { %v8066_v28 = vpop.f32.mrb[145].mxu0  ;;  %v8172_v49 = vpop.f32.mrb[141].mxu1 }
 0x305   :  { %v8067_v1 = vadd.f32 %v8066_v28, %v8065_v3  ;;  %v8173_v24 = vadd.f32 %v8172_v49, %v8171_v9  ;;  %v8068_v31 = vpop.f32.mrb[146].mxu0  ;;  %v8174_v57 = vpop.f32.mrb[142].mxu1 }
 0x306   :  { %v8069_v62 = vpop.f32.mrb[147].mxu0  ;;  %v8175_v35 = vpop.f32.mrb[143].mxu1 }
 0x307   :  { %v2246_v17 = vadd.f32 %v8067_v1, %v10704_v60  ;;  %v8070_v11 = vadd.f32 %v8069_v62, %v8068_v31  ;;  %v8176_v51 = vadd.f32 %v8175_v35, %v8174_v57  ;;  %v10837_v36 = vadd.f32 %v8173_v24, %v2238_v7 }
 0x309   :  { %v2249_v6 = vadd.f32 %v8070_v11, %v10706_v55  ;;  %v10840_v23 = vadd.f32 %v8176_v51, %v2241_v53 }
 0x30b   :  { %v8071_v10 = vpop.f32.mrb[148].mxu0  ;;  %v8177_v8 = vpop.f32.mrb[144].mxu1 }
 0x30c   :  { %v8072_v22 = vpop.f32.mrb[149].mxu0  ;;  %v8178_v39 = vpop.f32.mrb[145].mxu1 }
 0x30d   :  { %v8073_v40 = vadd.f32 %v8072_v22, %v8071_v10  ;;  %v8179_v13 = vadd.f32 %v8178_v39, %v8177_v8  ;;  %v8074_v44 = vpop.f32.mrb[150].mxu0  ;;  %v8180_v3 = vpop.f32.mrb[146].mxu1 }
 0x30e   :  { %v8075_v9 = vpop.f32.mrb[151].mxu0  ;;  %v8181_v28 = vpop.f32.mrb[147].mxu1 }
 0x30f   :  { %v2254_v60 = vadd.f32 %v8073_v40, %v10708_v34  ;;  %v8076_v62 = vadd.f32 %v8075_v9, %v8074_v44  ;;  %v8182_v49 = vadd.f32 %v8181_v28, %v8180_v3  ;;  %v10843_v7 = vadd.f32 %v8179_v13, %v2246_v17  ;;  %v9524_v3 = vld [vmem:[%s12546_s4 + $0xf8] sm:$0xff]  }
 0x310   :  { %8347 = vmatprep.subr.bf16.mxu0 %v9524_v3 }
 0x311   :  { %v2257_v55 = vadd.f32 %v8076_v62, %v10710_v56  ;;  %v10846_v53 = vadd.f32 %v8182_v49, %v2249_v6 }
 0x313   :  { %v8077_v1 = vpop.f32.mrb[152].mxu0  ;;  %v8183_v24 = vpop.f32.mrb[148].mxu1 }
 0x314   :  { %v8078_v31 = vpop.f32.mrb[153].mxu0  ;;  %v8184_v57 = vpop.f32.mrb[149].mxu1 }
 0x315   :  { %v8079_v35 = vadd.f32 %v8078_v31, %v8077_v1  ;;  %v8185_v11 = vadd.f32 %v8184_v57, %v8183_v24  ;;  %v8080_v51 = vpop.f32.mrb[154].mxu0  ;;  %v8186_v10 = vpop.f32.mrb[150].mxu1 }
 0x316   :  { %v8081_v8 = vpop.f32.mrb[155].mxu0  ;;  %v8187_v22 = vpop.f32.mrb[151].mxu1 }
 0x317   :  { %v2262_v34 = vadd.f32 %v8079_v35, %v10712_v15  ;;  %v8082_v39 = vadd.f32 %v8081_v8, %v8080_v51  ;;  %v8188_v40 = vadd.f32 %v8187_v22, %v8186_v10  ;;  %v10849_v17 = vadd.f32 %v8185_v11, %v2254_v60  ;;  %v9525_v15 = vld [vmem:[%s12546_s4 + $0xb8] sm:$0xff]   ;;  %v9526_v11 = vld [vmem:[%s12546_s4 + $0x148] sm:$0xff]  }
 0x318   :  { %8348 = vmatpush3.bf16.msra.mxu0 %v9525_v15  ;;  %8447 = vmatprep.subr.bf16.mxu1 %v9526_v11  ;;  %v9527_v8 = vld [vmem:[%s12546_s4 + $0x108] sm:$0xff]  }
 0x319   :  { %v2265_v56 = vadd.f32 %v8082_v39, %v10714_v33  ;;  %v10852_v6 = vadd.f32 %v8188_v40, %v2257_v55  ;;  %8448 = vmatpush3.bf16.msra.mxu1 %v9527_v8 }
 0x31b   :  { %v8083_v13 = vpop.f32.mrb[156].mxu0  ;;  %v8189_v44 = vpop.f32.mrb[152].mxu1 }
 0x31c   :  { %v8084_v9 = vpop.f32.mrb[157].mxu0  ;;  %v8190_v28 = vpop.f32.mrb[153].mxu1 }
 0x31d   :  { %v8085_v62 = vadd.f32 %v8084_v9, %v8083_v13  ;;  %v8191_v49 = vadd.f32 %v8190_v28, %v8189_v44  ;;  %v8086_v60 = vpop.f32.mrb[158].mxu0  ;;  %v8192_v1 = vpop.f32.mrb[154].mxu1 }
 0x31e   :  { %v8087_v33 = vpop.f32.mrb[159].mxu0  ;;  %v8193_v55 = vpop.f32.mrb[155].mxu1 }
 0x31f   :  { %v2270_v24 = vadd.f32 %v8085_v62, %v10716_v16  ;;  %v8088_v31 = vadd.f32 %v8087_v33, %v8086_v60  ;;  %v8194_v57 = vadd.f32 %v8193_v55, %v8192_v1  ;;  %v10861_v35 = vadd.f32 %v8191_v49, %v2262_v34 }
 0x321   :  { %v2273_v51 = vadd.f32 %v8088_v31, %v10719_v32  ;;  %v10867_v10 = vadd.f32 %v8194_v57, %v2265_v56 }
 0x323   :  { %v8195_v22 = vpop.f32.mrb[156].mxu1  ;;  %v8931_v39 = vpop.f32.mrb[160].mxu0 }
 0x324   :  { %v2480_v16 = vadd.f32 %v8931_v39, %v10728_v37  ;;  %v8196_v34 = vpop.f32.mrb[157].mxu1  ;;  %v2471_v40 = vpop.f32.mrb[161].mxu0 }
 0x325   :  { %v8197_v13 = vadd.f32 %v8196_v34, %v8195_v22  ;;  %v2472_v44 = vadd.f32 %v2471_v40, %v10723_v30  ;;  %v8198_v3 = vpop.f32.mrb[158].mxu1  ;;  %v8932_v9 = vpop.f32.mrb[162].mxu0  ;;  %v12654_v40 = vld [vmem:[#allocation7_spill] sm:$0xff] }
 0x326   :  { %v2483_v32 = vadd.f32 %v8932_v9, %v10731_v26  ;;  %v8199_v56 = vpop.f32.mrb[159].mxu1  ;;  %v2474_v28 = vpop.f32.mrb[163].mxu0  ;;  %v10886_v30 = vpack.c.bf16 %v2480_v16, %v2480_v16 }
 0x327   :  { %v10875_v15 = vpack.c.bf16 %v2472_v44, %v2472_v44  ;;  %v8200_v62 = vadd.f32 %v8199_v56, %v8198_v3  ;;  %v2475_v49 = vadd.f32 %v2474_v28, %v10726_v54  ;;  %v10878_v60 = vadd.f32 %v8197_v13, %v2270_v24 }
 0x328   :  { %v10891_v24 = vpack.c.bf16 %v2483_v32, %v2483_v32  ;;  %v9529_v32 = vld [vmem:[%s12546_s4 + $0x110] sm:$0xff]  }
 0x329   :  { %v10880_v1 = vpack.c.bf16 %v2475_v49, %v2475_v49  ;;  %2694 = vrot.lane.b32.xlu1 %v10875_v15, %s9713_s15  ;;  %v10884_v37 = vadd.f32 %v8200_v62, %v2273_v51 }
 0x32b   :  { %v8935_v33 = vpop.f32.mrb[164].mxu0  ;;  %v8237_v26 = vpop.f32.mrb[160].mxu1  ;;  %2696 = vrot.lane.b32.xlu0 %v10880_v1, %s9713_s15 }
 0x32c   :  { %v2496_v55 = vadd.f32 %v8935_v33, %v10740_v61  ;;  %v2487_v31 = vpop.f32.mrb[165].mxu0  ;;  %v8238_v54 = vpop.f32.mrb[161].mxu1  ;;  %v9528_v61 = vld [vmem:[%s12546_s4 + $0x150] sm:$0xff]  }
 0x32d   :  { %v2488_v57 = vadd.f32 %v2487_v31, %v10735_v14  ;;  %v8239_v11 = vadd.f32 %v8238_v54, %v8237_v26  ;;  %v8936_v8 = vpop.f32.mrb[166].mxu0  ;;  %v8240_v22 = vpop.f32.mrb[162].mxu1  ;;  %2698 = vrot.lane.b32.xlu1 %v10886_v30, %s9713_s15  ;;  %8449 = vmatprep.subr.bf16.mxu1 %v9528_v61 }
 0x32e   :  { %v2499_v51 = vadd.f32 %v8936_v8, %v10743_v38  ;;  %v2490_v39 = vpop.f32.mrb[167].mxu0  ;;  %v8241_v16 = vpop.f32.mrb[163].mxu1  ;;  %v12655_v38 = vld [vmem:[#allocation9_spill] sm:$0xff]  ;;  %v10918_v56 = vpack.c.bf16 %v2496_v55, %v2496_v55  ;;  %8450 = vmatpush3.bf16.msra.mxu1 %v9529_v32 }
 0x32f   :  { %v10900_v34 = vpack.c.bf16 %v2488_v57, %v2488_v57  ;;  %v10903_v13 = vadd.f32 %v8239_v11, %v12654_v40  ;;  %v2491_v14 = vadd.f32 %v2490_v39, %v10738_v0  ;;  %v8242_v44 = vadd.f32 %v8241_v16, %v8240_v22  ;;  %2700 = vrot.lane.b32.xlu0 %v10891_v24, %s9713_s15 }
 0x330   :  { %v10925_v26 = vpack.c.bf16 %v2499_v51, %v2499_v51  ;;  %v12656_v51 = vld [vmem:[#allocation6_spill] sm:$0xff] }
 0x331   :  { %v10908_v3 = vpack.c.bf16 %v2491_v14, %v2491_v14  ;;  %v10911_v9 = vadd.f32 %v8242_v44, %v12655_v38  ;;  %2702 = vrot.lane.b32.xlu1 %v10900_v34, %s9713_s15  ;;  %v12657_v14 = vld [vmem:[#allocation8_spill] sm:$0xff] }
 0x333   :  { %v8939_v0 = vpop.f32.mrb[168].mxu0  ;;  %v8243_v28 = vpop.f32.mrb[164].mxu1  ;;  %2704 = vrot.lane.b32.xlu0 %v10908_v3, %s9713_s15 }
 0x334   :  { %v10923_v62 = vadd.f32 %v8939_v0, %v10752_v2  ;;  %v2503_v49 = vpop.f32.mrb[169].mxu0  ;;  %v8244_v33 = vpop.f32.mrb[165].mxu1 }
 0x335   :  { %v10928_v31 = vadd.f32 %v2503_v49, %v10747_v12  ;;  %v8245_v54 = vadd.f32 %v8244_v33, %v8243_v28  ;;  %v8940_v57 = vpop.f32.mrb[170].mxu0  ;;  %v8246_v55 = vpop.f32.mrb[166].mxu1  ;;  %2706 = vrot.lane.b32.xlu1 %v10918_v56, %s9713_s15 }
 0x336   :  { %v10933_v11 = vadd.f32 %v8940_v57, %v10755_v29  ;;  %v2506_v8 = vpop.f32.mrb[171].mxu0  ;;  %v8247_v22 = vpop.f32.mrb[167].mxu1 }
 0x337   :  { %v10937_v2 = vpack.c.bf16 %v10928_v31, %v10928_v31  ;;  %v10940_v39 = vadd.f32 %v12656_v51, %v8245_v54  ;;  %v10943_v12 = vadd.f32 %v2506_v8, %v10750_v27  ;;  %v8248_v16 = vadd.f32 %v8247_v22, %v8246_v55  ;;  %2708 = vrot.lane.b32.xlu0 %v10925_v26, %s9713_s15 }
 0x338   :  { %v10962_v27 = vpack.c.bf16 %v10923_v62, %v10923_v62  ;;  %v10971_v28 = vpack.c.bf16 %v10933_v11, %v10933_v11 }
 0x339   :  { %v10953_v40 = vpack.c.bf16 %v10943_v12, %v10943_v12  ;;  %v10956_v44 = vadd.f32 %v12657_v14, %v8248_v16  ;;  %2710 = vrot.lane.b32.xlu1 %v10937_v2, %s9713_s15 }
 0x33b   :  { %v8943_v38 = vpop.f32.mrb[172].mxu0  ;;  %2712 = vrot.lane.b32.xlu0 %v10953_v40, %s9713_s15 }
 0x33c   :  { %v10967_v32 = vadd.f32 %v8943_v38, %v10765_v43  ;;  %v2519_v0 = vpop.f32.mrb[173].mxu0  ;;  %v9530_v43 = vld [vmem:[%s12546_s4 + $0x158] sm:$0xff]  }
 0x33d   :  { %v10974_v49 = vadd.f32 %v2519_v0, %v10759_v5  ;;  %v8944_v33 = vpop.f32.mrb[174].mxu0  ;;  %2714 = vrot.lane.b32.xlu1 %v10962_v27, %s9713_s15  ;;  %8451 = vmatprep.subr.bf16.mxu1 %v9530_v43 }
 0x33e   :  { %v10979_v54 = vadd.f32 %v8944_v33, %v10777_v25  ;;  %v2522_v57 = vpop.f32.mrb[175].mxu0  ;;  %v11008_v51 = vpack.c.bf16 %v10967_v32, %v10967_v32 }
 0x33f   :  { %v10986_v55 = vpack.c.bf16 %v10974_v49, %v10974_v49  ;;  %v10989_v8 = vadd.f32 %v2522_v57, %v10762_v21  ;;  %2716 = vrot.lane.b32.xlu0 %v10971_v28, %s9713_s15  ;;  %v9531_v21 = vld [vmem:[%s12546_s4 + $0x118] sm:$0xff]  }
 0x340   :  { %8452 = vmatpush3.bf16.msra.mxu1 %v9531_v21  ;;  %v11017_v0 = vpack.c.bf16 %v10979_v54, %v10979_v54 }
 0x341   :  { %v10999_v22 = vpack.c.bf16 %v10989_v8, %v10989_v8  ;;  %2718 = vrot.lane.b32.xlu1 %v10986_v55, %s9713_s15 }
 0x343   :  { %v8947_v16 = vpop.f32.mrb[176].mxu0  ;;  %2720 = vrot.lane.b32.xlu0 %v10999_v22, %s9713_s15 }
 0x344   :  { %v11013_v14 = vadd.f32 %v8947_v16, %v10813_v18  ;;  %v2535_v38 = vpop.f32.mrb[177].mxu0 }
 0x345   :  { %v11020_v33 = vadd.f32 %v2535_v38, %v10795_v20  ;;  %v8948_v57 = vpop.f32.mrb[178].mxu0  ;;  %2722 = vrot.lane.b32.xlu1 %v11008_v51, %s9713_s15 }
 0x346   :  { %12658 = vst [vmem:[#allocation7_spill] sm:$0xff] %v11013_v14  ;;  %v11025_v43 = vadd.f32 %v8948_v57, %v10819_v52  ;;  %v2538_v5 = vpop.f32.mrb[179].mxu0 }
 0x347   :  { %12659 = vst [vmem:[#allocation9_spill] sm:$0xff] %v11020_v33  ;;  %v11029_v18 = vpack.c.bf16 %v11020_v33, %v11020_v33  ;;  %v11032_v21 = vadd.f32 %v2538_v5, %v10801_v46  ;;  %2724 = vrot.lane.b32.xlu0 %v11017_v0, %s9713_s15  ;;  %v11048_v46 = vpack.c.bf16 %v11013_v14, %v11013_v14  ;;  %v9544_v33 = vld [vmem:[%s12546_s4 + $0x1d0] sm:$0xff]  }
 0x348   :  { %12660 = vst [vmem:[#allocation6_spill] sm:$0xff] %v11025_v43  ;;  %v11057_v20 = vpack.c.bf16 %v11025_v43, %v11025_v43 }
 0x349   :  { %v11042_v52 = vpack.c.bf16 %v11032_v21, %v11032_v21  ;;  %2726 = vrot.lane.b32.xlu1 %v11029_v18, %s9713_s15 }
 0x34b   :  { %v8951_v5 = vpop.f32.mrb[180].mxu0  ;;  %2728 = vrot.lane.b32.xlu0 %v11042_v52, %s9713_s15 }
 0x34c   :  { %v11053_v38 = vadd.f32 %v8951_v5, %v10837_v36  ;;  %v2551_v57 = vpop.f32.mrb[181].mxu0  ;;  %v9532_v36 = vld [vmem:[%s12546_s4 + $0x160] sm:$0xff]  }
 0x34d   :  { %v11060_v16 = vadd.f32 %v2551_v57, %v10831_v4  ;;  %v8952_v25 = vpop.f32.mrb[182].mxu0  ;;  %2730 = vrot.lane.b32.xlu1 %v11048_v46, %s9713_s15  ;;  %8453 = vmatprep.subr.bf16.mxu1 %v9532_v36 }
 0x34e   :  { %12661 = vst [vmem:[#allocation8_spill] sm:$0xff] %v11053_v38  ;;  %v11065_v29 = vadd.f32 %v8952_v25, %v10840_v23  ;;  %v2554_v61 = vpop.f32.mrb[183].mxu0 }
 0x34f   :  { %12662 = vst [vmem:[#allocation32_spill] sm:$0xff] %v11060_v16  ;;  %v11072_v5 = vpack.c.bf16 %v11060_v16, %v11060_v16  ;;  %v11075_v14 = vadd.f32 %v2554_v61, %v10834_v19  ;;  %2732 = vrot.lane.b32.xlu0 %v11057_v20, %s9713_s15  ;;  %v9533_v19 = vld [vmem:[%s12546_s4 + $0x120] sm:$0xff]   ;;  %v11094_v61 = vpack.c.bf16 %v11053_v38, %v11053_v38 }
 0x350   :  { %12663 = vst [vmem:[#allocation33_spill] sm:$0xff] %v11065_v29  ;;  %8454 = vmatpush3.bf16.msra.mxu1 %v9533_v19  ;;  %v11103_v23 = vpack.c.bf16 %v11065_v29, %v11065_v29 }
 0x351   :  { %12664 = vst [vmem:[#allocation34_spill] sm:$0xff] %v11075_v14  ;;  %v11085_v25 = vpack.c.bf16 %v11075_v14, %v11075_v14  ;;  %2734 = vrot.lane.b32.xlu1 %v11072_v5, %s9713_s15 }
 0x353   :  { %2736 = vrot.lane.b32.xlu0 %v11085_v25, %s9713_s15  ;;  %v8955_v57 = vpop.f32.mrb[184].mxu0 }
 0x354   :  { %v11099_v36 = vadd.f32 %v8955_v57, %v10849_v17  ;;  %v2567_v4 = vpop.f32.mrb[185].mxu0 }
 0x355   :  { %v11106_v16 = vadd.f32 %v2567_v4, %v10843_v7  ;;  %2738 = vrot.lane.b32.xlu1 %v11094_v61, %s9713_s15  ;;  %v8956_v38 = vpop.f32.mrb[186].mxu0 }
 0x356   :  { %12665 = vst [vmem:[#allocation35_spill] sm:$0xff] %v11099_v36  ;;  %v11111_v14 = vadd.f32 %v8956_v38, %v10852_v6  ;;  %v2570_v43 = vpop.f32.mrb[187].mxu0  ;;  %v9534_v38 = vld [vmem:[%s12546_s4 + $0x168] sm:$0xff]  }
 0x357   :  { %12666 = vst [vmem:[#allocation36_spill] sm:$0xff] %v11106_v16  ;;  %v11115_v17 = vpack.c.bf16 %v11106_v16, %v11106_v16  ;;  %v11118_v19 = vadd.f32 %v2570_v43, %v10846_v53  ;;  %2740 = vrot.lane.b32.xlu0 %v11103_v23, %s9713_s15  ;;  %v11134_v53 = vpack.c.bf16 %v11099_v36, %v11099_v36 }
 0x358   :  { %12667 = vst [vmem:[#allocation37_spill] sm:$0xff] %v11111_v14  ;;  %v11146_v4 = vpack.c.bf16 %v11111_v14, %v11111_v14  ;;  %8455 = vmatprep.subr.bf16.mxu1 %v9534_v38  ;;  %v9536_v38 = vld [vmem:[%s12546_s4 + $0x170] sm:$0xff]  }
 0x359   :  { %12668 = vst [vmem:[#allocation38_spill] sm:$0xff] %v11118_v19  ;;  %v11128_v6 = vpack.c.bf16 %v11118_v19, %v11118_v19  ;;  %2742 = vrot.lane.b32.xlu1 %v11115_v17, %s9713_s15 }
 0x35b   :  { %v8959_v43 = vpop.f32.mrb[188].mxu0  ;;  %2744 = vrot.lane.b32.xlu0 %v11128_v6, %s9713_s15 }
 0x35c   :  { %v11142_v57 = vadd.f32 %v8959_v43, %v10878_v60  ;;  %v2583_v7 = vpop.f32.mrb[189].mxu0 }
 0x35d   :  { %v11149_v16 = vadd.f32 %v2583_v7, %v10861_v35  ;;  %v8960_v36 = vpop.f32.mrb[190].mxu0  ;;  %2746 = vrot.lane.b32.xlu1 %v11134_v53, %s9713_s15  ;;  %v9535_v7 = vld [vmem:[%s12546_s4 + $0x128] sm:$0xff]   ;;  %v9538_v35 = vld [vmem:[%s12546_s4 + $0x178] sm:$0xff]  }
 0x35e   :  { %12669 = vst [vmem:[#allocation39_spill] sm:$0xff] %v11142_v57  ;;  %v11154_v19 = vadd.f32 %v8960_v36, %v10884_v37  ;;  %v2586_v29 = vpop.f32.mrb[191].mxu0  ;;  %8456 = vmatpush3.bf16.msra.mxu1 %v9535_v7  ;;  %v9537_v7 = vld [vmem:[%s12546_s4 + $0x130] sm:$0xff]   ;;  %v9540_v37 = vld [vmem:[%s12546_s4 + $0x1c0] sm:$0xff]  }
 0x35f   :  { %12670 = vst [vmem:[#allocation40_spill] sm:$0xff] %v11149_v16  ;;  %v11158_v60 = vpack.c.bf16 %v11149_v16, %v11149_v16  ;;  %v11161_v43 = vadd.f32 %v2586_v29, %v10867_v10  ;;  %2748 = vrot.lane.b32.xlu0 %v11146_v4, %s9713_s15  ;;  %v11180_v10 = vpack.c.bf16 %v11142_v57, %v11142_v57  ;;  %v9539_v57 = vld [vmem:[%s12546_s4 + $0x138] sm:$0xff]  }
 0x360   :  { %12671 = vst [vmem:[#allocation41_spill] sm:$0xff] %v11154_v19  ;;  %v11186_v29 = vpack.c.bf16 %v11154_v19, %v11154_v19  ;;  %8457 = vmatprep.subr.bf16.mxu1 %v9536_v38  ;;  %8557 = vmatprep.subr.bf16.mxu0 %v9540_v37  ;;  %v11210_v38 = vld [vmem:[%s12546_s4 + $0x200] sm:$0xff]  }
 0x361   :  { %12672 = vst [vmem:[#allocation42_spill] sm:$0xff] %v11161_v43  ;;  %v11174_v36 = vpack.c.bf16 %v11161_v43, %v11161_v43  ;;  %2750 = vrot.lane.b32.xlu1 %v11158_v60, %s9713_s15  ;;  %v9541_v43 = vld [vmem:[%s12546_s4 + $0x180] sm:$0xff]  }
 0x362   :  { %8458 = vmatpush3.bf16.msra.mxu1 %v9537_v7 }
 0x363   :  { %2752 = vrot.lane.b32.xlu0 %v11174_v36, %s9713_s15  ;;  %8459 = vmatprep.subr.bf16.mxu1 %v9538_v35 }
 0x365   :  { %2754 = vrot.lane.b32.xlu1 %v11180_v10, %s9713_s15 }
 0x366   :  { %8460 = vmatpush3.bf16.msra.mxu1 %v9539_v57  ;;  %v9542_v57 = vld [vmem:[%s12546_s4 + $0x1c8] sm:$0xff]  }
 0x367   :  { %2756 = vrot.lane.b32.xlu0 %v11186_v29, %s9713_s15  ;;  %8961 = vmatprep.subr.bf16.mxu1 %v11210_v38  ;;  %s9688_s15 = scalar_lea.vmem %s7005_s11, 128 }
 0x368   :  { %p9689_p0 = scmp.ne.s32.totalorder %s7005_s11, %s9688_s15  ;;  %p9694_p2 = scmp.lt.s32.totalorder %s9688_s15, %s9688_s15 }
 0x36a   :  { %p9695_p3 = por %p9694_p2, %p9693_p1 }
 0x36c   :  { %p9696_p4 = pnand %p9695_p3, %p9689_p0 }
 0x39b   :  { %v2695_v7 = vpop.permute.xlu1 %2694 }
 0x39c   :  { %v2759_v35 = vsel %vm954_vm2, 0, %v2695_v7 }
 0x39d   :  { %v7293_v19 = vcombine.low %v9929_v45, %v2759_v35  ;;  %v2697_v16 = vpop.permute.xlu0 %2696  ;;  %v9543_v35 = vld [vmem:[%s12546_s4 + $0x188] sm:$0xff]  }
 0x39e   :  { %v2762_v14 = vsel %vm954_vm2, %v10875_v15, %v2697_v16 }
 0x39f   :  { %3595 = vmatprep.mubr.bf16.mxu1 %v7293_v19  ;;  %v2699_v37 = vpop.permute.xlu1 %2698  ;;  %3740 = vmatprep.mubr.bf16.mxu0 %v7293_v19 }
 0x3a0   :  { %v2765_v7 = vsel %vm954_vm2, %v10880_v1, %v2699_v37  ;;  %3596 = vmatmul.mubr.bf16.gmra.mrb[168].mxu1 %v9936_v47  ;;  %3741 = vmatmul.mubr.bf16.vlgmr.msra.gmra.mrb[192].mxu0 %v9936_v47  ;;  %v9546_v37 = vld [vmem:[%s12546_s4 + $0x1d8] sm:$0xff]  }
 0x3a1   :  { %v11227_v45 = vcombine.low %v2762_v14, %v2765_v7  ;;  %8558 = vmatpush3.bf16.msra.mxu0 %v9541_v43  ;;  %v2701_v15 = vpop.permute.xlu0 %2700  ;;  %v9545_v43 = vld [vmem:[%s12546_s4 + $0x190] sm:$0xff]  }
 0x3a2   :  { %8559 = vmatprep.subr.bf16.mxu0 %v9542_v57  ;;  %v2768_v14 = vsel %vm954_vm2, %v10886_v30, %v2701_v15  ;;  %v9547_v30 = vld [vmem:[%s12546_s4 + $0x198] sm:$0xff]   ;;  %v9550_v15 = vld [vmem:[%s12546_s4 + $0x1a0] sm:$0xff]  }
 0x3a3   :  { %v2703_v16 = vpop.permute.xlu1 %2702  ;;  %3603 = vmatprep.mubr.bf16.mxu1 %v11227_v45  ;;  %3748 = vmatprep.mubr.bf16.mxu0 %v11227_v45 }
 0x3a4   :  { %v2771_v1 = vsel %vm954_vm2, %v10891_v24, %v2703_v16 }
 0x3a5   :  { %8560 = vmatpush3.bf16.msra.mxu0 %v9543_v35  ;;  %v11244_v57 = vcombine.low %v2768_v14, %v2771_v1  ;;  %v2705_v24 = vpop.permute.xlu0 %2704  ;;  %v9551_v1 = vld [vmem:[%s12546_s4 + $0x1e8] sm:$0xff]  }
 0x3a6   :  { %8561 = vmatprep.subr.bf16.mxu0 %v9544_v33  ;;  %v9549_v33 = vld [vmem:[%s12546_s4 + $0x1e0] sm:$0xff]  }
 0x3a7   :  { %v2707_v7 = vpop.permute.xlu1 %2706 }
 0x3a8   :  { %3604 = vmatmul.mubr.bf16.gmra.mrb[172].mxu1 %v7293_v19  ;;  %3749 = vmatmul.mubr.bf16.gmra.mrb[196].mxu0 %v7293_v19  ;;  %v2777_v35 = vsel %vm954_vm2, %v10908_v3, %v2707_v7  ;;  %v2774_v19 = vsel %vm954_vm2, %v10900_v34, %v2705_v24  ;;  %v9552_v34 = vld [vmem:[%s12546_s4 + $0x1a8] sm:$0xff]  }
 0x3a9   :  { %3611 = vmatprep.mubr.bf16.mxu1 %v11244_v57  ;;  %3756 = vmatprep.mubr.bf16.mxu0 %v11244_v57  ;;  %v11264_v16 = vcombine.low %v2774_v19, %v2777_v35  ;;  %v2709_v14 = vpop.permute.xlu0 %2708 }
 0x3aa   :  { %8562 = vmatpush3.bf16.msra.mxu0 %v9545_v43  ;;  %v9553_v43 = vld [vmem:[%s12546_s4 + $0x1f0] sm:$0xff]   ;;  %v2780_v7 = vsel %vm954_vm2, %v10918_v56, %v2709_v14  ;;  %v9556_v56 = vld [vmem:[%s12546_s4 + $0x1b8] sm:$0xff]  }
 0x3ab   :  { %8563 = vmatprep.subr.bf16.mxu0 %v9546_v37  ;;  %v2711_v3 = vpop.permute.xlu1 %2710 }
 0x3ac   :  { %v2783_v37 = vsel %vm954_vm2, %v10925_v26, %v2711_v3 }
 0x3ad   :  { %v11286_v24 = vcombine.low %v2780_v7, %v2783_v37  ;;  %v2713_v35 = vpop.permute.xlu0 %2712 }
 0x3ae   :  { %8564 = vmatpush3.bf16.msra.mxu0 %v9547_v30  ;;  %v9554_v30 = vld [vmem:[%s12546_s4 + $0x1b0] sm:$0xff]  }
 0x3af   :  { %8565 = vmatprep.subr.bf16.mxu0 %v9549_v33  ;;  %v9555_v33 = vld [vmem:[%s12546_s4 + $0x1f8] sm:$0xff]   ;;  %v2715_v26 = vpop.permute.xlu1 %2714 }
 0x3b0   :  { %3612 = vmatmul.mubr.bf16.gmra.mrb[176].mxu1 %v11227_v45  ;;  %3757 = vmatmul.mubr.bf16.gmra.mrb[200].mxu0 %v11227_v45  ;;  %v2789_v19 = vsel %vm954_vm2, %v10953_v40, %v2715_v26 }
 0x3b1   :  { %3619 = vmatprep.mubr.bf16.mxu1 %v11264_v16  ;;  %3764 = vmatprep.mubr.bf16.mxu0 %v11264_v16 }
 0x3b2   :  { %8566 = vmatpush3.bf16.msra.mxu0 %v9550_v15  ;;  %v2786_v15 = vsel %vm954_vm2, %v10937_v2, %v2713_v35 }
 0x3b3   :  { %8567 = vmatprep.subr.bf16.mxu0 %v9551_v1  ;;  %v11302_v1 = vcombine.low %v2786_v15, %v2789_v19  ;;  %v2719_v3 = vpop.permute.xlu1 %2718 }
 0x3b4   :  { %v2795_v14 = vsel %vm954_vm2, %v10971_v28, %v2719_v3 }
 0x3b6   :  { %8568 = vmatpush3.bf16.msra.mxu0 %v9552_v34  ;;  %v2717_v34 = vpop.permute.xlu0 %2716 }
 0x3b7   :  { %8569 = vmatprep.subr.bf16.mxu0 %v9553_v43  ;;  %v2792_v40 = vsel %vm954_vm2, %v10962_v27, %v2717_v34  ;;  %v2723_v43 = vpop.permute.xlu1 %2722 }
 0x3b8   :  { %3620 = vmatmul.mubr.bf16.gmra.mrb[180].mxu1 %v11244_v57  ;;  %3765 = vmatmul.mubr.bf16.gmra.mrb[204].mxu0 %v11244_v57  ;;  %v11312_v2 = vcombine.low %v2792_v40, %v2795_v14  ;;  %v2801_v7 = vsel %vm954_vm2, %v10999_v22, %v2723_v43 }
 0x3b9   :  { %3627 = vmatprep.mubr.bf16.mxu1 %v11286_v24  ;;  %3772 = vmatprep.mubr.bf16.mxu0 %v11286_v24 }
 0x3ba   :  { %8570 = vmatpush3.bf16.msra.mxu0 %v9554_v30  ;;  %v2721_v37 = vpop.permute.xlu0 %2720 }
 0x3bb   :  { %8571 = vmatprep.subr.bf16.mxu0 %v9555_v33  ;;  %v2798_v28 = vsel %vm954_vm2, %v10986_v55, %v2721_v37  ;;  %v2727_v27 = vpop.permute.xlu1 %2726 }
 0x3bc   :  { %v11322_v30 = vcombine.low %v2798_v28, %v2801_v7  ;;  %v2807_v26 = vsel %vm954_vm2, %v11017_v0, %v2727_v27 }
 0x3be   :  { %8572 = vmatpush3.bf16.msra.mxu0 %v9556_v56  ;;  %v2725_v33 = vpop.permute.xlu0 %2724 }
 0x3bf   :  { %v2804_v22 = vsel %vm954_vm2, %v11008_v51, %v2725_v33  ;;  %v2731_v55 = vpop.permute.xlu1 %2730 }
 0x3c0   :  { %3628 = vmatmul.mubr.bf16.gmra.mrb[184].mxu1 %v11264_v16  ;;  %3773 = vmatmul.mubr.bf16.gmra.mrb[208].mxu0 %v11264_v16  ;;  %v11332_v56 = vcombine.low %v2804_v22, %v2807_v26  ;;  %v2813_v19 = vsel %vm954_vm2, %v11042_v52, %v2731_v55 }
 0x3c1   :  { %3635 = vmatprep.mubr.bf16.mxu1 %v11302_v1  ;;  %3780 = vmatprep.mubr.bf16.mxu0 %v11302_v1 }
 0x3c2   :  { %v2729_v35 = vpop.permute.xlu0 %2728 }
 0x3c3   :  { %v2810_v0 = vsel %vm954_vm2, %v11029_v18, %v2729_v35  ;;  %v2735_v51 = vpop.permute.xlu1 %2734 }
 0x3c4   :  { %v11342_v15 = vcombine.low %v2810_v0, %v2813_v19  ;;  %v2819_v34 = vsel %vm954_vm2, %v11057_v20, %v2735_v51 }
 0x3c6   :  { %v2733_v3 = vpop.permute.xlu0 %2732 }
 0x3c7   :  { %v2816_v52 = vsel %vm954_vm2, %v11048_v46, %v2733_v3  ;;  %v2739_v18 = vpop.permute.xlu1 %2738 }
 0x3c8   :  { %3636 = vmatmul.mubr.bf16.gmra.mrb[188].mxu1 %v11286_v24  ;;  %3781 = vmatmul.mubr.bf16.gmra.mrb[212].mxu0 %v11286_v24  ;;  %v11352_v14 = vcombine.low %v2816_v52, %v2819_v34  ;;  %v2825_v43 = vsel %vm954_vm2, %v11085_v25, %v2739_v18 }
 0x3c9   :  { %3643 = vmatprep.mubr.bf16.mxu1 %v11312_v2  ;;  %3788 = vmatprep.mubr.bf16.mxu0 %v11312_v2 }
 0x3ca   :  { %v2737_v40 = vpop.permute.xlu0 %2736 }
 0x3cb   :  { %v2822_v20 = vsel %vm954_vm2, %v11072_v5, %v2737_v40  ;;  %v2743_v46 = vpop.permute.xlu1 %2742 }
 0x3cc   :  { %v11362_v37 = vcombine.low %v2822_v20, %v2825_v43  ;;  %v2831_v28 = vsel %vm954_vm2, %v11103_v23, %v2743_v46 }
 0x3ce   :  { %v2741_v7 = vpop.permute.xlu0 %2740 }
 0x3cf   :  { %v2828_v25 = vsel %vm954_vm2, %v11094_v61, %v2741_v7  ;;  %v2747_v5 = vpop.permute.xlu1 %2746 }
 0x3d0   :  { %3644 = vmatmul.mubr.bf16.gmra.mrb[192].mxu1 %v11302_v1  ;;  %3789 = vmatmul.mubr.bf16.gmra.mrb[216].mxu0 %v11302_v1  ;;  %v11372_v27 = vcombine.low %v2828_v25, %v2831_v28  ;;  %v2837_v26 = vsel %vm954_vm2, %v11128_v6, %v2747_v5 }
 0x3d1   :  { %3651 = vmatprep.mubr.bf16.mxu1 %v11322_v30  ;;  %3796 = vmatprep.mubr.bf16.mxu0 %v11322_v30 }
 0x3d2   :  { %v2745_v33 = vpop.permute.xlu0 %2744 }
 0x3d3   :  { %v2834_v23 = vsel %vm954_vm2, %v11115_v17, %v2745_v33  ;;  %v2751_v61 = vpop.permute.xlu1 %2750 }
 0x3d4   :  { %v11382_v22 = vcombine.low %v2834_v23, %v2837_v26  ;;  %v2843_v35 = vsel %vm954_vm2, %v11146_v4, %v2751_v61 }
 0x3d6   :  { %v2749_v55 = vpop.permute.xlu0 %2748 }
 0x3d7   :  { %v2840_v6 = vsel %vm954_vm2, %v11134_v53, %v2749_v55  ;;  %v2755_v17 = vpop.permute.xlu1 %2754  ;;  %v9557_v53 = vld [vmem:[%s12546_s4 + $0x208] sm:$0xff]  }
 0x3d8   :  { %3652 = vmatmul.mubr.bf16.gmra.mrb[196].mxu1 %v11312_v2  ;;  %3797 = vmatmul.mubr.bf16.gmra.mrb[220].mxu0 %v11312_v2  ;;  %v11392_v19 = vcombine.low %v2840_v6, %v2843_v35  ;;  %v2849_v51 = vsel %vm954_vm2, %v11174_v36, %v2755_v17  ;;  %v9559_v36 = vld [vmem:[%s12546_s4 + $0x218] sm:$0xff]  }
 0x3d9   :  { %3659 = vmatprep.mubr.bf16.mxu1 %v11332_v56  ;;  %3804 = vmatprep.mubr.bf16.mxu0 %v11332_v56 }
 0x3da   :  { %v2753_v0 = vpop.permute.xlu0 %2752 }
 0x3db   :  { %v2846_v4 = vsel %vm954_vm2, %v11158_v60, %v2753_v0  ;;  %v9558_v60 = vld [vmem:[%s12546_s4 + $0x210] sm:$0xff]  }
 0x3dc   :  { %v11405_v3 = vcombine.low %v2846_v4, %v2849_v51 }
 0x3e0   :  { %3660 = vmatmul.mubr.bf16.gmra.mrb[200].mxu1 %v11322_v30  ;;  %3805 = vmatmul.mubr.bf16.gmra.mrb[224].mxu0 %v11322_v30 }
 0x3e1   :  { %3667 = vmatprep.mubr.bf16.mxu1 %v11342_v15  ;;  %3812 = vmatprep.mubr.bf16.mxu0 %v11342_v15 }
 0x3e8   :  { %3668 = vmatmul.mubr.bf16.gmra.mrb[204].mxu1 %v11332_v56  ;;  %3813 = vmatmul.mubr.bf16.gmra.mrb[228].mxu0 %v11332_v56 }
 0x3e9   :  { %3675 = vmatprep.mubr.bf16.mxu1 %v11352_v14  ;;  %3820 = vmatprep.mubr.bf16.mxu0 %v11352_v14 }
 0x3f0   :  { %3676 = vmatmul.mubr.bf16.gmra.mrb[208].mxu1 %v11342_v15  ;;  %3821 = vmatmul.mubr.bf16.gmra.mrb[232].mxu0 %v11342_v15 }
 0x3f1   :  { %3683 = vmatprep.mubr.bf16.mxu1 %v11362_v37  ;;  %3828 = vmatprep.mubr.bf16.mxu0 %v11362_v37 }
 0x3f8   :  { %3684 = vmatmul.mubr.bf16.gmra.mrb[212].mxu1 %v11352_v14  ;;  %3829 = vmatmul.mubr.bf16.gmra.mrb[236].mxu0 %v11352_v14 }
 0x3f9   :  { %3691 = vmatprep.mubr.bf16.mxu1 %v11372_v27  ;;  %3836 = vmatprep.mubr.bf16.mxu0 %v11372_v27 }
 0x400   :  { %3692 = vmatmul.mubr.bf16.gmra.mrb[216].mxu1 %v11362_v37  ;;  %3837 = vmatmul.mubr.bf16.gmra.mrb[240].mxu0 %v11362_v37 }
 0x401   :  { %3699 = vmatprep.mubr.bf16.mxu1 %v11382_v22  ;;  %3844 = vmatprep.mubr.bf16.mxu0 %v11382_v22 }
 0x408   :  { %3700 = vmatmul.mubr.bf16.gmra.mrb[220].mxu1 %v11372_v27  ;;  %3845 = vmatmul.mubr.bf16.gmra.mrb[244].mxu0 %v11372_v27 }
 0x409   :  { %3852 = vmatprep.mubr.bf16.mxu0 %v11392_v19  ;;  %3901 = vmatprep.mubr.bf16.mxu1 %v11244_v57 }
 0x410   :  { %3853 = vmatmul.mubr.bf16.gmra.mrb[248].mxu0 %v11382_v22  ;;  %3902 = vmatmul.mubr.bf16.vlgmr.msra.gmra.mrb[224].mxu1 %v11227_v45  ;;  %v9560_v45 = vld [vmem:[%s12549_s7] sm:$0xff]  }
 0x411   :  { %8962 = vmatpush3.bf16.msra.mxu1 %v11210_v38  ;;  %3860 = vmatprep.mubr.bf16.mxu0 %v11405_v3  ;;  %v2757_v38 = vpop.permute.xlu0 %2756 }
 0x412   :  { %3909 = vmatprep.mubr.bf16.mxu1 %v11264_v16  ;;  %8963 = vmatprep.subr.bf16.mxu1 %v9557_v53 }
 0x415   :  { %8964 = vmatpush3.bf16.msra.mxu1 %v9557_v53 }
 0x416   :  { %8965 = vmatprep.subr.bf16.mxu1 %v9558_v60 }
 0x418   :  { %3861 = vmatmul.mubr.bf16.gmra.mrb[252].mxu0 %v11392_v19  ;;  %3910 = vmatmul.mubr.bf16.gmra.mrb[228].mxu1 %v11244_v57  ;;  %v9714_v57 = vmov 0.0  }
 0x419   :  { %3917 = vmatprep.mubr.bf16.mxu1 %v11286_v24  ;;  %4062 = vmatprep.mubr.bf16.mxu0 %v11286_v24 }
 0x41a   :  { %8966 = vmatpush3.bf16.msra.mxu1 %v9558_v60  ;;  %9001 = vmatprep.subr.bf16.mxu0 %v9714_v57 }
 0x41b   :  { %8967 = vmatprep.subr.bf16.mxu1 %v9559_v36 }
 0x41e   :  { %8968 = vmatpush3.bf16.msra.mxu1 %v9559_v36 }
 0x41f   :  { %9013 = vmatprep.subr.bf16.mxu1 %v9714_v57 }
 0x420   :  { %3918 = vmatmul.mubr.bf16.gmra.mrb[232].mxu1 %v11264_v16  ;;  %4063 = vmatmul.mubr.bf16.vlgmr.msra.gmra.mrb[0].mxu0 %v11264_v16  ;;  %v2852_v16 = vsel %vm954_vm2, %v11180_v10, %v2757_v38 }
 0x421   :  { %3925 = vmatprep.mubr.bf16.mxu1 %v11302_v1  ;;  %4070 = vmatprep.mubr.bf16.mxu0 %v11302_v1 }
 0x422   :  { %9002 = vmatpush3.bf16.msra.mxu0 %v9560_v45 }
 0x423   :  { %9003 = vmatprep.subr.bf16.mxu0 %v9714_v57 }
 0x428   :  { %3926 = vmatmul.mubr.bf16.gmra.mrb[236].mxu1 %v11286_v24  ;;  %4071 = vmatmul.mubr.bf16.gmra.mrb[4].mxu0 %v11286_v24 }
 0x429   :  { %3933 = vmatprep.mubr.bf16.mxu1 %v11312_v2  ;;  %4078 = vmatprep.mubr.bf16.mxu0 %v11312_v2 }
 0x430   :  { %3934 = vmatmul.mubr.bf16.gmra.mrb[240].mxu1 %v11302_v1  ;;  %4079 = vmatmul.mubr.bf16.gmra.mrb[8].mxu0 %v11302_v1 }
 0x431   :  { %3941 = vmatprep.mubr.bf16.mxu1 %v11322_v30  ;;  %4086 = vmatprep.mubr.bf16.mxu0 %v11322_v30 }
 0x438   :  { %3942 = vmatmul.mubr.bf16.gmra.mrb[244].mxu1 %v11312_v2  ;;  %4087 = vmatmul.mubr.bf16.gmra.mrb[12].mxu0 %v11312_v2 }
 0x439   :  { %3949 = vmatprep.mubr.bf16.mxu1 %v11332_v56  ;;  %4094 = vmatprep.mubr.bf16.mxu0 %v11332_v56 }
 0x440   :  { %3950 = vmatmul.mubr.bf16.gmra.mrb[248].mxu1 %v11322_v30  ;;  %4095 = vmatmul.mubr.bf16.gmra.mrb[16].mxu0 %v11322_v30 }
 0x441   :  { %3957 = vmatprep.mubr.bf16.mxu1 %v11342_v15  ;;  %4102 = vmatprep.mubr.bf16.mxu0 %v11342_v15 }
 0x448   :  { %3958 = vmatmul.mubr.bf16.gmra.mrb[252].mxu1 %v11332_v56  ;;  %4103 = vmatmul.mubr.bf16.gmra.mrb[20].mxu0 %v11332_v56  ;;  %v12673_v56 = vld [vmem:[#allocation5_spill] sm:$0xff] }
 0x449   :  { %3965 = vmatprep.mubr.bf16.mxu1 %v11352_v14  ;;  %4110 = vmatprep.mubr.bf16.mxu0 %v11352_v14 }
 0x450   :  { %3966 = vmatmul.mubr.bf16.gmra.mrb[0].mxu1 %v11342_v15  ;;  %4111 = vmatmul.mubr.bf16.gmra.mrb[24].mxu0 %v11342_v15  ;;  %v2854_v15 = vsel %vm954_vm2, %v11186_v29, %v12673_v56 }
 0x451   :  { %3973 = vmatprep.mubr.bf16.mxu1 %v11362_v37  ;;  %4118 = vmatprep.mubr.bf16.mxu0 %v11362_v37  ;;  %v7309_v40 = vcombine.low %v2852_v16, %v2854_v15 }
 0x458   :  { %3974 = vmatmul.mubr.bf16.gmra.mrb[4].mxu1 %v11352_v14  ;;  %4119 = vmatmul.mubr.bf16.gmra.mrb[28].mxu0 %v11352_v14 }
 0x459   :  { %3981 = vmatprep.mubr.bf16.mxu1 %v11372_v27  ;;  %4126 = vmatprep.mubr.bf16.mxu0 %v11372_v27 }
 0x460   :  { %3982 = vmatmul.mubr.bf16.gmra.mrb[8].mxu1 %v11362_v37  ;;  %4127 = vmatmul.mubr.bf16.gmra.mrb[32].mxu0 %v11362_v37 }
 0x461   :  { %3989 = vmatprep.mubr.bf16.mxu1 %v11382_v22  ;;  %4134 = vmatprep.mubr.bf16.mxu0 %v11382_v22 }
 0x468   :  { %3990 = vmatmul.mubr.bf16.gmra.mrb[12].mxu1 %v11372_v27  ;;  %4135 = vmatmul.mubr.bf16.gmra.mrb[36].mxu0 %v11372_v27 }
 0x469   :  { %3997 = vmatprep.mubr.bf16.mxu1 %v11392_v19  ;;  %4142 = vmatprep.mubr.bf16.mxu0 %v11392_v19 }
 0x470   :  { %3998 = vmatmul.mubr.bf16.gmra.mrb[16].mxu1 %v11382_v22  ;;  %4143 = vmatmul.mubr.bf16.gmra.mrb[40].mxu0 %v11382_v22 }
 0x471   :  { %4005 = vmatprep.mubr.bf16.mxu1 %v11405_v3  ;;  %4150 = vmatprep.mubr.bf16.mxu0 %v11405_v3 }
 0x473   :  { %v8249_v24 = vpop.f32.mrb[168].mxu1  ;;  %v8349_v1 = vpop.f32.mrb[192].mxu0 }
 0x474   :  { %v8250_v2 = vpop.f32.mrb[169].mxu1  ;;  %v8350_v30 = vpop.f32.mrb[193].mxu0 }
 0x475   :  { %v8251_v34 = vadd.f32 %v8250_v2, %v8249_v24  ;;  %v8351_v52 = vadd.f32 %v8350_v30, %v8349_v1  ;;  %v8252_v14 = vpop.f32.mrb[170].mxu1  ;;  %v8352_v18 = vpop.f32.mrb[194].mxu0  ;;  %v12674_v1 = vpack.c.bf16 %v10943_v12, %v10928_v31  ;;  %v12675_v31 = vpack.c.bf16 %v10933_v11, %v10923_v62  ;;  %v12676_v12 = vld [vmem:[#allocation10_spill] sm:$0xff] }
 0x476   :  { %v8253_v43 = vpop.f32.mrb[171].mxu1  ;;  %v8353_v20 = vpop.f32.mrb[195].mxu0 }
 0x477   :  { %v3598_v10 = vadd.f32 %v8251_v34, %v10048_v42  ;;  %v11479_v37 = vadd.f32 %v8351_v52, %v10903_v13  ;;  %v8254_v46 = vadd.f32 %v8253_v43, %v8252_v14  ;;  %v8354_v7 = vadd.f32 %v8353_v20, %v8352_v18 }
 0x478   :  { %4006 = vmatmul.mubr.bf16.gmra.mrb[20].mxu1 %v11392_v19  ;;  %4151 = vmatmul.mubr.bf16.gmra.mrb[44].mxu0 %v11392_v19 }
 0x479   :  { %v3601_v29 = vadd.f32 %v8254_v46, %v10056_v50  ;;  %v11485_v28 = vadd.f32 %v8354_v7, %v10911_v9  ;;  %4013 = vmatprep.mubr.bf16.mxu1 %v7309_v40  ;;  %4158 = vmatprep.mubr.bf16.mxu0 %v7309_v40 }
 0x47b   :  { %v8255_v25 = vpop.f32.mrb[172].mxu1  ;;  %v8355_v27 = vpop.f32.mrb[196].mxu0 }
 0x47c   :  { %v8256_v5 = vpop.f32.mrb[173].mxu1  ;;  %v8356_v42 = vpop.f32.mrb[197].mxu0 }
 0x47d   :  { %v8257_v33 = vadd.f32 %v8256_v5, %v8255_v25  ;;  %v8357_v13 = vadd.f32 %v8356_v42, %v8355_v27  ;;  %v8258_v26 = vpop.f32.mrb[174].mxu1  ;;  %v8358_v23 = vpop.f32.mrb[198].mxu0 }
 0x47e   :  { %v8259_v22 = vpop.f32.mrb[175].mxu1  ;;  %v8359_v61 = vpop.f32.mrb[199].mxu0 }
 0x47f   :  { %v3606_v55 = vadd.f32 %v10046_v41, %v8257_v33  ;;  %v11489_v35 = vadd.f32 %v8357_v13, %v10940_v39  ;;  %v8260_v50 = vadd.f32 %v8259_v22, %v8258_v26  ;;  %v8360_v9 = vadd.f32 %v8359_v61, %v8358_v23 }
 0x480   :  { %4014 = vmatmul.mubr.bf16.gmra.mrb[24].mxu1 %v11405_v3  ;;  %4159 = vmatmul.mubr.bf16.gmra.mrb[48].mxu0 %v11405_v3 }
 0x481   :  { %v3609_v6 = vadd.f32 %v10052_v48, %v8260_v50  ;;  %v11495_v19 = vadd.f32 %v8360_v9, %v10956_v44  ;;  %4021 = vmatprep.mubr.bf16.mxu1 %v9936_v47  ;;  %4166 = vmatprep.mubr.bf16.mxu0 %v9936_v47  ;;  %v12679_v50 = vpack.c.bf16 %v10979_v54, %v10967_v32  ;;  %v12680_v9 = vld [vmem:[#allocation14_spill] sm:$0xff] }
 0x483   :  { %v8261_v17 = vpop.f32.mrb[176].mxu1  ;;  %v8361_v41 = vpop.f32.mrb[200].mxu0 }
 0x484   :  { %v8262_v0 = vpop.f32.mrb[177].mxu1  ;;  %v8362_v39 = vpop.f32.mrb[201].mxu0 }
 0x485   :  { %v8263_v51 = vadd.f32 %v8262_v0, %v8261_v17  ;;  %v8363_v4 = vadd.f32 %v8362_v39, %v8361_v41  ;;  %v8264_v53 = vpop.f32.mrb[178].mxu1  ;;  %v8364_v60 = vpop.f32.mrb[202].mxu0  ;;  %v12681_v41 = vld [vmem:[#allocation9_spill] sm:$0xff] }
 0x486   :  { %v8265_v36 = vpop.f32.mrb[179].mxu1  ;;  %v8365_v38 = vpop.f32.mrb[203].mxu0  ;;  %v12682_v0 = vpack.c.bf16 %v11032_v21, %v12681_v41  ;;  %v12685_v21 = vld [vmem:[#allocation7_spill] sm:$0xff] }
 0x487   :  { %v3614_v3 = vadd.f32 %v8263_v51, %v10064_v59  ;;  %v11500_v48 = vadd.f32 %v8363_v4, %v3598_v10  ;;  %v8266_v44 = vadd.f32 %v8265_v36, %v8264_v53  ;;  %v8366_v45 = vadd.f32 %v8365_v38, %v8364_v60 }
 0x488   :  { %4022 = vmatmul.mubr.bf16.gmra.mrb[28].mxu1 %v7309_v40  ;;  %4167 = vmatmul.mubr.bf16.gmra.mrb[52].mxu0 %v7309_v40 }
 0x489   :  { %v3617_v16 = vadd.f32 %v8266_v44, %v10070_v63  ;;  %v11503_v24 = vadd.f32 %v8366_v45, %v3601_v29  ;;  %4174 = vmatprep.mubr.bf16.mxu0 %v9936_v47  ;;  %8969 = vmatprep.mubr.msk.bf16.mxu1 %vm954_vm2, %v12674_v1  ;;  %v9561_v29 = vld [vmem:[%s12549_s7 + $0x8] sm:$0xff]  }
 0x48a   :  { %9004 = vmatpush3.bf16.msra.mxu0 %v9561_v29 }
 0x48b   :  { %v8267_v2 = vpop.f32.mrb[180].mxu1  ;;  %v8367_v30 = vpop.f32.mrb[204].mxu0  ;;  %9005 = vmatprep.subr.bf16.mxu0 %v9714_v57 }
 0x48c   :  { %v8268_v59 = vpop.f32.mrb[181].mxu1  ;;  %v8368_v56 = vpop.f32.mrb[205].mxu0 }
 0x48d   :  { %v8269_v15 = vadd.f32 %v8268_v59, %v8267_v2  ;;  %v8369_v34 = vadd.f32 %v8368_v56, %v8367_v30  ;;  %v8270_v52 = vpop.f32.mrb[182].mxu1  ;;  %v8370_v14 = vpop.f32.mrb[206].mxu0  ;;  %v12684_v2 = vld [vmem:[#allocation6_spill] sm:$0xff]  ;;  %v12687_v59 = vld [vmem:[#allocation13_spill] sm:$0xff] }
 0x48e   :  { %v8271_v18 = vpop.f32.mrb[183].mxu1  ;;  %v8371_v40 = vpop.f32.mrb[207].mxu0  ;;  %v12686_v30 = vpack.c.bf16 %v12684_v2, %v12685_v21  ;;  %v12703_v2 = vld [vmem:[#allocation17_spill] sm:$0xff] }
 0x48f   :  { %v3622_v63 = vadd.f32 %v10062_v58, %v8269_v15  ;;  %v11511_v43 = vadd.f32 %v8369_v34, %v3606_v55  ;;  %v8272_v20 = vadd.f32 %v8271_v18, %v8270_v52  ;;  %v8372_v10 = vadd.f32 %v8371_v40, %v8370_v14  ;;  %v12688_v34 = vld [vmem:[#allocation34_spill] sm:$0xff]  ;;  %v12689_v52 = vld [vmem:[#allocation32_spill] sm:$0xff] }
 0x490   :  { %4175 = vmatmul.mubr.bf16.gmra.mrb[56].mxu0 %v9936_v47  ;;  %8970 = vmatmul.mubr.msk.bf16.vlgmr.msra.gmra.mrb[32].mxu1 %vm954_vm2, %v12675_v31  ;;  %v12677_v58 = vpack.c.bf16 %v10989_v8, %v10974_v49  ;;  %v12678_v49 = vld [vmem:[#allocation12_spill] sm:$0xff]  ;;  %v12690_v14 = vpack.c.bf16 %v12688_v34, %v12689_v52 }
 0x491   :  { %v3625_v46 = vadd.f32 %v12676_v12, %v8272_v20  ;;  %v11519_v7 = vadd.f32 %v8372_v10, %v3609_v6  ;;  %4182 = vmatprep.mubr.bf16.mxu0 %v9936_v47  ;;  %v12705_v34 = vld [vmem:[#allocation40_spill] sm:$0xff] }
 0x492   :  { %8973 = vmatprep.mubr.msk.bf16.mxu1 %vm954_vm2, %v12677_v58 }
 0x493   :  { %v8273_v25 = vpop.f32.mrb[184].mxu1  ;;  %v8373_v27 = vpop.f32.mrb[208].mxu0 }
 0x494   :  { %v8274_v62 = vpop.f32.mrb[185].mxu1  ;;  %v8374_v11 = vpop.f32.mrb[209].mxu0 }
 0x495   :  { %v8275_v5 = vadd.f32 %v8274_v62, %v8273_v25  ;;  %v8375_v42 = vadd.f32 %v8374_v11, %v8373_v27  ;;  %v8276_v33 = vpop.f32.mrb[186].mxu1  ;;  %v8376_v13 = vpop.f32.mrb[210].mxu0  ;;  %v12691_v27 = vld [vmem:[#allocation16_spill] sm:$0xff] }
 0x496   :  { %v8277_v26 = vpop.f32.mrb[187].mxu1  ;;  %v8377_v23 = vpop.f32.mrb[211].mxu0 }
 0x497   :  { %v3630_v8 = vadd.f32 %v8275_v5, %v12678_v49  ;;  %v11531_v22 = vadd.f32 %v8375_v42, %v3614_v3  ;;  %v8278_v61 = vadd.f32 %v8277_v26, %v8276_v33  ;;  %v8378_v55 = vadd.f32 %v8377_v23, %v8376_v13  ;;  %v12683_v3 = vld [vmem:[#allocation11_spill] sm:$0xff]  ;;  %v12692_v42 = vld [vmem:[#allocation33_spill] sm:$0xff]  ;;  %v12693_v33 = vld [vmem:[#allocation8_spill] sm:$0xff] }
 0x498   :  { %4183 = vmatmul.mubr.bf16.gmra.mrb[60].mxu0 %v9936_v47  ;;  %8974 = vmatmul.mubr.msk.bf16.gmra.mrb[36].mxu1 %vm954_vm2, %v12679_v50  ;;  %v12694_v13 = vpack.c.bf16 %v12692_v42, %v12693_v33  ;;  %v12695_v26 = vld [vmem:[#allocation18_spill] sm:$0xff]  ;;  %v12708_v33 = vld [vmem:[#allocation41_spill] sm:$0xff] }
 0x499   :  { %v3633_v6 = vadd.f32 %v8278_v61, %v12680_v9  ;;  %v11539_v17 = vadd.f32 %v8378_v55, %v3617_v16  ;;  %8977 = vmatprep.mubr.msk.bf16.mxu1 %vm954_vm2, %v12682_v0  ;;  %v12696_v61 = vld [vmem:[#allocation38_spill] sm:$0xff]  ;;  %v12697_v55 = vld [vmem:[#allocation36_spill] sm:$0xff]  ;;  %9009 = vmatprep.mubr.msk.bf16.mxu0 %vm9715_vm3, %v9714_v57 }
 0x49a   :  { %v12698_v50 = vpack.c.bf16 %v12696_v61, %v12697_v55  ;;  %v12711_v61 = vld [vmem:[#allocation22_spill] sm:$0xff] }
 0x49b   :  { %v8279_v39 = vpop.f32.mrb[188].mxu1  ;;  %v8379_v51 = vpop.f32.mrb[212].mxu0 }
 0x49c   :  { %v8280_v4 = vpop.f32.mrb[189].mxu1  ;;  %v8380_v53 = vpop.f32.mrb[213].mxu0 }
 0x49d   :  { %v8281_v60 = vadd.f32 %v8280_v4, %v8279_v39  ;;  %v8381_v47 = vadd.f32 %v8380_v53, %v8379_v51  ;;  %v8282_v36 = vpop.f32.mrb[190].mxu1  ;;  %v8382_v38 = vpop.f32.mrb[214].mxu0 }
 0x49e   :  { %v8283_v32 = vpop.f32.mrb[191].mxu1  ;;  %v8383_v54 = vpop.f32.mrb[215].mxu0 }
 0x49f   :  { %v3638_v44 = vadd.f32 %v12683_v3, %v8281_v60  ;;  %v11546_v45 = vadd.f32 %v8381_v47, %v3622_v63  ;;  %v8284_v16 = vadd.f32 %v8283_v32, %v8282_v36  ;;  %v8384_v1 = vadd.f32 %v8383_v54, %v8382_v38  ;;  %v12699_v36 = vld [vmem:[#allocation15_spill] sm:$0xff]  ;;  %v12700_v3 = vld [vmem:[#allocation37_spill] sm:$0xff] }
 0x4a0   :  { %8978 = vmatmul.mubr.msk.bf16.gmra.mrb[40].mxu1 %vm954_vm2, %v12686_v30 }
 0x4a1   :  { %v3641_v56 = vadd.f32 %v12687_v59, %v8284_v16  ;;  %v11553_v15 = vadd.f32 %v8384_v1, %v3625_v46  ;;  %8981 = vmatprep.mubr.msk.bf16.mxu1 %vm954_vm2, %v12690_v14  ;;  %v12701_v16 = vld [vmem:[#allocation35_spill] sm:$0xff]  ;;  %v12704_v59 = vld [vmem:[#allocation42_spill] sm:$0xff]  ;;  %v9563_v14 = vld [vmem:[%s12549_s7 + $0x20] sm:$0xff]  }
 0x4a2   :  { %v12702_v1 = vpack.c.bf16 %v12700_v3, %v12701_v16  ;;  %v12706_v52 = vpack.c.bf16 %v12704_v59, %v12705_v34  ;;  %9014 = vmatpush3.bf16.msra.mxu1 %v9563_v14  ;;  %v12714_v16 = vld [vmem:[#allocation21_spill] sm:$0xff] }
 0x4a3   :  { %v8285_v18 = vpop.f32.mrb[192].mxu1  ;;  %v8385_v40 = vpop.f32.mrb[216].mxu0  ;;  %9015 = vmatprep.subr.bf16.mxu1 %v9714_v57  ;;  %v9564_v59 = vld [vmem:[%s12549_s7 + $0x28] sm:$0xff]  }
 0x4a4   :  { %v8286_v63 = vpop.f32.mrb[193].mxu1  ;;  %v8386_v20 = vpop.f32.mrb[217].mxu0 }
 0x4a5   :  { %v8287_v10 = vadd.f32 %v8286_v63, %v8285_v18  ;;  %v8387_v31 = vadd.f32 %v8386_v20, %v8385_v40  ;;  %v8288_v12 = vpop.f32.mrb[194].mxu1  ;;  %v8388_v58 = vpop.f32.mrb[218].mxu0 }
 0x4a6   :  { %v8289_v29 = vpop.f32.mrb[195].mxu1  ;;  %v8389_v25 = vpop.f32.mrb[219].mxu0  ;;  %9016 = vmatpush3.bf16.msra.mxu1 %v9564_v59 }
 0x4a7   :  { %v3646_v62 = vadd.f32 %v8287_v10, %v12691_v27  ;;  %v11560_v11 = vadd.f32 %v8387_v31, %v3630_v8  ;;  %v8290_v46 = vadd.f32 %v8289_v29, %v8288_v12  ;;  %v8390_v5 = vadd.f32 %v8389_v25, %v8388_v58  ;;  %v12707_v25 = vld [vmem:[#allocation20_spill] sm:$0xff]  ;;  %9017 = vmatprep.subr.bf16.mxu1 %v9714_v57 }
 0x4a8   :  { %8982 = vmatmul.mubr.msk.bf16.gmra.mrb[44].mxu1 %vm954_vm2, %v12694_v13  ;;  %v12709_v13 = vld [vmem:[#allocation39_spill] sm:$0xff] }
 0x4a9   :  { %v3649_v23 = vadd.f32 %v8290_v46, %v12695_v26  ;;  %v11567_v49 = vadd.f32 %v8390_v5, %v3633_v6  ;;  %8985 = vmatprep.mubr.msk.bf16.mxu1 %vm954_vm2, %v12698_v50  ;;  %v12710_v26 = vpack.c.bf16 %v12708_v33, %v12709_v13 }
 0x4ab   :  { %v8291_v9 = vpop.f32.mrb[196].mxu1  ;;  %v8391_v41 = vpop.f32.mrb[220].mxu0 }
 0x4ac   :  { %v8292_v8 = vpop.f32.mrb[197].mxu1  ;;  %v8392_v0 = vpop.f32.mrb[221].mxu0 }
 0x4ad   :  { %v8293_v39 = vadd.f32 %v8292_v8, %v8291_v9  ;;  %v8393_v51 = vadd.f32 %v8392_v0, %v8391_v41  ;;  %v8294_v4 = vpop.f32.mrb[198].mxu1  ;;  %v8394_v53 = vpop.f32.mrb[222].mxu0  ;;  %v12712_v9 = vld [vmem:[#allocation31_spill] sm:$0xff] }
 0x4ae   :  { %v8295_v60 = vpop.f32.mrb[199].mxu1  ;;  %v8395_v47 = vpop.f32.mrb[223].mxu0 }
 0x4af   :  { %v3654_v38 = vadd.f32 %v12699_v36, %v8293_v39  ;;  %v11574_v32 = vadd.f32 %v8393_v51, %v3638_v44  ;;  %v8296_v6 = vadd.f32 %v8295_v60, %v8294_v4  ;;  %v8396_v54 = vadd.f32 %v8395_v47, %v8394_v53  ;;  %v9562_v44 = vld [vmem:[%s12549_s7 + $0x10] sm:$0xff]   ;;  %v12713_v36 = vld [vmem:[#allocation19_spill] sm:$0xff] }
 0x4b0   :  { %8986 = vmatmul.mubr.msk.bf16.gmra.mrb[48].mxu1 %vm954_vm2, %v12702_v1  ;;  %9006 = vmatpush3.bf16.msra.mxu0 %v9562_v44 }
 0x4b1   :  { %v3657_v21 = vadd.f32 %v12703_v2, %v8296_v6  ;;  %v11581_v30 = vadd.f32 %v8396_v54, %v3641_v56  ;;  %8989 = vmatprep.mubr.msk.bf16.mxu1 %vm954_vm2, %v12706_v52  ;;  %9007 = vmatprep.subr.bf16.mxu0 %v9714_v57 }
 0x4b3   :  { %v8297_v18 = vpop.f32.mrb[200].mxu1  ;;  %v8397_v40 = vpop.f32.mrb[224].mxu0 }
 0x4b4   :  { %v8298_v63 = vpop.f32.mrb[201].mxu1  ;;  %v8398_v56 = vpop.f32.mrb[225].mxu0 }
 0x4b5   :  { %v8299_v20 = vadd.f32 %v8298_v63, %v8297_v18  ;;  %v8399_v10 = vadd.f32 %v8398_v56, %v8397_v40  ;;  %v8300_v31 = vpop.f32.mrb[202].mxu1  ;;  %v8400_v12 = vpop.f32.mrb[226].mxu0 }
 0x4b6   :  { %v8301_v58 = vpop.f32.mrb[203].mxu1  ;;  %v8401_v29 = vpop.f32.mrb[227].mxu0 }
 0x4b7   :  { %v3662_v27 = vadd.f32 %v8299_v20, %v12707_v25  ;;  %v11596_v46 = vadd.f32 %v8399_v10, %v3646_v62  ;;  %v8302_v5 = vadd.f32 %v8301_v58, %v8300_v31  ;;  %v8402_v42 = vadd.f32 %v8401_v29, %v8400_v12  ;;  %v12715_v20 = vld [vmem:[#allocation24_spill] sm:$0xff]  ;;  %v12716_v29 = vld [vmem:[#allocation26_spill] sm:$0xff] }
 0x4b8   :  { %8990 = vmatmul.mubr.msk.bf16.gmra.mrb[52].mxu1 %vm954_vm2, %v12710_v26 }
 0x4b9   :  { %v3665_v55 = vadd.f32 %v8302_v5, %v12711_v61  ;;  %v11603_v50 = vadd.f32 %v8402_v42, %v3649_v23  ;;  %8993 = vmatprep.mubr.msk.bf16.mxu1 %vm954_vm2, %v12712_v9 }
 0x4bb   :  { %v8303_v41 = vpop.f32.mrb[204].mxu1  ;;  %v8403_v8 = vpop.f32.mrb[228].mxu0 }
 0x4bc   :  { %v8304_v0 = vpop.f32.mrb[205].mxu1  ;;  %v8404_v39 = vpop.f32.mrb[229].mxu0 }
 0x4bd   :  { %v8305_v62 = vadd.f32 %v8304_v0, %v8303_v41  ;;  %v8405_v51 = vadd.f32 %v8404_v39, %v8403_v8  ;;  %v8306_v4 = vpop.f32.mrb[206].mxu1  ;;  %v8406_v53 = vpop.f32.mrb[230].mxu0 }
 0x4be   :  { %v8307_v60 = vpop.f32.mrb[207].mxu1  ;;  %v8407_v47 = vpop.f32.mrb[231].mxu0 }
 0x4bf   :  { %v3670_v6 = vadd.f32 %v12713_v36, %v8305_v62  ;;  %v11608_v54 = vadd.f32 %v8405_v51, %v3654_v38  ;;  %v8308_v3 = vadd.f32 %v8307_v60, %v8306_v4  ;;  %v8408_v23 = vadd.f32 %v8407_v47, %v8406_v53  ;;  %v12717_v62 = vld [vmem:[#allocation23_spill] sm:$0xff]  ;;  %v12718_v60 = vld [vmem:[#allocation25_spill] sm:$0xff] }
 0x4c0   :  { %8994 = vmatmul.mubr.msk.bf16.gmra.mrb[56].mxu1 %vm954_vm2, %v12712_v9  ;;  %v9565_v36 = vld [vmem:[%s12549_s7 + $0x18] sm:$0xff]  }
 0x4c1   :  { %v3673_v1 = vadd.f32 %v12714_v16, %v8308_v3  ;;  %v11613_v2 = vadd.f32 %v8408_v23, %v3657_v21  ;;  %8997 = vmatprep.mubr.msk.bf16.mxu1 %vm954_vm2, %v12712_v9  ;;  %v9566_v3 = vld [vmem:[%s12549_s7 + $0x30] sm:$0xff]   ;;  %9008 = vmatpush3.bf16.msra.mxu0 %v9565_v36 }
 0x4c2   :  { %9018 = vmatpush3.bf16.msra.mxu1 %v9566_v3  ;;  %9025 = vmatprep.subr.bf16.mxu0 %v9714_v57  ;;  %v9567_v3 = vld [vmem:[%s12549_s7 + $0x38] sm:$0xff]  }
 0x4c3   :  { %v8309_v34 = vpop.f32.mrb[208].mxu1  ;;  %v8409_v52 = vpop.f32.mrb[232].mxu0  ;;  %9019 = vmatprep.subr.bf16.mxu1 %v9714_v57 }
 0x4c4   :  { %v8310_v38 = vpop.f32.mrb[209].mxu1  ;;  %v8410_v44 = vpop.f32.mrb[233].mxu0 }
 0x4c5   :  { %v8311_v14 = vadd.f32 %v8310_v38, %v8309_v34  ;;  %v8411_v18 = vadd.f32 %v8410_v44, %v8409_v52  ;;  %v8312_v40 = vpop.f32.mrb[210].mxu1  ;;  %v8412_v63 = vpop.f32.mrb[234].mxu0 }
 0x4c6   :  { %v8313_v21 = vpop.f32.mrb[211].mxu1  ;;  %v8413_v56 = vpop.f32.mrb[235].mxu0  ;;  %9020 = vmatpush3.bf16.msra.mxu1 %v9567_v3 }
 0x4c7   :  { %v3678_v10 = vadd.f32 %v8311_v14, %v12715_v20  ;;  %v11622_v31 = vadd.f32 %v8411_v18, %v3662_v27  ;;  %v8314_v12 = vadd.f32 %v8313_v21, %v8312_v40  ;;  %v8414_v58 = vadd.f32 %v8413_v56, %v8412_v63  ;;  %v12719_v18 = vld [vmem:[#allocation28_spill] sm:$0xff]  ;;  %v12720_v20 = vld [vmem:[#allocation30_spill] sm:$0xff]  ;;  %9037 = vmatprep.subr.bf16.mxu1 %v9714_v57 }
 0x4c8   :  { %8998 = vmatmul.mubr.msk.bf16.gmra.mrb[60].mxu1 %vm954_vm2, %v12712_v9 }
 0x4c9   :  { %v3681_v25 = vadd.f32 %v8314_v12, %v12716_v29  ;;  %v11627_v5 = vadd.f32 %v8414_v58, %v3665_v55  ;;  %9021 = vmatprep.mubr.msk.bf16.mxu1 %vm9715_vm3, %v9714_v57 }
 0x4cb   :  { %v8315_v42 = vpop.f32.mrb[212].mxu1  ;;  %v8415_v33 = vpop.f32.mrb[236].mxu0 }
 0x4cc   :  { %v8316_v13 = vpop.f32.mrb[213].mxu1  ;;  %v8416_v26 = vpop.f32.mrb[237].mxu0 }
 0x4cd   :  { %v8317_v61 = vadd.f32 %v8316_v13, %v8315_v42  ;;  %v8417_v41 = vadd.f32 %v8416_v26, %v8415_v33  ;;  %v8318_v8 = vpop.f32.mrb[214].mxu1  ;;  %v8418_v0 = vpop.f32.mrb[238].mxu0 }
 0x4ce   :  { %v8319_v39 = vpop.f32.mrb[215].mxu1  ;;  %v8419_v27 = vpop.f32.mrb[239].mxu0 }
 0x4cf   :  { %v3686_v51 = vadd.f32 %v12717_v62, %v8317_v61  ;;  %v11630_v4 = vadd.f32 %v8417_v41, %v3670_v6  ;;  %v8320_v53 = vadd.f32 %v8319_v39, %v8318_v8  ;;  %v8420_v9 = vadd.f32 %v8419_v27, %v8418_v0  ;;  %v12721_v27 = vld [vmem:[#allocation27_spill] sm:$0xff] }
 0x4d1   :  { %v3689_v47 = vadd.f32 %v12718_v60, %v8320_v53  ;;  %v11633_v55 = vadd.f32 %v8420_v9, %v3673_v1  ;;  %v12722_v60 = vld [vmem:[#allocation29_spill] sm:$0xff] }
 0x4d3   :  { %v8321_v23 = vpop.f32.mrb[216].mxu1  ;;  %v8421_v16 = vpop.f32.mrb[240].mxu0 }
 0x4d4   :  { %v8322_v6 = vpop.f32.mrb[217].mxu1  ;;  %v8422_v59 = vpop.f32.mrb[241].mxu0 }
 0x4d5   :  { %v8323_v1 = vadd.f32 %v8322_v6, %v8321_v23  ;;  %v8423_v34 = vadd.f32 %v8422_v59, %v8421_v16  ;;  %v8324_v52 = vpop.f32.mrb[218].mxu1  ;;  %v8424_v38 = vpop.f32.mrb[242].mxu0 }
 0x4d6   :  { %v8325_v44 = vpop.f32.mrb[219].mxu1  ;;  %v8425_v14 = vpop.f32.mrb[243].mxu0 }
 0x4d7   :  { %v3694_v40 = vadd.f32 %v8323_v1, %v12719_v18  ;;  %v11644_v63 = vadd.f32 %v8423_v34, %v3678_v10  ;;  %v8326_v21 = vadd.f32 %v8325_v44, %v8324_v52  ;;  %v8426_v56 = vadd.f32 %v8425_v14, %v8424_v38 }
 0x4d9   :  { %v3697_v12 = vadd.f32 %v8326_v21, %v12720_v20  ;;  %v11647_v58 = vadd.f32 %v8426_v56, %v3681_v25 }
 0x4db   :  { %v8327_v29 = vpop.f32.mrb[220].mxu1  ;;  %v8427_v42 = vpop.f32.mrb[244].mxu0 }
 0x4dc   :  { %v8328_v33 = vpop.f32.mrb[221].mxu1  ;;  %v8428_v13 = vpop.f32.mrb[245].mxu0 }
 0x4dd   :  { %v8329_v26 = vadd.f32 %v8328_v33, %v8327_v29  ;;  %v8429_v61 = vadd.f32 %v8428_v13, %v8427_v42  ;;  %v8330_v41 = vpop.f32.mrb[222].mxu1  ;;  %v8430_v8 = vpop.f32.mrb[246].mxu0 }
 0x4de   :  { %v8331_v0 = vpop.f32.mrb[223].mxu1  ;;  %v8431_v39 = vpop.f32.mrb[247].mxu0 }
 0x4df   :  { %v3702_v62 = vadd.f32 %v12721_v27, %v8329_v26  ;;  %v11650_v10 = vadd.f32 %v8429_v61, %v3686_v51  ;;  %v8332_v53 = vadd.f32 %v8331_v0, %v8330_v41  ;;  %v8432_v9 = vadd.f32 %v8431_v39, %v8430_v8 }
 0x4e1   :  { %v3705_v36 = vadd.f32 %v12722_v60, %v8332_v53  ;;  %v11653_v25 = vadd.f32 %v8432_v9, %v3689_v47 }
 0x4e3   :  { %v8433_v23 = vpop.f32.mrb[248].mxu0  ;;  %v8461_v16 = vpop.f32.mrb[224].mxu1 }
 0x4e4   :  { %v8434_v6 = vpop.f32.mrb[249].mxu0  ;;  %v8462_v59 = vpop.f32.mrb[225].mxu1 }
 0x4e5   :  { %v8435_v1 = vadd.f32 %v8434_v6, %v8433_v23  ;;  %v8463_v51 = vadd.f32 %v8462_v59, %v8461_v16  ;;  %v8436_v34 = vpop.f32.mrb[250].mxu0  ;;  %v8464_v52 = vpop.f32.mrb[226].mxu1 }
 0x4e6   :  { %v8437_v38 = vpop.f32.mrb[251].mxu0  ;;  %v8465_v44 = vpop.f32.mrb[227].mxu1 }
 0x4e7   :  { %v11659_v14 = vadd.f32 %v8435_v1, %v3694_v40  ;;  %v3904_v47 = vadd.f32 %v8463_v51, %v11479_v37  ;;  %v8438_v18 = vadd.f32 %v8437_v38, %v8436_v34  ;;  %v8466_v21 = vadd.f32 %v8465_v44, %v8464_v52 }
 0x4e9   :  { %v11662_v56 = vadd.f32 %v8438_v18, %v3697_v12  ;;  %v3907_v20 = vadd.f32 %v8466_v21, %v11485_v28 }
 0x4eb   :  { %v8439_v29 = vpop.f32.mrb[252].mxu0  ;;  %v8467_v42 = vpop.f32.mrb[228].mxu1 }
 0x4ec   :  { %v8440_v33 = vpop.f32.mrb[253].mxu0  ;;  %v8468_v13 = vpop.f32.mrb[229].mxu1 }
 0x4ed   :  { %v8441_v26 = vadd.f32 %v8440_v33, %v8439_v29  ;;  %v8469_v61 = vadd.f32 %v8468_v13, %v8467_v42  ;;  %v8442_v41 = vpop.f32.mrb[254].mxu0  ;;  %v8470_v8 = vpop.f32.mrb[230].mxu1 }
 0x4ee   :  { %v8443_v0 = vpop.f32.mrb[255].mxu0  ;;  %v8471_v39 = vpop.f32.mrb[231].mxu1 }
 0x4ef   :  { %v11665_v40 = vadd.f32 %v8441_v26, %v3702_v62  ;;  %v3912_v37 = vadd.f32 %v8469_v61, %v11489_v35  ;;  %v8444_v27 = vadd.f32 %v8443_v0, %v8442_v41  ;;  %v8472_v53 = vadd.f32 %v8471_v39, %v8470_v8 }
 0x4f1   :  { %v11672_v28 = vadd.f32 %v8444_v27, %v3705_v36  ;;  %v3915_v12 = vadd.f32 %v8472_v53, %v11495_v19 }
 0x4f3   :  { %v8473_v9 = vpop.f32.mrb[232].mxu1  ;;  %v8573_v60 = vpop.f32.mrb[0].mxu0 }
 0x4f4   :  { %v8474_v3 = vpop.f32.mrb[233].mxu1  ;;  %v8574_v62 = vpop.f32.mrb[1].mxu0 }
 0x4f5   :  { %v8475_v23 = vadd.f32 %v8474_v3, %v8473_v9  ;;  %v8575_v16 = vadd.f32 %v8574_v62, %v8573_v60  ;;  %v8476_v35 = vpop.f32.mrb[234].mxu1  ;;  %v8576_v6 = vpop.f32.mrb[2].mxu0 }
 0x4f6   :  { %v8477_v59 = vpop.f32.mrb[235].mxu1  ;;  %v8577_v1 = vpop.f32.mrb[3].mxu0 }
 0x4f7   :  { %v3920_v51 = vadd.f32 %v8475_v23, %v11500_v48  ;;  %v8478_v34 = vadd.f32 %v8477_v59, %v8476_v35  ;;  %v8578_v52 = vadd.f32 %v8577_v1, %v8576_v6  ;;  %v11676_v38 = vadd.f32 %v8575_v16, %v3904_v47 }
 0x4f9   :  { %v3923_v36 = vadd.f32 %v8478_v34, %v11503_v24  ;;  %v11679_v44 = vadd.f32 %v8578_v52, %v3907_v20 }
 0x4fb   :  { %v8479_v19 = vpop.f32.mrb[236].mxu1  ;;  %v8579_v18 = vpop.f32.mrb[4].mxu0 }
 0x4fc   :  { %v8480_v21 = vpop.f32.mrb[237].mxu1  ;;  %v8580_v29 = vpop.f32.mrb[5].mxu0 }
 0x4fd   :  { %v8481_v42 = vadd.f32 %v8480_v21, %v8479_v19  ;;  %v8581_v33 = vadd.f32 %v8580_v29, %v8579_v18  ;;  %v8482_v13 = vpop.f32.mrb[238].mxu1  ;;  %v8582_v26 = vpop.f32.mrb[6].mxu0 }
 0x4fe   :  { %v8483_v61 = vpop.f32.mrb[239].mxu1  ;;  %v8583_v41 = vpop.f32.mrb[7].mxu0 }
 0x4ff   :  { %v3928_v48 = vadd.f32 %v8481_v42, %v11511_v43  ;;  %v8484_v8 = vadd.f32 %v8483_v61, %v8482_v13  ;;  %v8584_v0 = vadd.f32 %v8583_v41, %v8582_v26  ;;  %v11682_v47 = vadd.f32 %v8581_v33, %v3912_v37 }
 0x501   :  { %v3931_v24 = vadd.f32 %v8484_v8, %v11519_v7  ;;  %v11685_v20 = vadd.f32 %v8584_v0, %v3915_v12 }
 0x503   :  { %v8485_v39 = vpop.f32.mrb[240].mxu1  ;;  %v8585_v27 = vpop.f32.mrb[8].mxu0 }
 0x504   :  { %v8486_v53 = vpop.f32.mrb[241].mxu1  ;;  %v8586_v9 = vpop.f32.mrb[9].mxu0 }
 0x505   :  { %v8487_v60 = vadd.f32 %v8486_v53, %v8485_v39  ;;  %v8587_v3 = vadd.f32 %v8586_v9, %v8585_v27  ;;  %v8488_v62 = vpop.f32.mrb[242].mxu1  ;;  %v8588_v23 = vpop.f32.mrb[10].mxu0 }
 0x506   :  { %v8489_v16 = vpop.f32.mrb[243].mxu1  ;;  %v8589_v35 = vpop.f32.mrb[11].mxu0 }
 0x507   :  { %v3936_v43 = vadd.f32 %v8487_v60, %v11531_v22  ;;  %v8490_v6 = vadd.f32 %v8489_v16, %v8488_v62  ;;  %v8590_v59 = vadd.f32 %v8589_v35, %v8588_v23  ;;  %v11688_v37 = vadd.f32 %v8587_v3, %v3920_v51 }
 0x509   :  { %v3939_v7 = vadd.f32 %v8490_v6, %v11539_v17  ;;  %v11691_v12 = vadd.f32 %v8590_v59, %v3923_v36 }
 0x50b   :  { %v8491_v1 = vpop.f32.mrb[244].mxu1  ;;  %v8591_v34 = vpop.f32.mrb[12].mxu0 }
 0x50c   :  { %v8492_v52 = vpop.f32.mrb[245].mxu1  ;;  %v8592_v19 = vpop.f32.mrb[13].mxu0 }
 0x50d   :  { %v8493_v18 = vadd.f32 %v8492_v52, %v8491_v1  ;;  %v8593_v21 = vadd.f32 %v8592_v19, %v8591_v34  ;;  %v8494_v29 = vpop.f32.mrb[246].mxu1  ;;  %v8594_v42 = vpop.f32.mrb[14].mxu0 }
 0x50e   :  { %v8495_v33 = vpop.f32.mrb[247].mxu1  ;;  %v8595_v13 = vpop.f32.mrb[15].mxu0 }
 0x50f   :  { %v3944_v22 = vadd.f32 %v8493_v18, %v11546_v45  ;;  %v8496_v26 = vadd.f32 %v8495_v33, %v8494_v29  ;;  %v8596_v61 = vadd.f32 %v8595_v13, %v8594_v42  ;;  %v11694_v51 = vadd.f32 %v8593_v21, %v3928_v48 }
 0x511   :  { %v3947_v17 = vadd.f32 %v8496_v26, %v11553_v15  ;;  %v11697_v36 = vadd.f32 %v8596_v61, %v3931_v24 }
 0x513   :  { %v8497_v41 = vpop.f32.mrb[248].mxu1  ;;  %v8597_v8 = vpop.f32.mrb[16].mxu0 }
 0x514   :  { %v8498_v0 = vpop.f32.mrb[249].mxu1  ;;  %v8598_v39 = vpop.f32.mrb[17].mxu0 }
 0x515   :  { %v8499_v27 = vadd.f32 %v8498_v0, %v8497_v41  ;;  %v8599_v53 = vadd.f32 %v8598_v39, %v8597_v8  ;;  %v8500_v9 = vpop.f32.mrb[250].mxu1  ;;  %v8600_v60 = vpop.f32.mrb[18].mxu0 }
 0x516   :  { %v8501_v3 = vpop.f32.mrb[251].mxu1  ;;  %v8601_v62 = vpop.f32.mrb[19].mxu0 }
 0x517   :  { %v3952_v45 = vadd.f32 %v8499_v27, %v11560_v11  ;;  %v8502_v23 = vadd.f32 %v8501_v3, %v8500_v9  ;;  %v8602_v16 = vadd.f32 %v8601_v62, %v8600_v60  ;;  %v11700_v48 = vadd.f32 %v8599_v53, %v3936_v43 }
 0x519   :  { %v3955_v15 = vadd.f32 %v8502_v23, %v11567_v49  ;;  %v11703_v24 = vadd.f32 %v8602_v16, %v3939_v7 }
 0x51b   :  { %v8503_v35 = vpop.f32.mrb[252].mxu1  ;;  %v8603_v6 = vpop.f32.mrb[20].mxu0 }
 0x51c   :  { %v8504_v59 = vpop.f32.mrb[253].mxu1  ;;  %v8604_v1 = vpop.f32.mrb[21].mxu0 }
 0x51d   :  { %v8505_v34 = vadd.f32 %v8504_v59, %v8503_v35  ;;  %v8605_v52 = vadd.f32 %v8604_v1, %v8603_v6  ;;  %v8506_v19 = vpop.f32.mrb[254].mxu1  ;;  %v8606_v18 = vpop.f32.mrb[22].mxu0 }
 0x51e   :  { %v8507_v21 = vpop.f32.mrb[255].mxu1  ;;  %v8607_v29 = vpop.f32.mrb[23].mxu0 }
 0x51f   :  { %v3960_v11 = vadd.f32 %v8505_v34, %v11574_v32  ;;  %v8508_v42 = vadd.f32 %v8507_v21, %v8506_v19  ;;  %v8608_v33 = vadd.f32 %v8607_v29, %v8606_v18  ;;  %v11706_v43 = vadd.f32 %v8605_v52, %v3944_v22 }
 0x521   :  { %v3963_v49 = vadd.f32 %v8508_v42, %v11581_v30  ;;  %v11709_v7 = vadd.f32 %v8608_v33, %v3947_v17 }
 0x523   :  { %v8509_v13 = vpop.f32.mrb[0].mxu1  ;;  %v8609_v26 = vpop.f32.mrb[24].mxu0 }
 0x524   :  { %v8510_v61 = vpop.f32.mrb[1].mxu1  ;;  %v8610_v41 = vpop.f32.mrb[25].mxu0 }
 0x525   :  { %v8511_v8 = vadd.f32 %v8510_v61, %v8509_v13  ;;  %v8611_v0 = vadd.f32 %v8610_v41, %v8609_v26  ;;  %v8512_v39 = vpop.f32.mrb[2].mxu1  ;;  %v8612_v27 = vpop.f32.mrb[26].mxu0 }
 0x526   :  { %v8513_v53 = vpop.f32.mrb[3].mxu1  ;;  %v8613_v9 = vpop.f32.mrb[27].mxu0 }
 0x527   :  { %v3968_v32 = vadd.f32 %v8511_v8, %v11596_v46  ;;  %v8514_v60 = vadd.f32 %v8513_v53, %v8512_v39  ;;  %v8614_v3 = vadd.f32 %v8613_v9, %v8612_v27  ;;  %v11712_v22 = vadd.f32 %v8611_v0, %v3952_v45 }
 0x529   :  { %v3971_v30 = vadd.f32 %v8514_v60, %v11603_v50  ;;  %v11715_v17 = vadd.f32 %v8614_v3, %v3955_v15 }
 0x52b   :  { %v8515_v62 = vpop.f32.mrb[4].mxu1  ;;  %v8615_v23 = vpop.f32.mrb[28].mxu0 }
 0x52c   :  { %v8516_v16 = vpop.f32.mrb[5].mxu1  ;;  %v8616_v35 = vpop.f32.mrb[29].mxu0 }
 0x52d   :  { %v8517_v6 = vadd.f32 %v8516_v16, %v8515_v62  ;;  %v8617_v59 = vadd.f32 %v8616_v35, %v8615_v23  ;;  %v8518_v1 = vpop.f32.mrb[6].mxu1  ;;  %v8618_v34 = vpop.f32.mrb[30].mxu0 }
 0x52e   :  { %v8519_v52 = vpop.f32.mrb[7].mxu1  ;;  %v8619_v19 = vpop.f32.mrb[31].mxu0 }
 0x52f   :  { %v3976_v46 = vadd.f32 %v8517_v6, %v11608_v54  ;;  %v8520_v18 = vadd.f32 %v8519_v52, %v8518_v1  ;;  %v8620_v21 = vadd.f32 %v8619_v19, %v8618_v34  ;;  %v11718_v45 = vadd.f32 %v8617_v59, %v3960_v11 }
 0x531   :  { %v3979_v50 = vadd.f32 %v8520_v18, %v11613_v2  ;;  %v11721_v15 = vadd.f32 %v8620_v21, %v3963_v49 }
 0x533   :  { %v8521_v29 = vpop.f32.mrb[8].mxu1  ;;  %v8621_v42 = vpop.f32.mrb[32].mxu0 }
 0x534   :  { %v8522_v33 = vpop.f32.mrb[9].mxu1  ;;  %v8622_v13 = vpop.f32.mrb[33].mxu0 }
 0x535   :  { %v8523_v26 = vadd.f32 %v8522_v33, %v8521_v29  ;;  %v8623_v61 = vadd.f32 %v8622_v13, %v8621_v42  ;;  %v8524_v41 = vpop.f32.mrb[10].mxu1  ;;  %v8624_v8 = vpop.f32.mrb[34].mxu0 }
 0x536   :  { %v8525_v0 = vpop.f32.mrb[11].mxu1  ;;  %v8625_v39 = vpop.f32.mrb[35].mxu0 }
 0x537   :  { %v3984_v54 = vadd.f32 %v8523_v26, %v11622_v31  ;;  %v8526_v27 = vadd.f32 %v8525_v0, %v8524_v41  ;;  %v8626_v53 = vadd.f32 %v8625_v39, %v8624_v8  ;;  %v11724_v11 = vadd.f32 %v8623_v61, %v3968_v32 }
 0x539   :  { %v3987_v2 = vadd.f32 %v8526_v27, %v11627_v5  ;;  %v11727_v49 = vadd.f32 %v8626_v53, %v3971_v30 }
 0x53b   :  { %v8527_v9 = vpop.f32.mrb[12].mxu1  ;;  %v8627_v60 = vpop.f32.mrb[36].mxu0 }
 0x53c   :  { %v8528_v3 = vpop.f32.mrb[13].mxu1  ;;  %v8628_v62 = vpop.f32.mrb[37].mxu0 }
 0x53d   :  { %v8529_v23 = vadd.f32 %v8528_v3, %v8527_v9  ;;  %v8629_v16 = vadd.f32 %v8628_v62, %v8627_v60  ;;  %v8530_v35 = vpop.f32.mrb[14].mxu1  ;;  %v8630_v6 = vpop.f32.mrb[38].mxu0 }
 0x53e   :  { %v8531_v59 = vpop.f32.mrb[15].mxu1  ;;  %v8631_v1 = vpop.f32.mrb[39].mxu0 }
 0x53f   :  { %v3992_v31 = vadd.f32 %v8529_v23, %v11630_v4  ;;  %v8532_v34 = vadd.f32 %v8531_v59, %v8530_v35  ;;  %v8632_v52 = vadd.f32 %v8631_v1, %v8630_v6  ;;  %v11730_v32 = vadd.f32 %v8629_v16, %v3976_v46 }
 0x541   :  { %v3995_v5 = vadd.f32 %v8532_v34, %v11633_v55  ;;  %v11733_v30 = vadd.f32 %v8632_v52, %v3979_v50 }
 0x543   :  { %v8533_v19 = vpop.f32.mrb[16].mxu1  ;;  %v8633_v18 = vpop.f32.mrb[40].mxu0 }
 0x544   :  { %v8534_v21 = vpop.f32.mrb[17].mxu1  ;;  %v8634_v29 = vpop.f32.mrb[41].mxu0 }
 0x545   :  { %v8535_v42 = vadd.f32 %v8534_v21, %v8533_v19  ;;  %v8635_v33 = vadd.f32 %v8634_v29, %v8633_v18  ;;  %v8536_v13 = vpop.f32.mrb[18].mxu1  ;;  %v8636_v26 = vpop.f32.mrb[42].mxu0 }
 0x546   :  { %v8537_v61 = vpop.f32.mrb[19].mxu1  ;;  %v8637_v41 = vpop.f32.mrb[43].mxu0 }
 0x547   :  { %v4000_v4 = vadd.f32 %v8535_v42, %v11644_v63  ;;  %v8538_v8 = vadd.f32 %v8537_v61, %v8536_v13  ;;  %v8638_v0 = vadd.f32 %v8637_v41, %v8636_v26  ;;  %v11736_v46 = vadd.f32 %v8635_v33, %v3984_v54 }
 0x549   :  { %v4003_v55 = vadd.f32 %v8538_v8, %v11647_v58  ;;  %v11739_v50 = vadd.f32 %v8638_v0, %v3987_v2 }
 0x54b   :  { %v8539_v39 = vpop.f32.mrb[20].mxu1  ;;  %v8639_v27 = vpop.f32.mrb[44].mxu0 }
 0x54c   :  { %v8540_v53 = vpop.f32.mrb[21].mxu1  ;;  %v8640_v9 = vpop.f32.mrb[45].mxu0 }
 0x54d   :  { %v8541_v60 = vadd.f32 %v8540_v53, %v8539_v39  ;;  %v8641_v3 = vadd.f32 %v8640_v9, %v8639_v27  ;;  %v8542_v62 = vpop.f32.mrb[22].mxu1  ;;  %v8642_v23 = vpop.f32.mrb[46].mxu0 }
 0x54e   :  { %v8543_v16 = vpop.f32.mrb[23].mxu1  ;;  %v8643_v35 = vpop.f32.mrb[47].mxu0 }
 0x54f   :  { %v4008_v63 = vadd.f32 %v8541_v60, %v11650_v10  ;;  %v8544_v6 = vadd.f32 %v8543_v16, %v8542_v62  ;;  %v8644_v59 = vadd.f32 %v8643_v35, %v8642_v23  ;;  %v11742_v54 = vadd.f32 %v8641_v3, %v3992_v31 }
 0x551   :  { %v4011_v58 = vadd.f32 %v8544_v6, %v11653_v25  ;;  %v11745_v2 = vadd.f32 %v8644_v59, %v3995_v5 }
 0x553   :  { %v8545_v1 = vpop.f32.mrb[24].mxu1  ;;  %v8645_v34 = vpop.f32.mrb[48].mxu0 }
 0x554   :  { %v8546_v52 = vpop.f32.mrb[25].mxu1  ;;  %v8646_v19 = vpop.f32.mrb[49].mxu0 }
 0x555   :  { %v8547_v18 = vadd.f32 %v8546_v52, %v8545_v1  ;;  %v8647_v21 = vadd.f32 %v8646_v19, %v8645_v34  ;;  %v8548_v29 = vpop.f32.mrb[26].mxu1  ;;  %v8648_v42 = vpop.f32.mrb[50].mxu0  ;;  %v11763_v1 = vld [vmem:[%s12547_s5] ss:$0 sm:$0xff] }
 0x556   :  { %v8549_v33 = vpop.f32.mrb[27].mxu1  ;;  %v8649_v13 = vpop.f32.mrb[51].mxu0 }
 0x557   :  { %v4016_v10 = vadd.f32 %v8547_v18, %v11659_v14  ;;  %v8550_v26 = vadd.f32 %v8549_v33, %v8548_v29  ;;  %v8650_v61 = vadd.f32 %v8649_v13, %v8648_v42  ;;  %v11748_v31 = vadd.f32 %v8647_v21, %v4000_v4 }
 0x559   :  { %v4019_v25 = vadd.f32 %v8550_v26, %v11662_v56  ;;  %v11751_v5 = vadd.f32 %v8650_v61, %v4003_v55 }
 0x55b   :  { %v8551_v41 = vpop.f32.mrb[28].mxu1  ;;  %v8651_v8 = vpop.f32.mrb[52].mxu0 }
 0x55c   :  { %v8552_v0 = vpop.f32.mrb[29].mxu1  ;;  %v8652_v39 = vpop.f32.mrb[53].mxu0 }
 0x55d   :  { %v8553_v27 = vadd.f32 %v8552_v0, %v8551_v41  ;;  %v8653_v53 = vadd.f32 %v8652_v39, %v8651_v8  ;;  %v8554_v9 = vpop.f32.mrb[30].mxu1  ;;  %v8654_v60 = vpop.f32.mrb[54].mxu0 }
 0x55e   :  { %v8555_v3 = vpop.f32.mrb[31].mxu1  ;;  %v8655_v62 = vpop.f32.mrb[55].mxu0 }
 0x55f   :  { %v4024_v14 = vadd.f32 %v8553_v27, %v11665_v40  ;;  %v8556_v23 = vadd.f32 %v8555_v3, %v8554_v9  ;;  %v8656_v16 = vadd.f32 %v8655_v62, %v8654_v60  ;;  %v11754_v4 = vadd.f32 %v8653_v53, %v4008_v63 }
 0x561   :  { %v4027_v56 = vadd.f32 %v8556_v23, %v11672_v28  ;;  %v11757_v55 = vadd.f32 %v8656_v16, %v4011_v58  ;;  %v11769_v28 = vld [vmem:[%s12548_s6] ss:$0 sm:$0xff] }
 0x563   :  { %v8657_v35 = vpop.f32.mrb[56].mxu0  ;;  %v8971_v6 = vpop.f32.mrb[32].mxu1 }
 0x564   :  { %v4234_v59 = vadd.f32 %v8971_v6, %v11682_v47  ;;  %v8658_v34 = vpop.f32.mrb[57].mxu0  ;;  %v4225_v52 = vpop.f32.mrb[33].mxu1 }
 0x565   :  { %v8659_v40 = vadd.f32 %v8658_v34, %v8657_v35  ;;  %v4226_v19 = vadd.f32 %v4225_v52, %v11676_v38  ;;  %v8660_v63 = vpop.f32.mrb[58].mxu0  ;;  %v8972_v18 = vpop.f32.mrb[34].mxu1  ;;  %v9569_v35 = vld [vmem:[%s12549_s7 + $0x60] sm:$0xff]  }
 0x566   :  { %v4237_v58 = vadd.f32 %v8972_v18, %v11685_v20  ;;  %v8661_v47 = vpop.f32.mrb[59].mxu0  ;;  %v4228_v21 = vpop.f32.mrb[35].mxu1 }
 0x567   :  { %v4359_v29 = vmul.f32 %v11763_v1, %v4226_v19  ;;  %v8662_v42 = vadd.f32 %v8661_v47, %v8660_v63  ;;  %v4229_v33 = vadd.f32 %v4228_v21, %v11679_v44  ;;  %v11774_v13 = vadd.f32 %v8659_v40, %v4016_v10  ;;  %v9568_v44 = vld [vmem:[%s12549_s7 + $0x40] sm:$0xff]   ;;  %v9571_v19 = vld [vmem:[%s12549_s7 + $0x68] sm:$0xff]  }
 0x568   :  { %v4361_v40 = vmul.f32 %v11763_v1, %v4234_v59  ;;  %v4362_v63 = vmul.f32 %v11763_v1, %v4237_v58 }
 0x569   :  { %v4398_v38 = vadd.f32 %v11769_v28, %v4359_v29  ;;  %v4360_v26 = vmul.f32 %v11763_v1, %v4229_v33  ;;  %v11778_v61 = vadd.f32 %v8662_v42, %v4019_v25 }
 0x56a   :  { %v4400_v47 = vadd.f32 %v11769_v28, %v4361_v40 }
 0x56b   :  { %v4430_v41 = vmax.f32 %v4398_v38, 0.0  ;;  %v4399_v8 = vadd.f32 %v11769_v28, %v4360_v26  ;;  %v8663_v0 = vpop.f32.mrb[60].mxu0  ;;  %v8975_v20 = vpop.f32.mrb[36].mxu1  ;;  %v4401_v38 = vadd.f32 %v11769_v28, %v4362_v63 }
 0x56c   :  { %v11782_v39 = vadd.f32 %v8975_v20, %v11694_v51  ;;  %v8664_v27 = vpop.f32.mrb[61].mxu0  ;;  %v4241_v53 = vpop.f32.mrb[37].mxu1 }
 0x56d   :  { %v7685_v10 = vpack.c.bf16 %v4430_v41, %v4430_v41  ;;  %v4431_v9 = vmax.f32 %v4399_v8, 0.0  ;;  %v8665_v60 = vadd.f32 %v8664_v27, %v8663_v0  ;;  %v11788_v25 = vadd.f32 %v4241_v53, %v11688_v37  ;;  %v8666_v3 = vpop.f32.mrb[62].mxu0  ;;  %v8976_v62 = vpop.f32.mrb[38].mxu1  ;;  %v9570_v37 = vld [vmem:[%s12549_s7 + $0x48] sm:$0xff]   ;;  %v9575_v53 = vld [vmem:[%s12549_s7 + $0x78] sm:$0xff]  }
 0x56e   :  { %v11791_v23 = vadd.f32 %v8976_v62, %v11697_v36  ;;  %v8667_v16 = vpop.f32.mrb[63].mxu0  ;;  %v4244_v51 = vpop.f32.mrb[39].mxu1  ;;  %v4432_v0 = vmax.f32 %v4400_v47, 0.0  ;;  %v9576_v62 = vld [vmem:[%s12549_s7 + $0x80] sm:$0xff]   ;;  %v9579_v47 = vld [vmem:[%s12549_s7 + $0xa8] sm:$0xff]  }
 0x56f   :  { %v7686_v6 = vpack.c.bf16 %v4431_v9, %v4431_v9  ;;  %v8668_v34 = vadd.f32 %v8667_v16, %v8666_v3  ;;  %v11797_v52 = vadd.f32 %v4244_v51, %v11691_v12  ;;  %9010 = vmatmul.mubr.msk.bf16.vlgmr.msra.gmra.mrb[64].mxu0 %vm954_vm2, %v7685_v10  ;;  %v11805_v36 = vadd.f32 %v8665_v60, %v4024_v14 }
 0x570   :  { %9026 = vmatpush3.bf16.msra.mxu0 %v9568_v44  ;;  %9033 = vmatprep.mubr.msk.bf16.mxu0 %vm9715_vm3, %v9714_v57  ;;  %v4433_v44 = vmax.f32 %v4401_v38, 0.0  ;;  %v7687_v16 = vpack.c.bf16 %v4432_v0, %v4432_v0 }
 0x571   :  { %9022 = vmatmul.mubr.msk.bf16.vlgmr.msra.gmra.mrb[64].mxu1 %vm954_vm2, %v7686_v6  ;;  %9027 = vmatprep.subr.bf16.mxu0 %v9714_v57  ;;  %v11810_v12 = vadd.f32 %v8668_v34, %v4027_v56  ;;  %v9572_v56 = vld [vmem:[%s12549_s7 + $0x50] sm:$0xff]  }
 0x572   :  { %9038 = vmatpush3.bf16.msra.mxu1 %v9569_v35  ;;  %9045 = vmatprep.mubr.msk.bf16.mxu1 %vm9715_vm3, %v9714_v57  ;;  %v7688_v40 = vpack.c.bf16 %v4433_v44, %v4433_v44 }
 0x573   :  { %v8979_v14 = vpop.f32.mrb[40].mxu1  ;;  %9039 = vmatprep.subr.bf16.mxu1 %v9714_v57 }
 0x574   :  { %v4266_v59 = vadd.f32 %v8979_v14, %v11706_v43  ;;  %9028 = vmatpush3.bf16.msra.mxu0 %v9570_v37  ;;  %v4257_v18 = vpop.f32.mrb[41].mxu1  ;;  %v9573_v43 = vld [vmem:[%s12549_s7 + $0x70] sm:$0xff]   ;;  %v9578_v14 = vld [vmem:[%s12549_s7 + $0x88] sm:$0xff]  }
 0x575   :  { %v4258_v21 = vadd.f32 %v4257_v18, %v11700_v48  ;;  %v8980_v29 = vpop.f32.mrb[42].mxu1  ;;  %9029 = vmatprep.subr.bf16.mxu0 %v9714_v57 }
 0x576   :  { %v4369_v58 = vmul.f32 %v11763_v1, %v4266_v59  ;;  %v4269_v42 = vadd.f32 %v8980_v29, %v11709_v7  ;;  %9040 = vmatpush3.bf16.msra.mxu1 %v9571_v19  ;;  %v4260_v33 = vpop.f32.mrb[43].mxu1  ;;  %v9574_v7 = vld [vmem:[%s12549_s7 + $0x58] sm:$0xff]  }
 0x577   :  { %v4367_v26 = vmul.f32 %v11763_v1, %v4258_v21  ;;  %v4261_v41 = vadd.f32 %v4260_v33, %v11703_v24  ;;  %9041 = vmatprep.subr.bf16.mxu1 %v9714_v57  ;;  %v9580_v33 = vld [vmem:[%s12549_s7 + $0x90] sm:$0xff]  }
 0x578   :  { %v11836_v48 = vadd.f32 %v11769_v28, %v4369_v58  ;;  %v4370_v8 = vmul.f32 %v11763_v1, %v4269_v42  ;;  %9030 = vmatpush3.bf16.msra.mxu0 %v9572_v56 }
 0x579   :  { %v11843_v20 = vadd.f32 %v11769_v28, %v4367_v26  ;;  %v4368_v27 = vmul.f32 %v11763_v1, %v4261_v41  ;;  %9031 = vmatprep.subr.bf16.mxu0 %v9714_v57 }
 0x57a   :  { %v11848_v24 = vadd.f32 %v11769_v28, %v4370_v8  ;;  %9042 = vmatpush3.bf16.msra.mxu1 %v9573_v43 }
 0x57b   :  { %v11854_v10 = vadd.f32 %v11769_v28, %v4368_v27  ;;  %v8983_v9 = vpop.f32.mrb[44].mxu1  ;;  %9043 = vmatprep.subr.bf16.mxu1 %v9714_v57 }
 0x57c   :  { %v4282_v60 = vadd.f32 %v8983_v9, %v11718_v45  ;;  %9032 = vmatpush3.bf16.msra.mxu0 %v9574_v7  ;;  %v4273_v3 = vpop.f32.mrb[45].mxu1  ;;  %v9577_v45 = vld [vmem:[%s12549_s7 + $0xa0] sm:$0xff]  }
 0x57d   :  { %v4274_v51 = vadd.f32 %v4273_v3, %v11712_v22  ;;  %v8984_v35 = vpop.f32.mrb[46].mxu1  ;;  %9049 = vmatprep.subr.bf16.mxu0 %v9714_v57  ;;  %v9583_v3 = vld [vmem:[%s12549_s7 + $0xb8] sm:$0xff]  }
 0x57e   :  { %v4373_v6 = vmul.f32 %v11763_v1, %v4282_v60  ;;  %v4285_v34 = vadd.f32 %v8984_v35, %v11721_v15  ;;  %9044 = vmatpush3.bf16.msra.mxu1 %v9575_v53  ;;  %v4276_v37 = vpop.f32.mrb[47].mxu1 }
 0x57f   :  { %v4371_v19 = vmul.f32 %v11763_v1, %v4274_v51  ;;  %v4277_v63 = vadd.f32 %v4276_v37, %v11715_v17  ;;  %9034 = vmatmul.mubr.msk.bf16.vlgmr.msra.gmra.mrb[68].mxu0 %vm954_vm2, %v7687_v16  ;;  %9061 = vmatprep.subr.bf16.mxu1 %v9714_v57  ;;  %v4363_v17 = vmul.f32 %v11763_v1, %v11788_v25 }
 0x580   :  { %v11873_v22 = vadd.f32 %v11769_v28, %v4373_v6  ;;  %v4374_v15 = vmul.f32 %v11763_v1, %v4285_v34  ;;  %9050 = vmatpush3.bf16.msra.mxu0 %v9576_v62  ;;  %9057 = vmatprep.mubr.msk.bf16.mxu0 %vm9715_vm3, %v9714_v57  ;;  %v4364_v25 = vmul.f32 %v11763_v1, %v11797_v52  ;;  %v9584_v34 = vld [vmem:[%s12549_s7 + $0xc0] sm:$0xff]  }
 0x581   :  { %v11884_v59 = vadd.f32 %v11769_v28, %v4371_v19  ;;  %v4372_v18 = vmul.f32 %v11763_v1, %v4277_v63  ;;  %9046 = vmatmul.mubr.msk.bf16.vlgmr.msra.gmra.mrb[68].mxu1 %vm954_vm2, %v7688_v40  ;;  %9051 = vmatprep.subr.bf16.mxu0 %v9714_v57  ;;  %v4402_v43 = vadd.f32 %v11769_v28, %v4363_v17 }
 0x582   :  { %v11890_v56 = vadd.f32 %v11769_v28, %v4374_v15  ;;  %9062 = vmatpush3.bf16.msra.mxu1 %v9577_v45  ;;  %9069 = vmatprep.mubr.msk.bf16.mxu1 %vm9715_vm3, %v9714_v57  ;;  %v4403_v7 = vadd.f32 %v11769_v28, %v4364_v25 }
 0x583   :  { %v11900_v21 = vadd.f32 %v11769_v28, %v4372_v18  ;;  %v8987_v29 = vpop.f32.mrb[48].mxu1  ;;  %9063 = vmatprep.subr.bf16.mxu1 %v9714_v57  ;;  %v4434_v44 = vmax.f32 %v4402_v43, 0.0 }
 0x584   :  { %v4298_v58 = vadd.f32 %v8987_v29, %v11730_v32  ;;  %9052 = vmatpush3.bf16.msra.mxu0 %v9578_v14  ;;  %v4289_v42 = vpop.f32.mrb[49].mxu1  ;;  %v9581_v32 = vld [vmem:[%s12549_s7 + $0xb0] sm:$0xff]   ;;  %v4435_v62 = vmax.f32 %v4403_v7, 0.0 }
 0x585   :  { %v4290_v38 = vadd.f32 %v4289_v42, %v11724_v11  ;;  %v8988_v26 = vpop.f32.mrb[50].mxu1  ;;  %9053 = vmatprep.subr.bf16.mxu0 %v9714_v57  ;;  %v7689_v37 = vpack.c.bf16 %v4434_v44, %v4434_v44  ;;  %v9587_v42 = vld [vmem:[%s12549_s7 + $0xe8] sm:$0xff]  }
 0x586   :  { %v4377_v52 = vmul.f32 %v11763_v1, %v4298_v58  ;;  %v4301_v41 = vadd.f32 %v8988_v26, %v11733_v30  ;;  %9064 = vmatpush3.bf16.msra.mxu1 %v9579_v47  ;;  %v4292_v8 = vpop.f32.mrb[51].mxu1  ;;  %v9582_v30 = vld [vmem:[%s12549_s7 + $0x98] sm:$0xff]   ;;  %v7690_v14 = vpack.c.bf16 %v4435_v62, %v4435_v62  ;;  %v9586_v47 = vld [vmem:[%s12549_s7 + $0xc8] sm:$0xff]  }
 0x587   :  { %v4375_v0 = vmul.f32 %v11763_v1, %v4290_v38  ;;  %v4293_v27 = vadd.f32 %v4292_v8, %v11727_v49  ;;  %9065 = vmatprep.subr.bf16.mxu1 %v9714_v57 }
 0x588   :  { %v11920_v11 = vadd.f32 %v11769_v28, %v4377_v52  ;;  %v4378_v53 = vmul.f32 %v11763_v1, %v4301_v41  ;;  %9054 = vmatpush3.bf16.msra.mxu0 %v9580_v33  ;;  %v9588_v52 = vld [vmem:[%s12549_s7 + $0xd0] sm:$0xff]  }
 0x589   :  { %v11927_v9 = vadd.f32 %v11769_v28, %v4375_v0  ;;  %v4376_v60 = vmul.f32 %v11763_v1, %v4293_v27  ;;  %9055 = vmatprep.subr.bf16.mxu0 %v9714_v57 }
 0x58a   :  { %v11932_v49 = vadd.f32 %v11769_v28, %v4378_v53  ;;  %9066 = vmatpush3.bf16.msra.mxu1 %v9581_v32 }
 0x58b   :  { %v11938_v16 = vadd.f32 %v11769_v28, %v4376_v60  ;;  %v8991_v51 = vpop.f32.mrb[52].mxu1  ;;  %9067 = vmatprep.subr.bf16.mxu1 %v9714_v57 }
 0x58c   :  { %v4314_v35 = vadd.f32 %v8991_v51, %v11742_v54  ;;  %9056 = vmatpush3.bf16.msra.mxu0 %v9582_v30  ;;  %v4305_v6 = vpop.f32.mrb[53].mxu1  ;;  %v9585_v54 = vld [vmem:[%s12549_s7 + $0xe0] sm:$0xff]   ;;  %v9591_v51 = vld [vmem:[%s12549_s7 + $0xf8] sm:$0xff]  }
 0x58d   :  { %v4306_v45 = vadd.f32 %v4305_v6, %v11736_v46  ;;  %v8992_v40 = vpop.f32.mrb[54].mxu1  ;;  %9073 = vmatprep.subr.bf16.mxu0 %v9714_v57 }
 0x58e   :  { %v4381_v19 = vmul.f32 %v11763_v1, %v4314_v35  ;;  %v4317_v63 = vadd.f32 %v8992_v40, %v11745_v2  ;;  %9068 = vmatpush3.bf16.msra.mxu1 %v9583_v3  ;;  %v4308_v15 = vpop.f32.mrb[55].mxu1  ;;  %v9592_v40 = vld [vmem:[%s12549_s7 + $0x100] sm:$0xff]  }
 0x58f   :  { %v4379_v17 = vmul.f32 %v11763_v1, %v4306_v45  ;;  %v4309_v18 = vadd.f32 %v4308_v15, %v11739_v50  ;;  %9058 = vmatmul.mubr.msk.bf16.vlgmr.msra.gmra.mrb[72].mxu0 %vm954_vm2, %v7689_v37  ;;  %9085 = vmatprep.subr.bf16.mxu1 %v9714_v57  ;;  %v4365_v50 = vmul.f32 %v11763_v1, %v11782_v39 }
 0x590   :  { %v11957_v46 = vadd.f32 %v11769_v28, %v4381_v19  ;;  %v4382_v2 = vmul.f32 %v11763_v1, %v4317_v63  ;;  %9074 = vmatpush3.bf16.msra.mxu0 %v9584_v34  ;;  %9081 = vmatprep.mubr.msk.bf16.mxu0 %vm9715_vm3, %v9714_v57  ;;  %v4366_v39 = vmul.f32 %v11763_v1, %v11791_v23 }
 0x591   :  { %v11968_v25 = vadd.f32 %v11769_v28, %v4379_v17  ;;  %v4380_v29 = vmul.f32 %v11763_v1, %v4309_v18  ;;  %9070 = vmatmul.mubr.msk.bf16.vlgmr.msra.gmra.mrb[72].mxu1 %vm954_vm2, %v7690_v14  ;;  %9075 = vmatprep.subr.bf16.mxu0 %v9714_v57  ;;  %v4404_v41 = vadd.f32 %v11769_v28, %v4365_v50  ;;  %v9594_v50 = vld [vmem:[%s12549_s7 + $0x108] sm:$0xff]  }
 0x592   :  { %v11974_v58 = vadd.f32 %v11769_v28, %v4382_v2  ;;  %9086 = vmatpush3.bf16.msra.mxu1 %v9585_v54  ;;  %9093 = vmatprep.mubr.msk.bf16.mxu1 %vm9715_vm3, %v9714_v57  ;;  %v4405_v27 = vadd.f32 %v11769_v28, %v4366_v39  ;;  %v9595_v39 = vld [vmem:[%s12549_s7 + $0x128] sm:$0xff]  }
 0x593   :  { %v11984_v33 = vadd.f32 %v11769_v28, %v4380_v29  ;;  %v8995_v43 = vpop.f32.mrb[56].mxu1  ;;  %9087 = vmatprep.subr.bf16.mxu1 %v9714_v57  ;;  %v4436_v60 = vmax.f32 %v4404_v41, 0.0  ;;  %v4439_v41 = vmax.f32 %v11854_v10, 0.0  ;;  %v9602_v10 = vld [vmem:[%s12549_s7 + $0x148] sm:$0xff]  }
 0x594   :  { %v4330_v38 = vadd.f32 %v8995_v43, %v11754_v4  ;;  %9076 = vmatpush3.bf16.msra.mxu0 %v9586_v47  ;;  %v4321_v26 = vpop.f32.mrb[57].mxu1  ;;  %v9589_v4 = vld [vmem:[%s12549_s7 + $0xf0] sm:$0xff]   ;;  %v4437_v35 = vmax.f32 %v4405_v27, 0.0  ;;  %v9606_v27 = vld [vmem:[%s12549_s7 + $0x158] sm:$0xff]  }
 0x595   :  { %v4322_v8 = vadd.f32 %v4321_v26, %v11748_v31  ;;  %v8996_v32 = vpop.f32.mrb[58].mxu1  ;;  %9077 = vmatprep.subr.bf16.mxu0 %v9714_v57  ;;  %v7691_v19 = vpack.c.bf16 %v4436_v60, %v4436_v60  ;;  %v4438_v26 = vmax.f32 %v11843_v20, 0.0  ;;  %v9601_v20 = vld [vmem:[%s12549_s7 + $0x160] sm:$0xff]  }
 0x596   :  { %v4385_v23 = vmul.f32 %v11763_v1, %v4330_v38  ;;  %v4333_v7 = vadd.f32 %v8996_v32, %v11757_v55  ;;  %9088 = vmatpush3.bf16.msra.mxu1 %v9587_v42  ;;  %v4324_v0 = vpop.f32.mrb[59].mxu1  ;;  %v9590_v55 = vld [vmem:[%s12549_s7 + $0xd8] sm:$0xff]   ;;  %v7692_v18 = vpack.c.bf16 %v4437_v35, %v4437_v35  ;;  %v9597_v38 = vld [vmem:[%s12549_s7 + $0x130] sm:$0xff]  }
 0x597   :  { %v4383_v53 = vmul.f32 %v11763_v1, %v4322_v8  ;;  %v4325_v30 = vadd.f32 %v4324_v0, %v11751_v5  ;;  %9089 = vmatprep.subr.bf16.mxu1 %v9714_v57  ;;  %v9600_v8 = vld [vmem:[%s12549_s7 + $0x140] sm:$0xff]   ;;  %v7693_v32 = vpack.c.bf16 %v4438_v26, %v4438_v26  ;;  %v9604_v0 = vld [vmem:[%s12549_s7 + $0x150] sm:$0xff]   ;;  %v9630_v26 = vld [vmem:[%s12549_s7 + $0x218] sm:$0xff]  }
 0x598   :  { %v12004_v31 = vadd.f32 %v11769_v28, %v4385_v23  ;;  %v4386_v44 = vmul.f32 %v11763_v1, %v4333_v7  ;;  %9078 = vmatpush3.bf16.msra.mxu0 %v9588_v52  ;;  %v9599_v52 = vld [vmem:[%s12549_s7 + $0x138] sm:$0xff]   ;;  %v7694_v23 = vpack.c.bf16 %v4439_v41, %v4439_v41  ;;  %v9603_v7 = vld [vmem:[%s12549_s7 + $0x168] sm:$0xff]   ;;  %v9612_v35 = vld [vmem:[%s12549_s7 + $0x190] sm:$0xff]  }
 0x599   :  { %v12011_v3 = vadd.f32 %v11769_v28, %v4383_v53  ;;  %v4384_v62 = vmul.f32 %v11763_v1, %v4325_v30  ;;  %9079 = vmatprep.subr.bf16.mxu0 %v9714_v57  ;;  %v4440_v53 = vmax.f32 %v11836_v48, 0.0  ;;  %v9607_v30 = vld [vmem:[%s12549_s7 + $0x178] sm:$0xff]   ;;  %v9609_v48 = vld [vmem:[%s12549_s7 + $0x1a0] sm:$0xff]  }
 0x59a   :  { %v12016_v5 = vadd.f32 %v11769_v28, %v4386_v44  ;;  %9090 = vmatpush3.bf16.msra.mxu1 %v9589_v4  ;;  %v9605_v4 = vld [vmem:[%s12549_s7 + $0x170] sm:$0xff]   ;;  %v4441_v44 = vmax.f32 %v11848_v24, 0.0  ;;  %v9610_v24 = vld [vmem:[%s12549_s7 + $0x188] sm:$0xff]   ;;  %v9631_v41 = vld [vmem:[%s12549_s7 + $0x238] sm:$0xff]  }
 0x59b   :  { %v12022_v6 = vadd.f32 %v11769_v28, %v4384_v62  ;;  %v8999_v34 = vpop.f32.mrb[60].mxu1  ;;  %9091 = vmatprep.subr.bf16.mxu1 %v9714_v57  ;;  %v7695_v60 = vpack.c.bf16 %v4440_v53, %v4440_v53  ;;  %v9639_v53 = vld [vmem:[%s12549_s7 + $0x278] sm:$0xff]  }
 0x59c   :  { %v4346_v37 = vadd.f32 %v8999_v34, %v11805_v36  ;;  %9080 = vmatpush3.bf16.msra.mxu0 %v9590_v55  ;;  %v4337_v45 = vpop.f32.mrb[61].mxu1  ;;  %v9593_v36 = vld [vmem:[%s12549_s7 + $0x120] sm:$0xff]   ;;  %v7696_v62 = vpack.c.bf16 %v4441_v44, %v4441_v44  ;;  %v9613_v34 = vld [vmem:[%s12549_s7 + $0x1b0] sm:$0xff]  }
 0x59d   :  { %v4338_v63 = vadd.f32 %v4337_v45, %v11774_v13  ;;  %v9000_v15 = vpop.f32.mrb[62].mxu1  ;;  %9097 = vmatprep.subr.bf16.mxu0 %v9714_v57  ;;  %v9608_v55 = vld [vmem:[%s12549_s7 + $0x180] sm:$0xff]   ;;  %v4442_v45 = vmax.f32 %v11884_v59, 0.0 }
 0x59e   :  { %v4389_v54 = vmul.f32 %v11763_v1, %v4346_v37  ;;  %v4349_v14 = vadd.f32 %v9000_v15, %v11810_v12  ;;  %9092 = vmatpush3.bf16.msra.mxu1 %v9591_v51  ;;  %v4340_v17 = vpop.f32.mrb[63].mxu1  ;;  %v9611_v51 = vld [vmem:[%s12549_s7 + $0x1a8] sm:$0xff]   ;;  %v9614_v37 = vld [vmem:[%s12549_s7 + $0x198] sm:$0xff]   ;;  %v9617_v59 = vld [vmem:[%s12549_s7 + $0x1e0] sm:$0xff]  }
 0x59f   :  { %v4387_v2 = vmul.f32 %v11763_v1, %v4338_v63  ;;  %v4341_v47 = vadd.f32 %v4340_v17, %v11778_v61  ;;  %9082 = vmatmul.mubr.msk.bf16.vlgmr.msra.gmra.mrb[76].mxu0 %vm954_vm2, %v7691_v19  ;;  %9109 = vmatprep.subr.bf16.mxu1 %v9714_v57  ;;  %v4443_v19 = vmax.f32 %v11900_v21, 0.0  ;;  %v9616_v63 = vld [vmem:[%s12549_s7 + $0x1c0] sm:$0xff]   ;;  %v7697_v15 = vpack.c.bf16 %v4442_v45, %v4442_v45  ;;  %v9618_v21 = vld [vmem:[%s12549_s7 + $0x1c8] sm:$0xff]   ;;  %v9620_v17 = vld [vmem:[%s12549_s7 + $0x1d0] sm:$0xff]  }
 0x5a0   :  { %v12041_v13 = vadd.f32 %v11769_v28, %v4389_v54  ;;  %v4390_v12 = vmul.f32 %v11763_v1, %v4349_v14  ;;  %9098 = vmatpush3.bf16.msra.mxu0 %v9592_v40  ;;  %9105 = vmatprep.mubr.msk.bf16.mxu0 %vm9715_vm3, %v9714_v57  ;;  %v9615_v40 = vld [vmem:[%s12549_s7 + $0x1b8] sm:$0xff]   ;;  %v9619_v14 = vld [vmem:[%s12549_s7 + $0x1e8] sm:$0xff]   ;;  %v9640_v44 = vld [vmem:[%s12549_s7 + $0x280] sm:$0xff]  }
 0x5a1   :  { %v12050_v29 = vadd.f32 %v11769_v28, %v4387_v2  ;;  %v4388_v61 = vmul.f32 %v11763_v1, %v4341_v47  ;;  %9094 = vmatmul.mubr.msk.bf16.vlgmr.msra.gmra.mrb[76].mxu1 %vm954_vm2, %v7692_v18  ;;  %9099 = vmatprep.subr.bf16.mxu0 %v9714_v57  ;;  %v9596_v1 = vld [vmem:[%s12549_s7 + $0x110] sm:$0xff]   ;;  %v7698_v54 = vpack.c.bf16 %v4443_v19, %v4443_v19  ;;  %v9622_v18 = vld [vmem:[%s12549_s7 + $0x1d8] sm:$0xff]   ;;  %v4444_v2 = vmax.f32 %v11873_v22, 0.0  ;;  %v9625_v22 = vld [vmem:[%s12549_s7 + $0x220] sm:$0xff]  }
 0x5a2   :  { %v12056_v42 = vadd.f32 %v11769_v28, %v4390_v12  ;;  %9110 = vmatpush3.bf16.msra.mxu1 %v9593_v36  ;;  %9117 = vmatprep.mubr.msk.bf16.mxu1 %vm9715_vm3, %v9714_v57  ;;  %v9621_v36 = vld [vmem:[%s12549_s7 + $0x1f0] sm:$0xff]   ;;  %v9623_v47 = vld [vmem:[%s12549_s7 + $0x1f8] sm:$0xff]   ;;  %v4445_v12 = vmax.f32 %v11890_v56, 0.0  ;;  %v9626_v56 = vld [vmem:[%s12549_s7 + $0x208] sm:$0xff]  }
 0x5a3   :  { %v12064_v43 = vadd.f32 %v11769_v28, %v4388_v61  ;;  %9111 = vmatprep.subr.bf16.mxu1 %v9714_v57  ;;  %v9598_v28 = vld [vmem:[%s12549_s7 + $0x118] sm:$0xff]   ;;  %v7699_v61 = vpack.c.bf16 %v4444_v2, %v4444_v2  ;;  %v9648_v45 = vld [vmem:[%s12549_s7 + $0x2c0] sm:$0xff]  }
 0x5a4   :  { %9100 = vmatpush3.bf16.msra.mxu0 %v9594_v50  ;;  %v9624_v50 = vld [vmem:[%s12549_s7 + $0x200] sm:$0xff]  }
 0x5a5   :  { %9101 = vmatprep.subr.bf16.mxu0 %v9714_v57 }
 0x5a6   :  { %9112 = vmatpush3.bf16.msra.mxu1 %v9595_v39  ;;  %v7700_v39 = vpack.c.bf16 %v4445_v12, %v4445_v12  ;;  %v9660_v12 = vld [vmem:[%s12549_s7 + $0x310] sm:$0xff]  }
 0x5a7   :  { %9113 = vmatprep.subr.bf16.mxu1 %v9714_v57 }
 0x5a8   :  { %9102 = vmatpush3.bf16.msra.mxu0 %v9596_v1  ;;  %v9627_v1 = vld [vmem:[%s12549_s7 + $0x228] sm:$0xff]  }
 0x5a9   :  { %9103 = vmatprep.subr.bf16.mxu0 %v9714_v57 }
 0x5aa   :  { %9114 = vmatpush3.bf16.msra.mxu1 %v9597_v38  ;;  %v9628_v38 = vld [vmem:[%s12549_s7 + $0x210] sm:$0xff]  }
 0x5ab   :  { %9115 = vmatprep.subr.bf16.mxu1 %v9714_v57 }
 0x5ac   :  { %9104 = vmatpush3.bf16.msra.mxu0 %v9598_v28  ;;  %v9629_v28 = vld [vmem:[%s12549_s7 + $0x230] sm:$0xff]  }
 0x5ad   :  { %9121 = vmatprep.subr.bf16.mxu0 %v9714_v57 }
 0x5ae   :  { %9116 = vmatpush3.bf16.msra.mxu1 %v9599_v52  ;;  %v4446_v52 = vmax.f32 %v11927_v9, 0.0  ;;  %v9633_v9 = vld [vmem:[%s12549_s7 + $0x260] sm:$0xff]  }
 0x5af   :  { %9106 = vmatmul.mubr.msk.bf16.vlgmr.msra.gmra.mrb[80].mxu0 %vm954_vm2, %v7693_v32  ;;  %9133 = vmatprep.subr.bf16.mxu1 %v9714_v57  ;;  %v9632_v32 = vld [vmem:[%s12549_s7 + $0x240] sm:$0xff]  }
 0x5b0   :  { %9122 = vmatpush3.bf16.msra.mxu0 %v9600_v8  ;;  %9129 = vmatprep.mubr.msk.bf16.mxu0 %vm9715_vm3, %v9714_v57  ;;  %v4447_v8 = vmax.f32 %v11938_v16, 0.0  ;;  %v9634_v16 = vld [vmem:[%s12549_s7 + $0x248] sm:$0xff]  }
 0x5b1   :  { %9118 = vmatmul.mubr.msk.bf16.vlgmr.msra.gmra.mrb[80].mxu1 %vm954_vm2, %v7694_v23  ;;  %9123 = vmatprep.subr.bf16.mxu0 %v9714_v57 }
 0x5b2   :  { %9134 = vmatpush3.bf16.msra.mxu1 %v9601_v20  ;;  %9141 = vmatprep.mubr.msk.bf16.mxu1 %vm9715_vm3, %v9714_v57  ;;  %v7701_v20 = vpack.c.bf16 %v4446_v52, %v4446_v52  ;;  %v7702_v23 = vpack.c.bf16 %v4447_v8, %v4447_v8  ;;  %v9668_v52 = vld [vmem:[%s12549_s7 + $0x350] sm:$0xff]   ;;  %v9670_v8 = vld [vmem:[%s12549_s7 + $0x358] sm:$0xff]  }
 0x5b3   :  { %9135 = vmatprep.subr.bf16.mxu1 %v9714_v57 }
 0x5b4   :  { %9124 = vmatpush3.bf16.msra.mxu0 %v9602_v10  ;;  %v9635_v10 = vld [vmem:[%s12549_s7 + $0x268] sm:$0xff]  }
 0x5b5   :  { %9125 = vmatprep.subr.bf16.mxu0 %v9714_v57 }
 0x5b6   :  { %9136 = vmatpush3.bf16.msra.mxu1 %v9603_v7  ;;  %v9636_v7 = vld [vmem:[%s12549_s7 + $0x250] sm:$0xff]  }
 0x5b7   :  { %9137 = vmatprep.subr.bf16.mxu1 %v9714_v57 }
 0x5b8   :  { %9126 = vmatpush3.bf16.msra.mxu0 %v9604_v0  ;;  %v9637_v0 = vld [vmem:[%s12549_s7 + $0x270] sm:$0xff]  }
 0x5b9   :  { %9127 = vmatprep.subr.bf16.mxu0 %v9714_v57 }
 0x5ba   :  { %9138 = vmatpush3.bf16.msra.mxu1 %v9605_v4  ;;  %v9638_v4 = vld [vmem:[%s12549_s7 + $0x258] sm:$0xff]  }
 0x5bb   :  { %9139 = vmatprep.subr.bf16.mxu1 %v9714_v57 }
 0x5bc   :  { %9128 = vmatpush3.bf16.msra.mxu0 %v9606_v27  ;;  %v4448_v27 = vmax.f32 %v11920_v11, 0.0  ;;  %v9641_v11 = vld [vmem:[%s12549_s7 + $0x2a0] sm:$0xff]  }
 0x5bd   :  { %9145 = vmatprep.subr.bf16.mxu0 %v9714_v57 }
 0x5be   :  { %9140 = vmatpush3.bf16.msra.mxu1 %v9607_v30  ;;  %v4449_v30 = vmax.f32 %v11932_v49, 0.0  ;;  %v9642_v49 = vld [vmem:[%s12549_s7 + $0x288] sm:$0xff]  }
 0x5bf   :  { %9130 = vmatmul.mubr.msk.bf16.vlgmr.msra.gmra.mrb[84].mxu0 %vm954_vm2, %v7695_v60  ;;  %9157 = vmatprep.subr.bf16.mxu1 %v9714_v57 }
 0x5c0   :  { %9146 = vmatpush3.bf16.msra.mxu0 %v9608_v55  ;;  %9153 = vmatprep.mubr.msk.bf16.mxu0 %vm9715_vm3, %v9714_v57  ;;  %v7703_v55 = vpack.c.bf16 %v4448_v27, %v4448_v27  ;;  %v7704_v60 = vpack.c.bf16 %v4449_v30, %v4449_v30  ;;  %v9676_v30 = vld [vmem:[%s12549_s7 + $0x390] sm:$0xff]  }
 0x5c1   :  { %9142 = vmatmul.mubr.msk.bf16.vlgmr.msra.gmra.mrb[84].mxu1 %vm954_vm2, %v7696_v62  ;;  %9147 = vmatprep.subr.bf16.mxu0 %v9714_v57  ;;  %v9644_v62 = vld [vmem:[%s12549_s7 + $0x290] sm:$0xff]  }
 0x5c2   :  { %9158 = vmatpush3.bf16.msra.mxu1 %v9609_v48  ;;  %9165 = vmatprep.mubr.msk.bf16.mxu1 %vm9715_vm3, %v9714_v57  ;;  %v9643_v48 = vld [vmem:[%s12549_s7 + $0x2a8] sm:$0xff]  }
 0x5c3   :  { %9159 = vmatprep.subr.bf16.mxu1 %v9714_v57 }
 0x5c4   :  { %9148 = vmatpush3.bf16.msra.mxu0 %v9610_v24  ;;  %v9645_v24 = vld [vmem:[%s12549_s7 + $0x2b0] sm:$0xff]  }
 0x5c5   :  { %9149 = vmatprep.subr.bf16.mxu0 %v9714_v57 }
 0x5c6   :  { %9160 = vmatpush3.bf16.msra.mxu1 %v9611_v51  ;;  %v9646_v51 = vld [vmem:[%s12549_s7 + $0x298] sm:$0xff]  }
 0x5c7   :  { %9161 = vmatprep.subr.bf16.mxu1 %v9714_v57 }
 0x5c8   :  { %9150 = vmatpush3.bf16.msra.mxu0 %v9612_v35  ;;  %v4450_v35 = vmax.f32 %v11968_v25, 0.0  ;;  %v9649_v25 = vld [vmem:[%s12549_s7 + $0x2e0] sm:$0xff]  }
 0x5c9   :  { %9151 = vmatprep.subr.bf16.mxu0 %v9714_v57 }
 0x5ca   :  { %9162 = vmatpush3.bf16.msra.mxu1 %v9613_v34  ;;  %v9647_v34 = vld [vmem:[%s12549_s7 + $0x2b8] sm:$0xff]  }
 0x5cb   :  { %9163 = vmatprep.subr.bf16.mxu1 %v9714_v57 }
 0x5cc   :  { %9152 = vmatpush3.bf16.msra.mxu0 %v9614_v37  ;;  %v4451_v37 = vmax.f32 %v11984_v33, 0.0  ;;  %v9650_v33 = vld [vmem:[%s12549_s7 + $0x2c8] sm:$0xff]  }
 0x5cd   :  { %9169 = vmatprep.subr.bf16.mxu0 %v9714_v57 }
 0x5ce   :  { %9164 = vmatpush3.bf16.msra.mxu1 %v9615_v40  ;;  %v7705_v40 = vpack.c.bf16 %v4450_v35, %v4450_v35  ;;  %v7706_v19 = vpack.c.bf16 %v4451_v37, %v4451_v37  ;;  %v4459_v35 = vmax.f32 %v12064_v43, 0.0  ;;  %v9682_v43 = vld [vmem:[%s12549_s7 + $0x3c8] sm:$0xff]  }
 0x5cf   :  { %9154 = vmatmul.mubr.msk.bf16.vlgmr.msra.gmra.mrb[88].mxu0 %vm954_vm2, %v7697_v15  ;;  %9181 = vmatprep.subr.bf16.mxu1 %v9714_v57  ;;  %v9652_v15 = vld [vmem:[%s12549_s7 + $0x2d0] sm:$0xff]  }
 0x5d0   :  { %9170 = vmatpush3.bf16.msra.mxu0 %v9616_v63  ;;  %9177 = vmatprep.mubr.msk.bf16.mxu0 %vm9715_vm3, %v9714_v57  ;;  %v9651_v63 = vld [vmem:[%s12549_s7 + $0x2e8] sm:$0xff]  }
 0x5d1   :  { %9166 = vmatmul.mubr.msk.bf16.vlgmr.msra.gmra.mrb[88].mxu1 %vm954_vm2, %v7698_v54  ;;  %9171 = vmatprep.subr.bf16.mxu0 %v9714_v57  ;;  %v9654_v54 = vld [vmem:[%s12549_s7 + $0x2d8] sm:$0xff]  }
 0x5d2   :  { %9182 = vmatpush3.bf16.msra.mxu1 %v9617_v59  ;;  %9189 = vmatprep.mubr.msk.bf16.mxu1 %vm9715_vm3, %v9714_v57  ;;  %v9653_v59 = vld [vmem:[%s12549_s7 + $0x2f0] sm:$0xff]  }
 0x5d3   :  { %9183 = vmatprep.subr.bf16.mxu1 %v9714_v57 }
 0x5d4   :  { %9172 = vmatpush3.bf16.msra.mxu0 %v9618_v21  ;;  %v4452_v21 = vmax.f32 %v11957_v46, 0.0  ;;  %v9657_v46 = vld [vmem:[%s12549_s7 + $0x320] sm:$0xff]  }
 0x5d5   :  { %9173 = vmatprep.subr.bf16.mxu0 %v9714_v57 }
 0x5d6   :  { %9184 = vmatpush3.bf16.msra.mxu1 %v9619_v14  ;;  %v9655_v14 = vld [vmem:[%s12549_s7 + $0x2f8] sm:$0xff]  }
 0x5d7   :  { %9185 = vmatprep.subr.bf16.mxu1 %v9714_v57 }
 0x5d8   :  { %9174 = vmatpush3.bf16.msra.mxu0 %v9620_v17  ;;  %v4453_v17 = vmax.f32 %v11974_v58, 0.0  ;;  %v9658_v58 = vld [vmem:[%s12549_s7 + $0x308] sm:$0xff]  }
 0x5d9   :  { %9175 = vmatprep.subr.bf16.mxu0 %v9714_v57 }
 0x5da   :  { %9186 = vmatpush3.bf16.msra.mxu1 %v9621_v36  ;;  %v9656_v36 = vld [vmem:[%s12549_s7 + $0x300] sm:$0xff]   ;;  %v7708_v2 = vpack.c.bf16 %v4453_v17, %v4453_v17 }
 0x5db   :  { %9187 = vmatprep.subr.bf16.mxu1 %v9714_v57 }
 0x5dc   :  { %9176 = vmatpush3.bf16.msra.mxu0 %v9622_v18  ;;  %v7707_v18 = vpack.c.bf16 %v4452_v21, %v4452_v21 }
 0x5dd   :  { %9193 = vmatprep.subr.bf16.mxu0 %v9714_v57 }
 0x5de   :  { %9188 = vmatpush3.bf16.msra.mxu1 %v9623_v47  ;;  %v9659_v47 = vld [vmem:[%s12549_s7 + $0x328] sm:$0xff]  }
 0x5df   :  { %9178 = vmatmul.mubr.msk.bf16.vlgmr.msra.gmra.mrb[92].mxu0 %vm954_vm2, %v7699_v61  ;;  %9205 = vmatprep.subr.bf16.mxu1 %v9714_v57  ;;  %v9662_v61 = vld [vmem:[%s12549_s7 + $0x318] sm:$0xff]  }
 0x5e0   :  { %9194 = vmatpush3.bf16.msra.mxu0 %v9624_v50  ;;  %9201 = vmatprep.mubr.msk.bf16.mxu0 %vm9715_vm3, %v9714_v57  ;;  %v9661_v50 = vld [vmem:[%s12549_s7 + $0x330] sm:$0xff]  }
 0x5e1   :  { %9190 = vmatmul.mubr.msk.bf16.vlgmr.msra.gmra.mrb[92].mxu1 %vm954_vm2, %v7700_v39  ;;  %9195 = vmatprep.subr.bf16.mxu0 %v9714_v57  ;;  %v9663_v39 = vld [vmem:[%s12549_s7 + $0x338] sm:$0xff]  }
 0x5e2   :  { %9206 = vmatpush3.bf16.msra.mxu1 %v9625_v22  ;;  %9213 = vmatprep.mubr.msk.bf16.mxu1 %vm9715_vm3, %v9714_v57  ;;  %v4454_v22 = vmax.f32 %v12011_v3, 0.0  ;;  %v9665_v3 = vld [vmem:[%s12549_s7 + $0x360] sm:$0xff]  }
 0x5e3   :  { %9207 = vmatprep.subr.bf16.mxu1 %v9714_v57 }
 0x5e4   :  { %9196 = vmatpush3.bf16.msra.mxu0 %v9626_v56  ;;  %v4455_v56 = vmax.f32 %v12022_v6, 0.0  ;;  %v9666_v6 = vld [vmem:[%s12549_s7 + $0x348] sm:$0xff]  }
 0x5e5   :  { %9197 = vmatprep.subr.bf16.mxu0 %v9714_v57 }
 0x5e6   :  { %9208 = vmatpush3.bf16.msra.mxu1 %v9627_v1  ;;  %v9664_v1 = vld [vmem:[%s12549_s7 + $0x340] sm:$0xff]  }
 0x5e7   :  { %9209 = vmatprep.subr.bf16.mxu1 %v9714_v57 }
 0x5e8   :  { %9198 = vmatpush3.bf16.msra.mxu0 %v9628_v38  ;;  %v7709_v38 = vpack.c.bf16 %v4454_v22, %v4454_v22 }
 0x5e9   :  { %9199 = vmatprep.subr.bf16.mxu0 %v9714_v57 }
 0x5ea   :  { %9210 = vmatpush3.bf16.msra.mxu1 %v9629_v28  ;;  %v7710_v28 = vpack.c.bf16 %v4455_v56, %v4455_v56 }
 0x5eb   :  { %9211 = vmatprep.subr.bf16.mxu1 %v9714_v57 }
 0x5ec   :  { %9200 = vmatpush3.bf16.msra.mxu0 %v9630_v26  ;;  %v9667_v26 = vld [vmem:[%s12549_s7 + $0x368] sm:$0xff]  }
 0x5ed   :  { %9217 = vmatprep.subr.bf16.mxu0 %v9714_v57 }
 0x5ee   :  { %9212 = vmatpush3.bf16.msra.mxu1 %v9631_v41  ;;  %v9669_v41 = vld [vmem:[%s12549_s7 + $0x370] sm:$0xff]  }
 0x5ef   :  { %9202 = vmatmul.mubr.msk.bf16.vlgmr.msra.gmra.mrb[96].mxu0 %vm954_vm2, %v7701_v20  ;;  %9229 = vmatprep.subr.bf16.mxu1 %v9714_v57  ;;  %v9671_v20 = vld [vmem:[%s12549_s7 + $0x378] sm:$0xff]  }
 0x5f0   :  { %9218 = vmatpush3.bf16.msra.mxu0 %v9632_v32  ;;  %9225 = vmatprep.mubr.msk.bf16.mxu0 %vm9715_vm3, %v9714_v57  ;;  %v4456_v32 = vmax.f32 %v12004_v31, 0.0  ;;  %v9673_v31 = vld [vmem:[%s12549_s7 + $0x3a0] sm:$0xff]  }
 0x5f1   :  { %9214 = vmatmul.mubr.msk.bf16.vlgmr.msra.gmra.mrb[96].mxu1 %vm954_vm2, %v7702_v23  ;;  %9219 = vmatprep.subr.bf16.mxu0 %v9714_v57  ;;  %v9672_v23 = vld [vmem:[%s12549_s7 + $0x380] sm:$0xff]  }
 0x5f2   :  { %9230 = vmatpush3.bf16.msra.mxu1 %v9633_v9  ;;  %9237 = vmatprep.mubr.msk.bf16.mxu1 %vm9715_vm3, %v9714_v57  ;;  %v4457_v9 = vmax.f32 %v12016_v5, 0.0  ;;  %v9674_v5 = vld [vmem:[%s12549_s7 + $0x388] sm:$0xff]  }
 0x5f3   :  { %9231 = vmatprep.subr.bf16.mxu1 %v9714_v57 }
 0x5f4   :  { %9220 = vmatpush3.bf16.msra.mxu0 %v9634_v16  ;;  %v7711_v16 = vpack.c.bf16 %v4456_v32, %v4456_v32 }
 0x5f5   :  { %9221 = vmatprep.subr.bf16.mxu0 %v9714_v57 }
 0x5f6   :  { %9232 = vmatpush3.bf16.msra.mxu1 %v9635_v10  ;;  %v7712_v10 = vpack.c.bf16 %v4457_v9, %v4457_v9 }
 0x5f7   :  { %9233 = vmatprep.subr.bf16.mxu1 %v9714_v57 }
 0x5f8   :  { %9222 = vmatpush3.bf16.msra.mxu0 %v9636_v7 }
 0x5f9   :  { %9223 = vmatprep.subr.bf16.mxu0 %v9714_v57 }
 0x5fa   :  { %9234 = vmatpush3.bf16.msra.mxu1 %v9637_v0  ;;  %v9675_v0 = vld [vmem:[%s12549_s7 + $0x3a8] sm:$0xff]  }
 0x5fb   :  { %9235 = vmatprep.subr.bf16.mxu1 %v9714_v57 }
 0x5fc   :  { %9224 = vmatpush3.bf16.msra.mxu0 %v9638_v4 }
 0x5fd   :  { %9241 = vmatprep.subr.bf16.mxu0 %v9714_v57 }
 0x5fe   :  { %9236 = vmatpush3.bf16.msra.mxu1 %v9639_v53 }
 0x5ff   :  { %9226 = vmatmul.mubr.msk.bf16.vlgmr.msra.gmra.mrb[100].mxu0 %vm954_vm2, %v7703_v55  ;;  %9253 = vmatprep.subr.bf16.mxu1 %v9714_v57 }
 0x600   :  { %9242 = vmatpush3.bf16.msra.mxu0 %v9640_v44  ;;  %9249 = vmatprep.mubr.msk.bf16.mxu0 %vm9715_vm3, %v9714_v57 }
 0x601   :  { %9238 = vmatmul.mubr.msk.bf16.vlgmr.msra.gmra.mrb[100].mxu1 %vm954_vm2, %v7704_v60  ;;  %9243 = vmatprep.subr.bf16.mxu0 %v9714_v57 }
 0x602   :  { %9254 = vmatpush3.bf16.msra.mxu1 %v9641_v11  ;;  %9261 = vmatprep.mubr.msk.bf16.mxu1 %vm9715_vm3, %v9714_v57 }
 0x603   :  { %9255 = vmatprep.subr.bf16.mxu1 %v9714_v57 }
 0x604   :  { %9244 = vmatpush3.bf16.msra.mxu0 %v9642_v49  ;;  %v9677_v49 = vld [vmem:[%s12549_s7 + $0x3b0] sm:$0xff]  }
 0x605   :  { %9245 = vmatprep.subr.bf16.mxu0 %v9714_v57 }
 0x606   :  { %9256 = vmatpush3.bf16.msra.mxu1 %v9643_v48 }
 0x607   :  { %9257 = vmatprep.subr.bf16.mxu1 %v9714_v57 }
 0x608   :  { %9246 = vmatpush3.bf16.msra.mxu0 %v9644_v62  ;;  %v9678_v62 = vld [vmem:[%s12549_s7 + $0x398] sm:$0xff]  }
 0x609   :  { %9247 = vmatprep.subr.bf16.mxu0 %v9714_v57 }
 0x60a   :  { %9258 = vmatpush3.bf16.msra.mxu1 %v9645_v24  ;;  %v4458_v24 = vmax.f32 %v12050_v29, 0.0  ;;  %v9681_v29 = vld [vmem:[%s12549_s7 + $0x3e0] sm:$0xff]  }
 0x60b   :  { %9259 = vmatprep.subr.bf16.mxu1 %v9714_v57 }
 0x60c   :  { %9248 = vmatpush3.bf16.msra.mxu0 %v9646_v51  ;;  %v9679_v51 = vld [vmem:[%s12549_s7 + $0x3b8] sm:$0xff]   ;;  %v7713_v37 = vpack.c.bf16 %v4458_v24, %v4458_v24 }
 0x60d   :  { %9265 = vmatprep.subr.bf16.mxu0 %v9714_v57 }
 0x60e   :  { %9260 = vmatpush3.bf16.msra.mxu1 %v9647_v34  ;;  %v9680_v34 = vld [vmem:[%s12549_s7 + $0x3c0] sm:$0xff]  }
 0x60f   :  { %9250 = vmatmul.mubr.msk.bf16.vlgmr.msra.gmra.mrb[104].mxu0 %vm954_vm2, %v7705_v40  ;;  %9277 = vmatprep.subr.bf16.mxu1 %v9714_v57 }
 0x610   :  { %9266 = vmatpush3.bf16.msra.mxu0 %v9648_v45  ;;  %9273 = vmatprep.mubr.msk.bf16.mxu0 %vm9715_vm3, %v9714_v57  ;;  %v7714_v45 = vpack.c.bf16 %v4459_v35, %v4459_v35 }
 0x611   :  { %9262 = vmatmul.mubr.msk.bf16.vlgmr.msra.gmra.mrb[104].mxu1 %vm954_vm2, %v7706_v19  ;;  %9267 = vmatprep.subr.bf16.mxu0 %v9714_v57 }
 0x612   :  { %9278 = vmatpush3.bf16.msra.mxu1 %v9649_v25  ;;  %9285 = vmatprep.mubr.msk.bf16.mxu1 %vm9715_vm3, %v9714_v57  ;;  %v9683_v25 = vld [vmem:[%s12549_s7 + $0x3e8] sm:$0xff]  }
 0x613   :  { %9279 = vmatprep.subr.bf16.mxu1 %v9714_v57 }
 0x614   :  { %9268 = vmatpush3.bf16.msra.mxu0 %v9650_v33 }
 0x615   :  { %9269 = vmatprep.subr.bf16.mxu0 %v9714_v57 }
 0x616   :  { %9280 = vmatpush3.bf16.msra.mxu1 %v9651_v63 }
 0x617   :  { %9281 = vmatprep.subr.bf16.mxu1 %v9714_v57 }
 0x618   :  { %9270 = vmatpush3.bf16.msra.mxu0 %v9652_v15 }
 0x619   :  { %9271 = vmatprep.subr.bf16.mxu0 %v9714_v57 }
 0x61a   :  { %9282 = vmatpush3.bf16.msra.mxu1 %v9653_v59  ;;  %v9684_v59 = vld [vmem:[%s12549_s7 + $0x3d0] sm:$0xff]  }
 0x61b   :  { %9283 = vmatprep.subr.bf16.mxu1 %v9714_v57 }
 0x61c   :  { %9272 = vmatpush3.bf16.msra.mxu0 %v9654_v54 }
 0x61d   :  { %9289 = vmatprep.subr.bf16.mxu0 %v9714_v57 }
 0x61e   :  { %9284 = vmatpush3.bf16.msra.mxu1 %v9655_v14 }
 0x61f   :  { %9274 = vmatmul.mubr.msk.bf16.vlgmr.msra.gmra.mrb[108].mxu0 %vm954_vm2, %v7707_v18  ;;  %9301 = vmatprep.subr.bf16.mxu1 %v9714_v57 }
 0x620   :  { %9290 = vmatpush3.bf16.msra.mxu0 %v9656_v36  ;;  %9297 = vmatprep.mubr.msk.bf16.mxu0 %vm9715_vm3, %v9714_v57  ;;  %v9685_v36 = vld [vmem:[%s12549_s7 + $0x3f0] sm:$0xff]  }
 0x621   :  { %9286 = vmatmul.mubr.msk.bf16.vlgmr.msra.gmra.mrb[108].mxu1 %vm954_vm2, %v7708_v2  ;;  %9291 = vmatprep.subr.bf16.mxu0 %v9714_v57  ;;  %v4460_v2 = vmax.f32 %v12041_v13, 0.0 }
 0x622   :  { %9302 = vmatpush3.bf16.msra.mxu1 %v9657_v46  ;;  %9309 = vmatprep.mubr.msk.bf16.mxu1 %vm9715_vm3, %v9714_v57  ;;  %v9686_v46 = vld [vmem:[%s12549_s7 + $0x3d8] sm:$0xff]  }
 0x623   :  { %9303 = vmatprep.subr.bf16.mxu1 %v9714_v57 }
 0x624   :  { %9292 = vmatpush3.bf16.msra.mxu0 %v9658_v58  ;;  %v9687_v58 = vld [vmem:[%s12549_s7 + $0x3f8] sm:$0xff]  }
 0x625   :  { %9293 = vmatprep.subr.bf16.mxu0 %v9714_v57 }
 0x626   :  { %9304 = vmatpush3.bf16.msra.mxu1 %v9659_v47  ;;  %v4461_v47 = vmax.f32 %v12056_v42, 0.0 }
 0x627   :  { %9305 = vmatprep.subr.bf16.mxu1 %v9714_v57 }
 0x628   :  { %9294 = vmatpush3.bf16.msra.mxu0 %v9660_v12  ;;  %v7715_v12 = vpack.c.bf16 %v4460_v2, %v4460_v2 }
 0x629   :  { %9295 = vmatprep.subr.bf16.mxu0 %v9714_v57 }
 0x62a   :  { %9306 = vmatpush3.bf16.msra.mxu1 %v9661_v50  ;;  %v7716_v50 = vpack.c.bf16 %v4461_v47, %v4461_v47 }
 0x62b   :  { %9307 = vmatprep.subr.bf16.mxu1 %v9714_v57 }
 0x62c   :  { %9296 = vmatpush3.bf16.msra.mxu0 %v9662_v61 }
 0x62d   :  { %9313 = vmatprep.subr.bf16.mxu0 %v9714_v57 }
 0x62e   :  { %9308 = vmatpush3.bf16.msra.mxu1 %v9663_v39 }
 0x62f   :  { %9298 = vmatmul.mubr.msk.bf16.vlgmr.msra.gmra.mrb[112].mxu0 %vm954_vm2, %v7709_v38  ;;  %9325 = vmatprep.subr.bf16.mxu1 %v9714_v57 }
 0x630   :  { %9314 = vmatpush3.bf16.msra.mxu0 %v9664_v1  ;;  %9321 = vmatprep.mubr.msk.bf16.mxu0 %vm9715_vm3, %v9714_v57 }
 0x631   :  { %9310 = vmatmul.mubr.msk.bf16.vlgmr.msra.gmra.mrb[112].mxu1 %vm954_vm2, %v7710_v28  ;;  %9315 = vmatprep.subr.bf16.mxu0 %v9714_v57 }
 0x632   :  { %9326 = vmatpush3.bf16.msra.mxu1 %v9665_v3  ;;  %9333 = vmatprep.mubr.msk.bf16.mxu1 %vm9715_vm3, %v9714_v57 }
 0x633   :  { %9327 = vmatprep.subr.bf16.mxu1 %v9714_v57 }
 0x634   :  { %9316 = vmatpush3.bf16.msra.mxu0 %v9666_v6 }
 0x635   :  { %9317 = vmatprep.subr.bf16.mxu0 %v9714_v57 }
 0x636   :  { %9328 = vmatpush3.bf16.msra.mxu1 %v9667_v26 }
 0x637   :  { %9329 = vmatprep.subr.bf16.mxu1 %v9714_v57 }
 0x638   :  { %9318 = vmatpush3.bf16.msra.mxu0 %v9668_v52 }
 0x639   :  { %9319 = vmatprep.subr.bf16.mxu0 %v9714_v57 }
 0x63a   :  { %9330 = vmatpush3.bf16.msra.mxu1 %v9669_v41 }
 0x63b   :  { %9331 = vmatprep.subr.bf16.mxu1 %v9714_v57 }
 0x63c   :  { %9320 = vmatpush3.bf16.msra.mxu0 %v9670_v8 }
 0x63d   :  { %9337 = vmatprep.subr.bf16.mxu0 %v9714_v57 }
 0x63e   :  { %9332 = vmatpush3.bf16.msra.mxu1 %v9671_v20 }
 0x63f   :  { %9322 = vmatmul.mubr.msk.bf16.vlgmr.msra.gmra.mrb[116].mxu0 %vm954_vm2, %v7711_v16  ;;  %9349 = vmatprep.subr.bf16.mxu1 %v9714_v57 }
 0x640   :  { %9338 = vmatpush3.bf16.msra.mxu0 %v9672_v23  ;;  %9345 = vmatprep.mubr.msk.bf16.mxu0 %vm9715_vm3, %v9714_v57 }
 0x641   :  { %9334 = vmatmul.mubr.msk.bf16.vlgmr.msra.gmra.mrb[116].mxu1 %vm954_vm2, %v7712_v10  ;;  %9339 = vmatprep.subr.bf16.mxu0 %v9714_v57 }
 0x642   :  { %9350 = vmatpush3.bf16.msra.mxu1 %v9673_v31  ;;  %v4875_v7 = vpop.f32.mrb[64].mxu0  ;;  %9357 = vmatprep.mubr.msk.bf16.mxu1 %vm9715_vm3, %v9714_v57 }
 0x643   :  { %v9011_v4 = vpop.f32.mrb[65].mxu0  ;;  %9351 = vmatprep.subr.bf16.mxu1 %v9714_v57 }
 0x644   :  { %9340 = vmatpush3.bf16.msra.mxu0 %v9674_v5  ;;  %v4878_v27 = vpop.f32.mrb[66].mxu0  ;;  %v4942_v53 = vpop.f32.mrb[64].mxu1 }
 0x645   :  { %v6958_v44 = vadd.f32 %v4942_v53, %v4875_v7  ;;  %v9012_v55 = vpop.f32.mrb[67].mxu0  ;;  %v9023_v11 = vpop.f32.mrb[65].mxu1  ;;  %9341 = vmatprep.subr.bf16.mxu0 %v9714_v57 }
 0x646   :  { %9352 = vmatpush3.bf16.msra.mxu1 %v9675_v0  ;;  %v4945_v60 = vpop.f32.mrb[66].mxu1 }
 0x647   :  { %v9024_v48 = vpop.f32.mrb[67].mxu1  ;;  %9353 = vmatprep.subr.bf16.mxu1 %v9714_v57 }
 0x648   :  { %9342 = vmatpush3.bf16.msra.mxu0 %v9676_v30 }
 0x649   :  { %9343 = vmatprep.subr.bf16.mxu0 %v9714_v57 }
 0x64a   :  { %9354 = vmatpush3.bf16.msra.mxu1 %v9677_v49 }
 0x64b   :  { %9355 = vmatprep.subr.bf16.mxu1 %v9714_v57 }
 0x64c   :  { %9344 = vmatpush3.bf16.msra.mxu0 %v9678_v62 }
 0x64d   :  { %9361 = vmatprep.subr.bf16.mxu0 %v9714_v57 }
 0x64e   :  { %9356 = vmatpush3.bf16.msra.mxu1 %v9679_v51 }
 0x64f   :  { %9346 = vmatmul.mubr.msk.bf16.vlgmr.msra.gmra.mrb[120].mxu0 %vm954_vm2, %v7713_v37  ;;  %9373 = vmatprep.subr.bf16.mxu1 %v9714_v57 }
 0x650   :  { %9362 = vmatpush3.bf16.msra.mxu0 %v9680_v34  ;;  %9369 = vmatprep.mubr.msk.bf16.mxu0 %vm9715_vm3, %v9714_v57 }
 0x651   :  { %9358 = vmatmul.mubr.msk.bf16.vlgmr.msra.gmra.mrb[120].mxu1 %vm954_vm2, %v7714_v45  ;;  %9363 = vmatprep.subr.bf16.mxu0 %v9714_v57 }
 0x652   :  { %v5009_v40 = vpop.f32.mrb[68].mxu0  ;;  %9374 = vmatpush3.bf16.msra.mxu1 %v9681_v29  ;;  %9381 = vmatprep.mubr.msk.bf16.mxu1 %vm9715_vm3, %v9714_v57 }
 0x653   :  { %v6959_v19 = vadd.f32 %v6958_v44, %v5009_v40  ;;  %v9035_v33 = vpop.f32.mrb[69].mxu0  ;;  %9375 = vmatprep.subr.bf16.mxu1 %v9714_v57 }
 0x654   :  { %v5012_v63 = vpop.f32.mrb[70].mxu0  ;;  %v5076_v15 = vpop.f32.mrb[68].mxu1  ;;  %9364 = vmatpush3.bf16.msra.mxu0 %v9682_v43 }
 0x655   :  { %v6960_v54 = vadd.f32 %v6959_v19, %v5076_v15  ;;  %v9036_v21 = vpop.f32.mrb[71].mxu0  ;;  %v9047_v14 = vpop.f32.mrb[69].mxu1  ;;  %9365 = vmatprep.subr.bf16.mxu0 %v9714_v57 }
 0x656   :  { %v5079_v17 = vpop.f32.mrb[70].mxu1  ;;  %9376 = vmatpush3.bf16.msra.mxu1 %v9683_v25 }
 0x657   :  { %v9048_v18 = vpop.f32.mrb[71].mxu1  ;;  %9377 = vmatprep.subr.bf16.mxu1 %v9714_v57 }
 0x658   :  { %9366 = vmatpush3.bf16.msra.mxu0 %v9684_v59 }
 0x659   :  { %9367 = vmatprep.subr.bf16.mxu0 %v9714_v57 }
 0x65a   :  { %9378 = vmatpush3.bf16.msra.mxu1 %v9685_v36 }
 0x65b   :  { %9379 = vmatprep.subr.bf16.mxu1 %v9714_v57 }
 0x65c   :  { %9368 = vmatpush3.bf16.msra.mxu0 %v9686_v46 }
 0x65e   :  { %9380 = vmatpush3.bf16.msra.mxu1 %v9687_v58 }
 0x65f   :  { %9370 = vmatmul.mubr.msk.bf16.vlgmr.msra.gmra.mrb[124].mxu0 %vm954_vm2, %v7715_v12 }
 0x661   :  { %9382 = vmatmul.mubr.msk.bf16.vlgmr.msra.gmra.mrb[124].mxu1 %vm954_vm2, %v7716_v50 }
 0x662   :  { %v5143_v13 = vpop.f32.mrb[72].mxu0 }
 0x663   :  { %v6961_v61 = vadd.f32 %v6960_v54, %v5143_v13  ;;  %v9059_v22 = vpop.f32.mrb[73].mxu0 }
 0x664   :  { %v5146_v39 = vpop.f32.mrb[74].mxu0  ;;  %v5210_v56 = vpop.f32.mrb[72].mxu1 }
 0x665   :  { %v6962_v1 = vadd.f32 %v6961_v61, %v5210_v56  ;;  %v9060_v38 = vpop.f32.mrb[75].mxu0  ;;  %v9071_v3 = vpop.f32.mrb[73].mxu1 }
 0x666   :  { %v5213_v28 = vpop.f32.mrb[74].mxu1 }
 0x667   :  { %v9072_v42 = vpop.f32.mrb[75].mxu1 }
 0x672   :  { %v5277_v6 = vpop.f32.mrb[76].mxu0 }
 0x673   :  { %v6963_v57 = vadd.f32 %v6962_v1, %v5277_v6  ;;  %v9083_v26 = vpop.f32.mrb[77].mxu0 }
 0x674   :  { %v5280_v52 = vpop.f32.mrb[78].mxu0  ;;  %v5344_v41 = vpop.f32.mrb[76].mxu1 }
 0x675   :  { %v6964_v8 = vadd.f32 %v6963_v57, %v5344_v41  ;;  %v9084_v32 = vpop.f32.mrb[79].mxu0  ;;  %v9095_v20 = vpop.f32.mrb[77].mxu1 }
 0x676   :  { %v5347_v9 = vpop.f32.mrb[78].mxu1 }
 0x677   :  { %v9096_v23 = vpop.f32.mrb[79].mxu1 }
 0x682   :  { %v5411_v16 = vpop.f32.mrb[80].mxu0 }
 0x683   :  { %v6965_v31 = vadd.f32 %v6964_v8, %v5411_v16  ;;  %v9107_v10 = vpop.f32.mrb[81].mxu0 }
 0x684   :  { %v5414_v5 = vpop.f32.mrb[82].mxu0  ;;  %v5478_v7 = vpop.f32.mrb[80].mxu1 }
 0x685   :  { %v6966_v0 = vadd.f32 %v6965_v31, %v5478_v7  ;;  %v9108_v4 = vpop.f32.mrb[83].mxu0  ;;  %v9119_v27 = vpop.f32.mrb[81].mxu1 }
 0x686   :  { %v5481_v53 = vpop.f32.mrb[82].mxu1 }
 0x687   :  { %v9120_v30 = vpop.f32.mrb[83].mxu1 }
 0x692   :  { %v5545_v44 = vpop.f32.mrb[84].mxu0 }
 0x693   :  { %v6967_v55 = vadd.f32 %v6966_v0, %v5545_v44  ;;  %v9131_v11 = vpop.f32.mrb[85].mxu0 }
 0x694   :  { %v5548_v60 = vpop.f32.mrb[86].mxu0  ;;  %v5612_v49 = vpop.f32.mrb[84].mxu1 }
 0x695   :  { %v6968_v48 = vadd.f32 %v6967_v55, %v5612_v49  ;;  %v9132_v62 = vpop.f32.mrb[87].mxu0  ;;  %v9143_v24 = vpop.f32.mrb[85].mxu1 }
 0x696   :  { %v5615_v51 = vpop.f32.mrb[86].mxu1 }
 0x697   :  { %v9144_v35 = vpop.f32.mrb[87].mxu1 }
 0x6a2   :  { %v5679_v34 = vpop.f32.mrb[88].mxu0 }
 0x6a3   :  { %v6969_v37 = vadd.f32 %v6968_v48, %v5679_v34  ;;  %v9155_v29 = vpop.f32.mrb[89].mxu0 }
 0x6a4   :  { %v5682_v45 = vpop.f32.mrb[90].mxu0  ;;  %v5746_v43 = vpop.f32.mrb[88].mxu1 }
 0x6a5   :  { %v6970_v40 = vadd.f32 %v6969_v37, %v5746_v43  ;;  %v9156_v25 = vpop.f32.mrb[91].mxu0  ;;  %v9167_v19 = vpop.f32.mrb[89].mxu1 }
 0x6a6   :  { %v5749_v33 = vpop.f32.mrb[90].mxu1 }
 0x6a7   :  { %v9168_v63 = vpop.f32.mrb[91].mxu1 }
 0x6b2   :  { %v5813_v15 = vpop.f32.mrb[92].mxu0 }
 0x6b3   :  { %v6971_v59 = vadd.f32 %v6970_v40, %v5813_v15  ;;  %v9179_v54 = vpop.f32.mrb[93].mxu0 }
 0x6b4   :  { %v5816_v21 = vpop.f32.mrb[94].mxu0  ;;  %v5880_v14 = vpop.f32.mrb[92].mxu1 }
 0x6b5   :  { %v6972_v17 = vadd.f32 %v6971_v59, %v5880_v14  ;;  %v9180_v36 = vpop.f32.mrb[95].mxu0  ;;  %v9191_v18 = vpop.f32.mrb[93].mxu1 }
 0x6b6   :  { %v5883_v46 = vpop.f32.mrb[94].mxu1 }
 0x6b7   :  { %v9192_v2 = vpop.f32.mrb[95].mxu1 }
 0x6c2   :  { %v5947_v58 = vpop.f32.mrb[96].mxu0 }
 0x6c3   :  { %v6973_v47 = vadd.f32 %v6972_v17, %v5947_v58  ;;  %v9203_v12 = vpop.f32.mrb[97].mxu0 }
 0x6c4   :  { %v5950_v50 = vpop.f32.mrb[98].mxu0  ;;  %v6014_v13 = vpop.f32.mrb[96].mxu1 }
 0x6c5   :  { %v6974_v61 = vadd.f32 %v6973_v47, %v6014_v13  ;;  %v9204_v22 = vpop.f32.mrb[99].mxu0  ;;  %v9215_v39 = vpop.f32.mrb[97].mxu1 }
 0x6c6   :  { %v6017_v56 = vpop.f32.mrb[98].mxu1 }
 0x6c7   :  { %v9216_v1 = vpop.f32.mrb[99].mxu1 }
 0x6d2   :  { %v6081_v38 = vpop.f32.mrb[100].mxu0 }
 0x6d3   :  { %v6975_v3 = vadd.f32 %v6974_v61, %v6081_v38  ;;  %v9227_v28 = vpop.f32.mrb[101].mxu0 }
 0x6d4   :  { %v6084_v42 = vpop.f32.mrb[102].mxu0  ;;  %v6148_v6 = vpop.f32.mrb[100].mxu1 }
 0x6d5   :  { %v6976_v57 = vadd.f32 %v6975_v3, %v6148_v6  ;;  %v9228_v26 = vpop.f32.mrb[103].mxu0  ;;  %v9239_v52 = vpop.f32.mrb[101].mxu1  ;;  %v7588_v3 = vld [vmem:[%s12550_s8] ss:$0 sm:$0xff] }
 0x6d6   :  { %v6151_v41 = vpop.f32.mrb[102].mxu1 }
 0x6d7   :  { %v9240_v8 = vpop.f32.mrb[103].mxu1 }
 0x6e2   :  { %v6215_v32 = vpop.f32.mrb[104].mxu0 }
 0x6e3   :  { %v6977_v20 = vadd.f32 %v6976_v57, %v6215_v32  ;;  %v9251_v9 = vpop.f32.mrb[105].mxu0 }
 0x6e4   :  { %v6218_v23 = vpop.f32.mrb[106].mxu0  ;;  %v6282_v16 = vpop.f32.mrb[104].mxu1 }
 0x6e5   :  { %v6978_v31 = vadd.f32 %v6977_v20, %v6282_v16  ;;  %v9252_v10 = vpop.f32.mrb[107].mxu0  ;;  %v9263_v5 = vpop.f32.mrb[105].mxu1 }
 0x6e6   :  { %v6285_v7 = vpop.f32.mrb[106].mxu1 }
 0x6e7   :  { %v9264_v0 = vpop.f32.mrb[107].mxu1 }
 0x6f2   :  { %v6349_v4 = vpop.f32.mrb[108].mxu0 }
 0x6f3   :  { %v6979_v27 = vadd.f32 %v6978_v31, %v6349_v4  ;;  %v9275_v53 = vpop.f32.mrb[109].mxu0 }
 0x6f4   :  { %v6352_v30 = vpop.f32.mrb[110].mxu0  ;;  %v6416_v44 = vpop.f32.mrb[108].mxu1 }
 0x6f5   :  { %v6980_v55 = vadd.f32 %v6979_v27, %v6416_v44  ;;  %v9276_v11 = vpop.f32.mrb[111].mxu0  ;;  %v9287_v60 = vpop.f32.mrb[109].mxu1 }
 0x6f6   :  { %v6419_v49 = vpop.f32.mrb[110].mxu1 }
 0x6f7   :  { %v9288_v48 = vpop.f32.mrb[111].mxu1 }
 0x702   :  { %v6483_v62 = vpop.f32.mrb[112].mxu0 }
 0x703   :  { %v6981_v24 = vadd.f32 %v6980_v55, %v6483_v62  ;;  %v9299_v51 = vpop.f32.mrb[113].mxu0 }
 0x704   :  { %v6486_v35 = vpop.f32.mrb[114].mxu0  ;;  %v6550_v34 = vpop.f32.mrb[112].mxu1 }
 0x705   :  { %v6982_v37 = vadd.f32 %v6981_v24, %v6550_v34  ;;  %v9300_v29 = vpop.f32.mrb[115].mxu0  ;;  %v9311_v45 = vpop.f32.mrb[113].mxu1 }
 0x706   :  { %v6553_v43 = vpop.f32.mrb[114].mxu1 }
 0x707   :  { %v9312_v40 = vpop.f32.mrb[115].mxu1 }
 0x712   :  { %v6617_v25 = vpop.f32.mrb[116].mxu0 }
 0x713   :  { %v6983_v19 = vadd.f32 %v6982_v37, %v6617_v25  ;;  %v9323_v33 = vpop.f32.mrb[117].mxu0 }
 0x714   :  { %v6620_v63 = vpop.f32.mrb[118].mxu0  ;;  %v6684_v15 = vpop.f32.mrb[116].mxu1 }
 0x715   :  { %v6984_v59 = vadd.f32 %v6983_v19, %v6684_v15  ;;  %v9324_v54 = vpop.f32.mrb[119].mxu0  ;;  %v9335_v21 = vpop.f32.mrb[117].mxu1 }
 0x716   :  { %v6687_v14 = vpop.f32.mrb[118].mxu1 }
 0x717   :  { %v9336_v17 = vpop.f32.mrb[119].mxu1 }
 0x722   :  { %v6751_v36 = vpop.f32.mrb[120].mxu0 }
 0x723   :  { %v6985_v18 = vadd.f32 %v6984_v59, %v6751_v36  ;;  %v9347_v46 = vpop.f32.mrb[121].mxu0 }
 0x724   :  { %v6754_v2 = vpop.f32.mrb[122].mxu0  ;;  %v6818_v58 = vpop.f32.mrb[120].mxu1 }
 0x725   :  { %v6986_v47 = vadd.f32 %v6985_v18, %v6818_v58  ;;  %v9348_v12 = vpop.f32.mrb[123].mxu0  ;;  %v9359_v50 = vpop.f32.mrb[121].mxu1 }
 0x726   :  { %v6821_v13 = vpop.f32.mrb[122].mxu1 }
 0x727   :  { %v9360_v61 = vpop.f32.mrb[123].mxu1 }
 0x732   :  { %v6885_v22 = vpop.f32.mrb[124].mxu0 }
 0x733   :  { %v6987_v39 = vadd.f32 %v6986_v47, %v6885_v22  ;;  %v9371_v56 = vpop.f32.mrb[125].mxu0 }
 0x734   :  { %v6888_v1 = vpop.f32.mrb[126].mxu0  ;;  %v6952_v38 = vpop.f32.mrb[124].mxu1 }
 0x735   :  { %v6988_v28 = vadd.f32 %v6987_v39, %v6952_v38  ;;  %v9372_v42 = vpop.f32.mrb[127].mxu0  ;;  %v9383_v6 = vpop.f32.mrb[125].mxu1 }
 0x736   :  { %v6955_v57 = vpop.f32.mrb[126].mxu1 }
 0x737   :  { %v9384_v26 = vpop.f32.mrb[127].mxu1  ;;  %v6996_v52 = vadd.f32 %v7588_v3, %v6988_v28 }
 0x739   :  { %6997 = vst [vmem:[#allocation2] sm:$0xff] %v6996_v52 }
 0x73a   :  { %9699 = shalt.err (!%p9696_p4)
}
 0x73b   :  { %s9700_s8 = scalar_lea.hbm %s12551_s9, 128 }
 0x73c   :  { %p9701_p5 = scmp.ne.s32.totalorder %s12551_s9, %s9700_s8  ;;  %p9704_p6 = scmp.lt.u32.totalorder %s9700_s8, %s12551_s9 }
 0x73e   :  { %p9706_p7 = pnand %p9704_p6, %p9701_p5 }
 0x740   :  { %9709 = shalt.err (!%p9706_p7)
}
 0x741   :  { %7007 = dma.vmem_to_hbm [thread:$0]  %s7005_s11, 128, %s12551_s9, [#allocation3]  }
 0x742   :  { %9710 = dma.done.wait [#allocation3], 128  }
 0x743   :  { %9711 = vsyncadd [#allocation3], 4294967168 }
 0x744   :  { %7011 = vsyncpa [#allocation3], 1 }

</bundles_post_ra>
